<compile_context>
chip_gen: v6e
topology: v6e:2x2x1
jax: 0.10.0
libtpu: 0.0.40
codegen_flags: <defaults>
</compile_context>

<pallas_src>
import functools

import numpy as np

import jax
import jax.numpy as jnp
from jax.experimental import pallas as pl
from jax.experimental.pallas import tpu as pltpu


# ------------------------------ shape helpers ------------------------------- #

def _conv_out(size, k, s):
    return (size - k) // s + 1


def _round_up(v, m):
    return ((v + m - 1) // m) * m


def _im2col(x, kh, kw, stride):
    # x: (N, H, W, C) NHWC, VALID padding -> (N*Ho*Wo, KH*KW*C) patch matrix,
    # rows ordered (b, y, x), columns ordered (kh, kw, cin).
    n, h, w, c = x.shape
    ho = _conv_out(h, kh, stride)
    wo = _conv_out(w, kw, stride)
    cols = []
    for i in range(kh):
        for j in range(kw):
            cols.append(x[:, i:i + stride * ho:stride, j:j + stride * wo:stride, :])
    patches = jnp.concatenate(cols, axis=-1)          # (N, Ho, Wo, KH*KW*C)
    return patches.reshape(n * ho * wo, kh * kw * c), ho, wo


# --------------------------- fused Pallas kernel ---------------------------- #

def _fused_kernel(p1_ref, w1_ref, b1_ref, w2_ref, b2_ref, w3_ref, b3_ref,
                  wf1_ref, bf1_ref, wf2_ref, bf2_ref, out_ref,
                  *, btile, ho1, wo1, num_actions, atoms, out_cols):
    """Whole CategoricalDQN forward for ONE batch tile of `btile` samples.

    Row convention for conv activations / patch matrices: rows ordered (y, x, b)
    (spatial-major, batch-minor), channels in lanes.  With btile a multiple of 8,
    "one spatial position, all samples" is a contiguous vreg-aligned row slice.
    """
    f32 = jnp.float32

    def mm(x, w_ref, b_ref, relu):
        # one bf16 cast per layer; MXU matmul with f32 accumulation; f32 epilogue
        y = jnp.dot(x.astype(w_ref.dtype), w_ref[...],
                    preferred_element_type=f32) + b_ref[...]
        return jnp.maximum(y, 0.0) if relu else y

    def conv_patches(act, hi, wi, kh, kw, stride):
        # act: (hi*wi*btile, cin) rows (y, x, b)  ->  im2col patch matrix
        # (ho*wo*btile, kh*kw*cin) rows (p, q, b): ONE matmul per conv layer.
        ho = (hi - kh) // stride + 1
        wo = (wi - kw) // stride + 1
        pos_rows = []
        for p in range(ho):
            for q in range(wo):
                taps = []
                for i in range(kh):
                    for j in range(kw):
                        r0 = ((p * stride + i) * wi + (q * stride + j)) * btile
                        taps.append(act[r0:r0 + btile, :])       # (btile, cin)
                pos_rows.append(jnp.concatenate(taps, axis=-1))  # (btile, kh*kw*cin)
        patches = pos_rows[0] if len(pos_rows) == 1 else jnp.concatenate(pos_rows, axis=0)
        return patches, ho, wo

    # ---- conv1: patches prebuilt in the XLA prologue -------------------------
    a1 = mm(p1_ref[...], w1_ref, b1_ref, relu=True)          # (ho1*wo1*btile, 32)

    # ---- conv2 (4x4 s2) / conv3 (3x3 s1): one patch matrix + one matmul each --
    p2, ho2, wo2 = conv_patches(a1, ho1, wo1, 4, 4, 2)
    a2 = mm(p2, w2_ref, b2_ref, relu=True)                   # (ho2*wo2*btile, 64)

    p3, ho3, wo3 = conv_patches(a2, ho2, wo2, 3, 3, 1)
    a3 = mm(p3, w3_ref, b3_ref, relu=True)                   # (ho3*wo3*btile, 64)

    # ---- fc1 / fc2 (PyTorch NCHW flatten folded into wf1 rows at prep time) ---
    npos = ho3 * wo3
    if npos == 1:
        feat = a3                                            # (btile, 64)
    else:
        feat = jnp.concatenate(
            [a3[p * btile:(p + 1) * btile, :] for p in range(npos)],
            axis=-1)                                         # (btile, npos*64), (y,x,c)
    hid = mm(feat, wf1_ref, bf1_ref, relu=True)              # (btile, 512)
    logits = mm(hid, wf2_ref, bf2_ref, relu=False)           # (btile, out_cols) f32

    # ---- per-action softmax over atoms, vectorized over the batch tile -------
    segs = []
    for a in range(num_actions):
        s = logits[:, a * atoms:(a + 1) * atoms]             # (btile, atoms)
        e = jnp.exp(s - jnp.max(s, axis=-1, keepdims=True))
        denom = jnp.sum(e, axis=-1, keepdims=True)
        # exact reciprocal: keeps sum-to-1 within 1e-5 while using the EUP slot
        segs.append(e * pl.reciprocal(denom, approx=False))
    pad = out_cols - num_actions * atoms
    if pad:
        segs.append(jnp.zeros((btile, pad), f32))
    out_ref[...] = jnp.concatenate(segs, axis=-1)            # lane-dense (btile, out_cols)


# ------------------------------- JAX wrapper -------------------------------- #

def categorical_dqn_forward(prepped, x_nchw, *, num_actions, atoms, batch_tile=8):
    assert batch_tile % 8 == 0, "batch_tile must be a multiple of 8 (sublane alignment)"
    n = x_nchw.shape[0]
    compute_dtype = prepped["w1"].dtype

    ntiles = pl.cdiv(n, batch_tile)
    n_pad = ntiles * batch_tile

    # NHWC + conv1 im2col: one fused XLA prologue on the raw HBM input.
    x = jnp.transpose(x_nchw, (0, 2, 3, 1)).astype(compute_dtype)
    if n_pad != n:
        x = jnp.concatenate(
            [x, jnp.zeros((n_pad - n,) + x.shape[1:], compute_dtype)], axis=0)
    patches1, ho1, wo1 = _im2col(x, 8, 8, 4)                 # rows (b, y, x)
    m1, k1 = ho1 * wo1, patches1.shape[1]

    # Reorder rows to (tile, y, x, b_in_tile): each grid step reads one contiguous
    # sublane-aligned block, and per-position batch rows are contiguous in-kernel.
    patches1 = (patches1.reshape(ntiles, batch_tile, m1, k1)
                .transpose(0, 2, 1, 3)
                .reshape(ntiles * m1 * batch_tile, k1))

    ho2, wo2 = _conv_out(ho1, 4, 2), _conv_out(wo1, 4, 2)
    ho3, wo3 = _conv_out(ho2, 3, 1), _conv_out(wo2, 3, 1)

    w1, b1 = prepped["w1"], prepped["b1"]
    w2, b2 = prepped["w2"], prepped["b2"]
    w3, b3 = prepped["w3"], prepped["b3"]
    wf1, bf1 = prepped["wfc1"], prepped["bfc1"]
    wf2, bf2 = prepped["wfc2"], prepped["bfc2"]
    out_cols = wf2.shape[1]                                  # lane-padded (mult. of 128)
    assert out_cols >= num_actions * atoms

    kernel = functools.partial(_fused_kernel, btile=batch_tile, ho1=ho1, wo1=wo1,
                               num_actions=num_actions, atoms=atoms, out_cols=out_cols)

    # Advisory cost hint so XLA can schedule around the fused custom call.
    flops = 2 * n_pad * (m1 * k1 * w1.shape[1]
                         + ho2 * wo2 * w2.shape[0] * w2.shape[1]
                         + ho3 * wo3 * w3.shape[0] * w3.shape[1]
                         + wf1.shape[0] * wf1.shape[1]
                         + wf2.shape[0] * wf2.shape[1])
    weight_bytes = sum(int(a.size) * a.dtype.itemsize
                       for a in (w1, b1, w2, b2, w3, b3, wf1, bf1, wf2, bf2))
    bytes_accessed = (int(patches1.size) * patches1.dtype.itemsize
                      + weight_bytes + n_pad * out_cols * 4)

    const = lambda b: (0, 0)
    grid_spec = pltpu.PrefetchScalarGridSpec(
        num_scalar_prefetch=0,
        grid=(ntiles,),                                      # one step per batch tile
        in_specs=[
            pl.BlockSpec((m1 * batch_tile, k1), lambda b: (b, 0)),  # per-tile patches
            # Grid-invariant weight/bias blocks (constant index -> fetched once).
            pl.BlockSpec(w1.shape, const), pl.BlockSpec(b1.shape, const),
            pl.BlockSpec(w2.shape, const), pl.BlockSpec(b2.shape, const),
            pl.BlockSpec(w3.shape, const), pl.BlockSpec(b3.shape, const),
            pl.BlockSpec(wf1.shape, const), pl.BlockSpec(bf1.shape, const),
            pl.BlockSpec(wf2.shape, const), pl.BlockSpec(bf2.shape, const),
        ],
        out_specs=pl.BlockSpec((batch_tile, out_cols), lambda b: (b, 0)),
    )

    out = pl.pallas_call(
        kernel,
        out_shape=jax.ShapeDtypeStruct((n_pad, out_cols), jnp.float32),
        grid_spec=grid_spec,
        compiler_params=pltpu.CompilerParams(
            dimension_semantics=("parallel",)),              # batch tiles -> both TCs
        cost_estimate=pl.CostEstimate(flops=flops,
                                      transcendentals=n_pad * num_actions * atoms,
                                      bytes_accessed=bytes_accessed),
    )(patches1, w1, b1, w2, b2, w3, b3, wf1, bf1, wf2, bf2)

    return out[:n, :num_actions * atoms].reshape(n, num_actions, atoms)


# ----------------------- one-time parameter preparation ---------------------- #

def prep_params(params, input_shape, compute_dtype=jnp.bfloat16):
    """Convert PyTorch-layout params to kernel-ready matrices (done once)."""
    _, h, w = input_shape
    h1, w1 = _conv_out(h, 8, 4), _conv_out(w, 8, 4)
    h2, w2 = _conv_out(h1, 4, 2), _conv_out(w1, 4, 2)
    h3, w3 = _conv_out(h2, 3, 1), _conv_out(w2, 3, 1)
    c3 = params["w3"].shape[0]

    def conv_mat(w_oihw):
        co, ci, kh, kw = w_oihw.shape
        return (jnp.transpose(w_oihw, (2, 3, 1, 0))
                .reshape(kh * kw * ci, co).astype(compute_dtype))

    # Fold PyTorch's NCHW flatten order into fc1's weight rows so the kernel can
    # consume (y, x, c)-ordered features directly (zero runtime cost).
    perm = np.array([cc * h3 * w3 + y * w3 + x
                     for y in range(h3) for x in range(w3) for cc in range(c3)],
                    dtype=np.int32)
    wfc1 = jnp.asarray(params["wfc1"]).T[perm, :].astype(compute_dtype)

    # Pad fc2 output columns to a multiple of 128 (lane-dense kernel output).
    out_dim = params["wfc2"].shape[0]
    out_cols = _round_up(out_dim, 128)
    wfc2 = jnp.zeros((params["wfc2"].shape[1], out_cols), compute_dtype)
    wfc2 = wfc2.at[:, :out_dim].set(jnp.asarray(params["wfc2"]).T.astype(compute_dtype))
    bfc2 = jnp.zeros((1, out_cols), jnp.float32)
    bfc2 = bfc2.at[:, :out_dim].set(params["bfc2"].reshape(1, -1).astype(jnp.float32))

    return {
        "w1": conv_mat(params["w1"]),
        "b1": params["b1"].reshape(1, -1).astype(jnp.float32),
        "w2": conv_mat(params["w2"]),
        "b2": params["b2"].reshape(1, -1).astype(jnp.float32),
        "w3": conv_mat(params["w3"]),
        "b3": params["b3"].reshape(1, -1).astype(jnp.float32),
        "wfc1": wfc1,
        "bfc1": params["bfc1"].reshape(1, -1).astype(jnp.float32),
        "wfc2": wfc2,
        "bfc2": bfc2,
    }


# --------------------------- deterministic params ---------------------------- #

def init_params(key, input_shape, num_actions, atoms):
    c, h, w = input_shape
    h1, w1 = _conv_out(h, 8, 4), _conv_out(w, 8, 4)
    h2, w2 = _conv_out(h1, 4, 2), _conv_out(w1, 4, 2)
    h3, w3 = _conv_out(h2, 3, 1), _conv_out(w2, 3, 1)
    feature_size = 64 * h3 * w3

    ks = jax.random.split(key, 10)
    scale = 0.05
    return {
        "w1": scale * jax.random.normal(ks[0], (32, c, 8, 8), jnp.float32),
        "b1": scale * jax.random.normal(ks[1], (32,), jnp.float32),
        "w2": scale * jax.random.normal(ks[2], (64, 32, 4, 4), jnp.float32),
        "b2": scale * jax.random.normal(ks[3], (64,), jnp.float32),
        "w3": scale * jax.random.normal(ks[4], (64, 64, 3, 3), jnp.float32),
        "b3": scale * jax.random.normal(ks[5], (64,), jnp.float32),
        # nn.Linear weights are (out, in), as in PyTorch.
        "wfc1": scale * jax.random.normal(ks[6], (512, feature_size), jnp.float32),
        "bfc1": scale * jax.random.normal(ks[7], (512,), jnp.float32),
        "wfc2": scale * jax.random.normal(ks[8], (num_actions * atoms, 512), jnp.float32),
        "bfc2": scale * jax.random.normal(ks[9], (num_actions * atoms,), jnp.float32),
    }


# ----------------------------- pure-JAX reference ---------------------------- #

def reference_forward(params, x_nchw, num_actions, atoms):
    """f32 reference mirroring the PyTorch module exactly (validation only)."""
    x = jnp.transpose(x_nchw, (0, 2, 3, 1)).astype(jnp.float32)

    def conv_relu(x, w_oihw, b, stride):
        co, ci, kh, kw = w_oihw.shape
        patches, ho, wo = _im2col(x, kh, kw, stride)
        wm = jnp.transpose(w_oihw, (2, 3, 1, 0)).reshape(kh * kw * ci, co)
        y = jnp.maximum(patches @ wm + b, 0.0)
        return y.reshape(x.shape[0], ho, wo, co)

    x = conv_relu(x, params["w1"], params["b1"], 4)
    x = conv_relu(x, params["w2"], params["b2"], 2)
    x = conv_relu(x, params["w3"], params["b3"], 1)
    n = x.shape[0]
    feat = jnp.transpose(x, (0, 3, 1, 2)).reshape(n, -1)        # NCHW flatten
    h = jnp.maximum(feat @ params["wfc1"].T + params["bfc1"], 0.0)
    logits = h @ params["wfc2"].T + params["bfc2"]
    return jax.nn.softmax(logits.reshape(n, num_actions, atoms), axis=-1)


# ---------------------------------- main ------------------------------------- #

if __name__ == "__main__":
    # 44x44 input -> conv3 output is 2x2, so the NCHW-flatten permutation folded
    # into fc1 is actually exercised (review correctness concern).
    input_shape = (4, 44, 44)
    num_actions, atoms, batch = 6, 51, 32      # batch_tile=8 -> grid=(4,)

    key = jax.random.PRNGKey(0)
    kp, kx = jax.random.split(key)
    params = init_params(kp, input_shape, num_actions, atoms)
    prepped = prep_params(params, input_shape)
    x = jax.random.normal(kx, (batch,) + input_shape, jnp.float32)   # NCHW, like PyTorch

    fwd = jax.jit(functools.partial(categorical_dqn_forward,
                                    num_actions=num_actions, atoms=atoms,
                                    batch_tile=8))
    out = jax.block_until_ready(fwd(prepped, x))

    assert out.shape == (batch, num_actions, atoms), out.shape
    # distribution sanity: each (batch, action) row sums to 1 (softmax done in f32)
    assert bool(jnp.allclose(jnp.sum(out, axis=-1), 1.0, atol=1e-5))
    # matches the f32 pure-JAX reference (bf16 matmul operands -> loose atol)
    ref = reference_forward(params, x, num_actions, atoms)
    assert bool(jnp.allclose(out, ref, atol=1e-2, rtol=0.0)), \
        float(jnp.max(jnp.abs(out - ref)))
    print("KERNEL_OK")
</pallas_src>

<mosaic_0001>
module attributes {stable_mosaic.version = 11 : i64} {
  func.func @_fused_kernel(%arg0: i32, %arg1: memref<800x256xbf16, #tpu.memory_space<vmem>>, %arg2: memref<256x32xbf16, #tpu.memory_space<vmem>>, %arg3: memref<1x32xf32, #tpu.memory_space<vmem>>, %arg4: memref<512x64xbf16, #tpu.memory_space<vmem>>, %arg5: memref<1x64xf32, #tpu.memory_space<vmem>>, %arg6: memref<576x64xbf16, #tpu.memory_space<vmem>>, %arg7: memref<1x64xf32, #tpu.memory_space<vmem>>, %arg8: memref<256x512xbf16, #tpu.memory_space<vmem>>, %arg9: memref<1x512xf32, #tpu.memory_space<vmem>>, %arg10: memref<512x384xbf16, #tpu.memory_space<vmem>>, %arg11: memref<1x384xf32, #tpu.memory_space<vmem>>, %arg12: memref<8x384xf32, #tpu.memory_space<vmem>>) attributes {dimension_semantics = [#tpu.dimension_semantics<parallel>], iteration_bounds = array<i64: 4>, scalar_prefetch = 0 : i64, scratch_operands = 0 : i64, tpu.core_type = #tpu.core_type<tc>, window_params = [{transform_indices = @transform_0, window_bounds = array<i64: 800, 256>}, {pipeline_mode = #tpu.pipeline_mode<synchronous>, transform_indices = @transform_1, window_bounds = array<i64: 256, 32>}, {pipeline_mode = #tpu.pipeline_mode<synchronous>, transform_indices = @transform_2, window_bounds = array<i64: 1, 32>}, {pipeline_mode = #tpu.pipeline_mode<synchronous>, transform_indices = @transform_3, window_bounds = array<i64: 512, 64>}, {pipeline_mode = #tpu.pipeline_mode<synchronous>, transform_indices = @transform_4, window_bounds = array<i64: 1, 64>}, {pipeline_mode = #tpu.pipeline_mode<synchronous>, transform_indices = @transform_5, window_bounds = array<i64: 576, 64>}, {pipeline_mode = #tpu.pipeline_mode<synchronous>, transform_indices = @transform_6, window_bounds = array<i64: 1, 64>}, {pipeline_mode = #tpu.pipeline_mode<synchronous>, transform_indices = @transform_7, window_bounds = array<i64: 256, 512>}, {pipeline_mode = #tpu.pipeline_mode<synchronous>, transform_indices = @transform_8, window_bounds = array<i64: 1, 512>}, {pipeline_mode = #tpu.pipeline_mode<synchronous>, transform_indices = @transform_9, window_bounds = array<i64: 512, 384>}, {pipeline_mode = #tpu.pipeline_mode<synchronous>, transform_indices = @transform_10, window_bounds = array<i64: 1, 384>}, {transform_indices = @transform_11, window_bounds = array<i64: 8, 384>}]} {
    %c0 = arith.constant 0 : index
    %c0_0 = arith.constant 0 : index
    %0 = vector.load %arg1[%c0, %c0_0] : memref<800x256xbf16, #tpu.memory_space<vmem>>, vector<800x256xbf16>
    %c0_1 = arith.constant 0 : index
    %c0_2 = arith.constant 0 : index
    %1 = vector.load %arg2[%c0_1, %c0_2] : memref<256x32xbf16, #tpu.memory_space<vmem>>, vector<256x32xbf16>
    %cst = arith.constant dense<0.000000e+00> : vector<800x32xf32>
    %2 = tpu.matmul %0, %1, %cst {dimension_numbers = #tpu.dot_dimension_numbers<[1], [0], [0], [1], [0, 0, 1, 1], [], []>} : vector<800x256xbf16>, vector<256x32xbf16>, vector<800x32xf32> -> vector<800x32xf32>
    %c0_3 = arith.constant 0 : index
    %c0_4 = arith.constant 0 : index
    %3 = vector.load %arg3[%c0_3, %c0_4] : memref<1x32xf32, #tpu.memory_space<vmem>>, vector<1x32xf32>
    %4 = vector.broadcast %3 : vector<1x32xf32> to vector<800x32xf32>
    %5 = arith.addf %2, %4 : vector<800x32xf32>
    %cst_5 = arith.constant 0.000000e+00 : f32
    %6 = vector.broadcast %cst_5 : f32 to vector<800x32xf32>
    %7 = arith.maximumf %5, %6 : vector<800x32xf32>
    %8 = vector.extract_strided_slice %7 {offsets = [0, 0], sizes = [8, 32], strides = [1, 1]} : vector<800x32xf32> to vector<8x32xf32>
    %9 = vector.extract_strided_slice %7 {offsets = [8, 0], sizes = [8, 32], strides = [1, 1]} : vector<800x32xf32> to vector<8x32xf32>
    %10 = vector.extract_strided_slice %7 {offsets = [16, 0], sizes = [8, 32], strides = [1, 1]} : vector<800x32xf32> to vector<8x32xf32>
    %11 = vector.extract_strided_slice %7 {offsets = [24, 0], sizes = [8, 32], strides = [1, 1]} : vector<800x32xf32> to vector<8x32xf32>
    %12 = vector.extract_strided_slice %7 {offsets = [80, 0], sizes = [8, 32], strides = [1, 1]} : vector<800x32xf32> to vector<8x32xf32>
    %13 = vector.extract_strided_slice %7 {offsets = [88, 0], sizes = [8, 32], strides = [1, 1]} : vector<800x32xf32> to vector<8x32xf32>
    %14 = vector.extract_strided_slice %7 {offsets = [96, 0], sizes = [8, 32], strides = [1, 1]} : vector<800x32xf32> to vector<8x32xf32>
    %15 = vector.extract_strided_slice %7 {offsets = [104, 0], sizes = [8, 32], strides = [1, 1]} : vector<800x32xf32> to vector<8x32xf32>
    %16 = vector.extract_strided_slice %7 {offsets = [160, 0], sizes = [8, 32], strides = [1, 1]} : vector<800x32xf32> to vector<8x32xf32>
    %17 = vector.extract_strided_slice %7 {offsets = [168, 0], sizes = [8, 32], strides = [1, 1]} : vector<800x32xf32> to vector<8x32xf32>
    %18 = vector.extract_strided_slice %7 {offsets = [176, 0], sizes = [8, 32], strides = [1, 1]} : vector<800x32xf32> to vector<8x32xf32>
    %19 = vector.extract_strided_slice %7 {offsets = [184, 0], sizes = [8, 32], strides = [1, 1]} : vector<800x32xf32> to vector<8x32xf32>
    %20 = vector.extract_strided_slice %7 {offsets = [240, 0], sizes = [8, 32], strides = [1, 1]} : vector<800x32xf32> to vector<8x32xf32>
    %21 = vector.extract_strided_slice %7 {offsets = [248, 0], sizes = [8, 32], strides = [1, 1]} : vector<800x32xf32> to vector<8x32xf32>
    %22 = vector.extract_strided_slice %7 {offsets = [256, 0], sizes = [8, 32], strides = [1, 1]} : vector<800x32xf32> to vector<8x32xf32>
    %23 = vector.extract_strided_slice %7 {offsets = [264, 0], sizes = [8, 32], strides = [1, 1]} : vector<800x32xf32> to vector<8x32xf32>
    %24 = tpu.concatenate %8, %9, %10, %11, %12, %13, %14, %15, %16, %17, %18, %19, %20, %21, %22, %23 in 1 : vector<8x32xf32>, vector<8x32xf32>, vector<8x32xf32>, vector<8x32xf32>, vector<8x32xf32>, vector<8x32xf32>, vector<8x32xf32>, vector<8x32xf32>, vector<8x32xf32>, vector<8x32xf32>, vector<8x32xf32>, vector<8x32xf32>, vector<8x32xf32>, vector<8x32xf32>, vector<8x32xf32>, vector<8x32xf32> -> vector<8x512xf32>
    %25 = vector.extract_strided_slice %7 {offsets = [16, 0], sizes = [8, 32], strides = [1, 1]} : vector<800x32xf32> to vector<8x32xf32>
    %26 = vector.extract_strided_slice %7 {offsets = [24, 0], sizes = [8, 32], strides = [1, 1]} : vector<800x32xf32> to vector<8x32xf32>
    %27 = vector.extract_strided_slice %7 {offsets = [32, 0], sizes = [8, 32], strides = [1, 1]} : vector<800x32xf32> to vector<8x32xf32>
    %28 = vector.extract_strided_slice %7 {offsets = [40, 0], sizes = [8, 32], strides = [1, 1]} : vector<800x32xf32> to vector<8x32xf32>
    %29 = vector.extract_strided_slice %7 {offsets = [96, 0], sizes = [8, 32], strides = [1, 1]} : vector<800x32xf32> to vector<8x32xf32>
    %30 = vector.extract_strided_slice %7 {offsets = [104, 0], sizes = [8, 32], strides = [1, 1]} : vector<800x32xf32> to vector<8x32xf32>
    %31 = vector.extract_strided_slice %7 {offsets = [112, 0], sizes = [8, 32], strides = [1, 1]} : vector<800x32xf32> to vector<8x32xf32>
    %32 = vector.extract_strided_slice %7 {offsets = [120, 0], sizes = [8, 32], strides = [1, 1]} : vector<800x32xf32> to vector<8x32xf32>
    %33 = vector.extract_strided_slice %7 {offsets = [176, 0], sizes = [8, 32], strides = [1, 1]} : vector<800x32xf32> to vector<8x32xf32>
    %34 = vector.extract_strided_slice %7 {offsets = [184, 0], sizes = [8, 32], strides = [1, 1]} : vector<800x32xf32> to vector<8x32xf32>
    %35 = vector.extract_strided_slice %7 {offsets = [192, 0], sizes = [8, 32], strides = [1, 1]} : vector<800x32xf32> to vector<8x32xf32>
    %36 = vector.extract_strided_slice %7 {offsets = [200, 0], sizes = [8, 32], strides = [1, 1]} : vector<800x32xf32> to vector<8x32xf32>
    %37 = vector.extract_strided_slice %7 {offsets = [256, 0], sizes = [8, 32], strides = [1, 1]} : vector<800x32xf32> to vector<8x32xf32>
    %38 = vector.extract_strided_slice %7 {offsets = [264, 0], sizes = [8, 32], strides = [1, 1]} : vector<800x32xf32> to vector<8x32xf32>
    %39 = vector.extract_strided_slice %7 {offsets = [272, 0], sizes = [8, 32], strides = [1, 1]} : vector<800x32xf32> to vector<8x32xf32>
    %40 = vector.extract_strided_slice %7 {offsets = [280, 0], sizes = [8, 32], strides = [1, 1]} : vector<800x32xf32> to vector<8x32xf32>
    %41 = tpu.concatenate %25, %26, %27, %28, %29, %30, %31, %32, %33, %34, %35, %36, %37, %38, %39, %40 in 1 : vector<8x32xf32>, vector<8x32xf32>, vector<8x32xf32>, vector<8x32xf32>, vector<8x32xf32>, vector<8x32xf32>, vector<8x32xf32>, vector<8x32xf32>, vector<8x32xf32>, vector<8x32xf32>, vector<8x32xf32>, vector<8x32xf32>, vector<8x32xf32>, vector<8x32xf32>, vector<8x32xf32>, vector<8x32xf32> -> vector<8x512xf32>
    %42 = vector.extract_strided_slice %7 {offsets = [32, 0], sizes = [8, 32], strides = [1, 1]} : vector<800x32xf32> to vector<8x32xf32>
    %43 = vector.extract_strided_slice %7 {offsets = [40, 0], sizes = [8, 32], strides = [1, 1]} : vector<800x32xf32> to vector<8x32xf32>
    %44 = vector.extract_strided_slice %7 {offsets = [48, 0], sizes = [8, 32], strides = [1, 1]} : vector<800x32xf32> to vector<8x32xf32>
    %45 = vector.extract_strided_slice %7 {offsets = [56, 0], sizes = [8, 32], strides = [1, 1]} : vector<800x32xf32> to vector<8x32xf32>
    %46 = vector.extract_strided_slice %7 {offsets = [112, 0], sizes = [8, 32], strides = [1, 1]} : vector<800x32xf32> to vector<8x32xf32>
    %47 = vector.extract_strided_slice %7 {offsets = [120, 0], sizes = [8, 32], strides = [1, 1]} : vector<800x32xf32> to vector<8x32xf32>
    %48 = vector.extract_strided_slice %7 {offsets = [128, 0], sizes = [8, 32], strides = [1, 1]} : vector<800x32xf32> to vector<8x32xf32>
    %49 = vector.extract_strided_slice %7 {offsets = [136, 0], sizes = [8, 32], strides = [1, 1]} : vector<800x32xf32> to vector<8x32xf32>
    %50 = vector.extract_strided_slice %7 {offsets = [192, 0], sizes = [8, 32], strides = [1, 1]} : vector<800x32xf32> to vector<8x32xf32>
    %51 = vector.extract_strided_slice %7 {offsets = [200, 0], sizes = [8, 32], strides = [1, 1]} : vector<800x32xf32> to vector<8x32xf32>
    %52 = vector.extract_strided_slice %7 {offsets = [208, 0], sizes = [8, 32], strides = [1, 1]} : vector<800x32xf32> to vector<8x32xf32>
    %53 = vector.extract_strided_slice %7 {offsets = [216, 0], sizes = [8, 32], strides = [1, 1]} : vector<800x32xf32> to vector<8x32xf32>
    %54 = vector.extract_strided_slice %7 {offsets = [272, 0], sizes = [8, 32], strides = [1, 1]} : vector<800x32xf32> to vector<8x32xf32>
    %55 = vector.extract_strided_slice %7 {offsets = [280, 0], sizes = [8, 32], strides = [1, 1]} : vector<800x32xf32> to vector<8x32xf32>
    %56 = vector.extract_strided_slice %7 {offsets = [288, 0], sizes = [8, 32], strides = [1, 1]} : vector<800x32xf32> to vector<8x32xf32>
    %57 = vector.extract_strided_slice %7 {offsets = [296, 0], sizes = [8, 32], strides = [1, 1]} : vector<800x32xf32> to vector<8x32xf32>
    %58 = tpu.concatenate %42, %43, %44, %45, %46, %47, %48, %49, %50, %51, %52, %53, %54, %55, %56, %57 in 1 : vector<8x32xf32>, vector<8x32xf32>, vector<8x32xf32>, vector<8x32xf32>, vector<8x32xf32>, vector<8x32xf32>, vector<8x32xf32>, vector<8x32xf32>, vector<8x32xf32>, vector<8x32xf32>, vector<8x32xf32>, vector<8x32xf32>, vector<8x32xf32>, vector<8x32xf32>, vector<8x32xf32>, vector<8x32xf32> -> vector<8x512xf32>
    %59 = vector.extract_strided_slice %7 {offsets = [48, 0], sizes = [8, 32], strides = [1, 1]} : vector<800x32xf32> to vector<8x32xf32>
    %60 = vector.extract_strided_slice %7 {offsets = [56, 0], sizes = [8, 32], strides = [1, 1]} : vector<800x32xf32> to vector<8x32xf32>
    %61 = vector.extract_strided_slice %7 {offsets = [64, 0], sizes = [8, 32], strides = [1, 1]} : vector<800x32xf32> to vector<8x32xf32>
    %62 = vector.extract_strided_slice %7 {offsets = [72, 0], sizes = [8, 32], strides = [1, 1]} : vector<800x32xf32> to vector<8x32xf32>
    %63 = vector.extract_strided_slice %7 {offsets = [128, 0], sizes = [8, 32], strides = [1, 1]} : vector<800x32xf32> to vector<8x32xf32>
    %64 = vector.extract_strided_slice %7 {offsets = [136, 0], sizes = [8, 32], strides = [1, 1]} : vector<800x32xf32> to vector<8x32xf32>
    %65 = vector.extract_strided_slice %7 {offsets = [144, 0], sizes = [8, 32], strides = [1, 1]} : vector<800x32xf32> to vector<8x32xf32>
    %66 = vector.extract_strided_slice %7 {offsets = [152, 0], sizes = [8, 32], strides = [1, 1]} : vector<800x32xf32> to vector<8x32xf32>
    %67 = vector.extract_strided_slice %7 {offsets = [208, 0], sizes = [8, 32], strides = [1, 1]} : vector<800x32xf32> to vector<8x32xf32>
    %68 = vector.extract_strided_slice %7 {offsets = [216, 0], sizes = [8, 32], strides = [1, 1]} : vector<800x32xf32> to vector<8x32xf32>
    %69 = vector.extract_strided_slice %7 {offsets = [224, 0], sizes = [8, 32], strides = [1, 1]} : vector<800x32xf32> to vector<8x32xf32>
    %70 = vector.extract_strided_slice %7 {offsets = [232, 0], sizes = [8, 32], strides = [1, 1]} : vector<800x32xf32> to vector<8x32xf32>
    %71 = vector.extract_strided_slice %7 {offsets = [288, 0], sizes = [8, 32], strides = [1, 1]} : vector<800x32xf32> to vector<8x32xf32>
    %72 = vector.extract_strided_slice %7 {offsets = [296, 0], sizes = [8, 32], strides = [1, 1]} : vector<800x32xf32> to vector<8x32xf32>
    %73 = vector.extract_strided_slice %7 {offsets = [304, 0], sizes = [8, 32], strides = [1, 1]} : vector<800x32xf32> to vector<8x32xf32>
    %74 = vector.extract_strided_slice %7 {offsets = [312, 0], sizes = [8, 32], strides = [1, 1]} : vector<800x32xf32> to vector<8x32xf32>
    %75 = tpu.concatenate %59, %60, %61, %62, %63, %64, %65, %66, %67, %68, %69, %70, %71, %72, %73, %74 in 1 : vector<8x32xf32>, vector<8x32xf32>, vector<8x32xf32>, vector<8x32xf32>, vector<8x32xf32>, vector<8x32xf32>, vector<8x32xf32>, vector<8x32xf32>, vector<8x32xf32>, vector<8x32xf32>, vector<8x32xf32>, vector<8x32xf32>, vector<8x32xf32>, vector<8x32xf32>, vector<8x32xf32>, vector<8x32xf32> -> vector<8x512xf32>
    %76 = vector.extract_strided_slice %7 {offsets = [160, 0], sizes = [8, 32], strides = [1, 1]} : vector<800x32xf32> to vector<8x32xf32>
    %77 = vector.extract_strided_slice %7 {offsets = [168, 0], sizes = [8, 32], strides = [1, 1]} : vector<800x32xf32> to vector<8x32xf32>
    %78 = vector.extract_strided_slice %7 {offsets = [176, 0], sizes = [8, 32], strides = [1, 1]} : vector<800x32xf32> to vector<8x32xf32>
    %79 = vector.extract_strided_slice %7 {offsets = [184, 0], sizes = [8, 32], strides = [1, 1]} : vector<800x32xf32> to vector<8x32xf32>
    %80 = vector.extract_strided_slice %7 {offsets = [240, 0], sizes = [8, 32], strides = [1, 1]} : vector<800x32xf32> to vector<8x32xf32>
    %81 = vector.extract_strided_slice %7 {offsets = [248, 0], sizes = [8, 32], strides = [1, 1]} : vector<800x32xf32> to vector<8x32xf32>
    %82 = vector.extract_strided_slice %7 {offsets = [256, 0], sizes = [8, 32], strides = [1, 1]} : vector<800x32xf32> to vector<8x32xf32>
    %83 = vector.extract_strided_slice %7 {offsets = [264, 0], sizes = [8, 32], strides = [1, 1]} : vector<800x32xf32> to vector<8x32xf32>
    %84 = vector.extract_strided_slice %7 {offsets = [320, 0], sizes = [8, 32], strides = [1, 1]} : vector<800x32xf32> to vector<8x32xf32>
    %85 = vector.extract_strided_slice %7 {offsets = [328, 0], sizes = [8, 32], strides = [1, 1]} : vector<800x32xf32> to vector<8x32xf32>
    %86 = vector.extract_strided_slice %7 {offsets = [336, 0], sizes = [8, 32], strides = [1, 1]} : vector<800x32xf32> to vector<8x32xf32>
    %87 = vector.extract_strided_slice %7 {offsets = [344, 0], sizes = [8, 32], strides = [1, 1]} : vector<800x32xf32> to vector<8x32xf32>
    %88 = vector.extract_strided_slice %7 {offsets = [400, 0], sizes = [8, 32], strides = [1, 1]} : vector<800x32xf32> to vector<8x32xf32>
    %89 = vector.extract_strided_slice %7 {offsets = [408, 0], sizes = [8, 32], strides = [1, 1]} : vector<800x32xf32> to vector<8x32xf32>
    %90 = vector.extract_strided_slice %7 {offsets = [416, 0], sizes = [8, 32], strides = [1, 1]} : vector<800x32xf32> to vector<8x32xf32>
    %91 = vector.extract_strided_slice %7 {offsets = [424, 0], sizes = [8, 32], strides = [1, 1]} : vector<800x32xf32> to vector<8x32xf32>
    %92 = tpu.concatenate %76, %77, %78, %79, %80, %81, %82, %83, %84, %85, %86, %87, %88, %89, %90, %91 in 1 : vector<8x32xf32>, vector<8x32xf32>, vector<8x32xf32>, vector<8x32xf32>, vector<8x32xf32>, vector<8x32xf32>, vector<8x32xf32>, vector<8x32xf32>, vector<8x32xf32>, vector<8x32xf32>, vector<8x32xf32>, vector<8x32xf32>, vector<8x32xf32>, vector<8x32xf32>, vector<8x32xf32>, vector<8x32xf32> -> vector<8x512xf32>
    %93 = vector.extract_strided_slice %7 {offsets = [176, 0], sizes = [8, 32], strides = [1, 1]} : vector<800x32xf32> to vector<8x32xf32>
    %94 = vector.extract_strided_slice %7 {offsets = [184, 0], sizes = [8, 32], strides = [1, 1]} : vector<800x32xf32> to vector<8x32xf32>
    %95 = vector.extract_strided_slice %7 {offsets = [192, 0], sizes = [8, 32], strides = [1, 1]} : vector<800x32xf32> to vector<8x32xf32>
    %96 = vector.extract_strided_slice %7 {offsets = [200, 0], sizes = [8, 32], strides = [1, 1]} : vector<800x32xf32> to vector<8x32xf32>
    %97 = vector.extract_strided_slice %7 {offsets = [256, 0], sizes = [8, 32], strides = [1, 1]} : vector<800x32xf32> to vector<8x32xf32>
    %98 = vector.extract_strided_slice %7 {offsets = [264, 0], sizes = [8, 32], strides = [1, 1]} : vector<800x32xf32> to vector<8x32xf32>
    %99 = vector.extract_strided_slice %7 {offsets = [272, 0], sizes = [8, 32], strides = [1, 1]} : vector<800x32xf32> to vector<8x32xf32>
    %100 = vector.extract_strided_slice %7 {offsets = [280, 0], sizes = [8, 32], strides = [1, 1]} : vector<800x32xf32> to vector<8x32xf32>
    %101 = vector.extract_strided_slice %7 {offsets = [336, 0], sizes = [8, 32], strides = [1, 1]} : vector<800x32xf32> to vector<8x32xf32>
    %102 = vector.extract_strided_slice %7 {offsets = [344, 0], sizes = [8, 32], strides = [1, 1]} : vector<800x32xf32> to vector<8x32xf32>
    %103 = vector.extract_strided_slice %7 {offsets = [352, 0], sizes = [8, 32], strides = [1, 1]} : vector<800x32xf32> to vector<8x32xf32>
    %104 = vector.extract_strided_slice %7 {offsets = [360, 0], sizes = [8, 32], strides = [1, 1]} : vector<800x32xf32> to vector<8x32xf32>
    %105 = vector.extract_strided_slice %7 {offsets = [416, 0], sizes = [8, 32], strides = [1, 1]} : vector<800x32xf32> to vector<8x32xf32>
    %106 = vector.extract_strided_slice %7 {offsets = [424, 0], sizes = [8, 32], strides = [1, 1]} : vector<800x32xf32> to vector<8x32xf32>
    %107 = vector.extract_strided_slice %7 {offsets = [432, 0], sizes = [8, 32], strides = [1, 1]} : vector<800x32xf32> to vector<8x32xf32>
    %108 = vector.extract_strided_slice %7 {offsets = [440, 0], sizes = [8, 32], strides = [1, 1]} : vector<800x32xf32> to vector<8x32xf32>
    %109 = tpu.concatenate %93, %94, %95, %96, %97, %98, %99, %100, %101, %102, %103, %104, %105, %106, %107, %108 in 1 : vector<8x32xf32>, vector<8x32xf32>, vector<8x32xf32>, vector<8x32xf32>, vector<8x32xf32>, vector<8x32xf32>, vector<8x32xf32>, vector<8x32xf32>, vector<8x32xf32>, vector<8x32xf32>, vector<8x32xf32>, vector<8x32xf32>, vector<8x32xf32>, vector<8x32xf32>, vector<8x32xf32>, vector<8x32xf32> -> vector<8x512xf32>
    %110 = vector.extract_strided_slice %7 {offsets = [192, 0], sizes = [8, 32], strides = [1, 1]} : vector<800x32xf32> to vector<8x32xf32>
    %111 = vector.extract_strided_slice %7 {offsets = [200, 0], sizes = [8, 32], strides = [1, 1]} : vector<800x32xf32> to vector<8x32xf32>
    %112 = vector.extract_strided_slice %7 {offsets = [208, 0], sizes = [8, 32], strides = [1, 1]} : vector<800x32xf32> to vector<8x32xf32>
    %113 = vector.extract_strided_slice %7 {offsets = [216, 0], sizes = [8, 32], strides = [1, 1]} : vector<800x32xf32> to vector<8x32xf32>
    %114 = vector.extract_strided_slice %7 {offsets = [272, 0], sizes = [8, 32], strides = [1, 1]} : vector<800x32xf32> to vector<8x32xf32>
    %115 = vector.extract_strided_slice %7 {offsets = [280, 0], sizes = [8, 32], strides = [1, 1]} : vector<800x32xf32> to vector<8x32xf32>
    %116 = vector.extract_strided_slice %7 {offsets = [288, 0], sizes = [8, 32], strides = [1, 1]} : vector<800x32xf32> to vector<8x32xf32>
    %117 = vector.extract_strided_slice %7 {offsets = [296, 0], sizes = [8, 32], strides = [1, 1]} : vector<800x32xf32> to vector<8x32xf32>
    %118 = vector.extract_strided_slice %7 {offsets = [352, 0], sizes = [8, 32], strides = [1, 1]} : vector<800x32xf32> to vector<8x32xf32>
    %119 = vector.extract_strided_slice %7 {offsets = [360, 0], sizes = [8, 32], strides = [1, 1]} : vector<800x32xf32> to vector<8x32xf32>
    %120 = vector.extract_strided_slice %7 {offsets = [368, 0], sizes = [8, 32], strides = [1, 1]} : vector<800x32xf32> to vector<8x32xf32>
    %121 = vector.extract_strided_slice %7 {offsets = [376, 0], sizes = [8, 32], strides = [1, 1]} : vector<800x32xf32> to vector<8x32xf32>
    %122 = vector.extract_strided_slice %7 {offsets = [432, 0], sizes = [8, 32], strides = [1, 1]} : vector<800x32xf32> to vector<8x32xf32>
    %123 = vector.extract_strided_slice %7 {offsets = [440, 0], sizes = [8, 32], strides = [1, 1]} : vector<800x32xf32> to vector<8x32xf32>
    %124 = vector.extract_strided_slice %7 {offsets = [448, 0], sizes = [8, 32], strides = [1, 1]} : vector<800x32xf32> to vector<8x32xf32>
    %125 = vector.extract_strided_slice %7 {offsets = [456, 0], sizes = [8, 32], strides = [1, 1]} : vector<800x32xf32> to vector<8x32xf32>
    %126 = tpu.concatenate %110, %111, %112, %113, %114, %115, %116, %117, %118, %119, %120, %121, %122, %123, %124, %125 in 1 : vector<8x32xf32>, vector<8x32xf32>, vector<8x32xf32>, vector<8x32xf32>, vector<8x32xf32>, vector<8x32xf32>, vector<8x32xf32>, vector<8x32xf32>, vector<8x32xf32>, vector<8x32xf32>, vector<8x32xf32>, vector<8x32xf32>, vector<8x32xf32>, vector<8x32xf32>, vector<8x32xf32>, vector<8x32xf32> -> vector<8x512xf32>
    %127 = vector.extract_strided_slice %7 {offsets = [208, 0], sizes = [8, 32], strides = [1, 1]} : vector<800x32xf32> to vector<8x32xf32>
    %128 = vector.extract_strided_slice %7 {offsets = [216, 0], sizes = [8, 32], strides = [1, 1]} : vector<800x32xf32> to vector<8x32xf32>
    %129 = vector.extract_strided_slice %7 {offsets = [224, 0], sizes = [8, 32], strides = [1, 1]} : vector<800x32xf32> to vector<8x32xf32>
    %130 = vector.extract_strided_slice %7 {offsets = [232, 0], sizes = [8, 32], strides = [1, 1]} : vector<800x32xf32> to vector<8x32xf32>
    %131 = vector.extract_strided_slice %7 {offsets = [288, 0], sizes = [8, 32], strides = [1, 1]} : vector<800x32xf32> to vector<8x32xf32>
    %132 = vector.extract_strided_slice %7 {offsets = [296, 0], sizes = [8, 32], strides = [1, 1]} : vector<800x32xf32> to vector<8x32xf32>
    %133 = vector.extract_strided_slice %7 {offsets = [304, 0], sizes = [8, 32], strides = [1, 1]} : vector<800x32xf32> to vector<8x32xf32>
    %134 = vector.extract_strided_slice %7 {offsets = [312, 0], sizes = [8, 32], strides = [1, 1]} : vector<800x32xf32> to vector<8x32xf32>
    %135 = vector.extract_strided_slice %7 {offsets = [368, 0], sizes = [8, 32], strides = [1, 1]} : vector<800x32xf32> to vector<8x32xf32>
    %136 = vector.extract_strided_slice %7 {offsets = [376, 0], sizes = [8, 32], strides = [1, 1]} : vector<800x32xf32> to vector<8x32xf32>
    %137 = vector.extract_strided_slice %7 {offsets = [384, 0], sizes = [8, 32], strides = [1, 1]} : vector<800x32xf32> to vector<8x32xf32>
    %138 = vector.extract_strided_slice %7 {offsets = [392, 0], sizes = [8, 32], strides = [1, 1]} : vector<800x32xf32> to vector<8x32xf32>
    %139 = vector.extract_strided_slice %7 {offsets = [448, 0], sizes = [8, 32], strides = [1, 1]} : vector<800x32xf32> to vector<8x32xf32>
    %140 = vector.extract_strided_slice %7 {offsets = [456, 0], sizes = [8, 32], strides = [1, 1]} : vector<800x32xf32> to vector<8x32xf32>
    %141 = vector.extract_strided_slice %7 {offsets = [464, 0], sizes = [8, 32], strides = [1, 1]} : vector<800x32xf32> to vector<8x32xf32>
    %142 = vector.extract_strided_slice %7 {offsets = [472, 0], sizes = [8, 32], strides = [1, 1]} : vector<800x32xf32> to vector<8x32xf32>
    %143 = tpu.concatenate %127, %128, %129, %130, %131, %132, %133, %134, %135, %136, %137, %138, %139, %140, %141, %142 in 1 : vector<8x32xf32>, vector<8x32xf32>, vector<8x32xf32>, vector<8x32xf32>, vector<8x32xf32>, vector<8x32xf32>, vector<8x32xf32>, vector<8x32xf32>, vector<8x32xf32>, vector<8x32xf32>, vector<8x32xf32>, vector<8x32xf32>, vector<8x32xf32>, vector<8x32xf32>, vector<8x32xf32>, vector<8x32xf32> -> vector<8x512xf32>
    %144 = vector.extract_strided_slice %7 {offsets = [320, 0], sizes = [8, 32], strides = [1, 1]} : vector<800x32xf32> to vector<8x32xf32>
    %145 = vector.extract_strided_slice %7 {offsets = [328, 0], sizes = [8, 32], strides = [1, 1]} : vector<800x32xf32> to vector<8x32xf32>
    %146 = vector.extract_strided_slice %7 {offsets = [336, 0], sizes = [8, 32], strides = [1, 1]} : vector<800x32xf32> to vector<8x32xf32>
    %147 = vector.extract_strided_slice %7 {offsets = [344, 0], sizes = [8, 32], strides = [1, 1]} : vector<800x32xf32> to vector<8x32xf32>
    %148 = vector.extract_strided_slice %7 {offsets = [400, 0], sizes = [8, 32], strides = [1, 1]} : vector<800x32xf32> to vector<8x32xf32>
    %149 = vector.extract_strided_slice %7 {offsets = [408, 0], sizes = [8, 32], strides = [1, 1]} : vector<800x32xf32> to vector<8x32xf32>
    %150 = vector.extract_strided_slice %7 {offsets = [416, 0], sizes = [8, 32], strides = [1, 1]} : vector<800x32xf32> to vector<8x32xf32>
    %151 = vector.extract_strided_slice %7 {offsets = [424, 0], sizes = [8, 32], strides = [1, 1]} : vector<800x32xf32> to vector<8x32xf32>
    %152 = vector.extract_strided_slice %7 {offsets = [480, 0], sizes = [8, 32], strides = [1, 1]} : vector<800x32xf32> to vector<8x32xf32>
    %153 = vector.extract_strided_slice %7 {offsets = [488, 0], sizes = [8, 32], strides = [1, 1]} : vector<800x32xf32> to vector<8x32xf32>
    %154 = vector.extract_strided_slice %7 {offsets = [496, 0], sizes = [8, 32], strides = [1, 1]} : vector<800x32xf32> to vector<8x32xf32>
    %155 = vector.extract_strided_slice %7 {offsets = [504, 0], sizes = [8, 32], strides = [1, 1]} : vector<800x32xf32> to vector<8x32xf32>
    %156 = vector.extract_strided_slice %7 {offsets = [560, 0], sizes = [8, 32], strides = [1, 1]} : vector<800x32xf32> to vector<8x32xf32>
    %157 = vector.extract_strided_slice %7 {offsets = [568, 0], sizes = [8, 32], strides = [1, 1]} : vector<800x32xf32> to vector<8x32xf32>
    %158 = vector.extract_strided_slice %7 {offsets = [576, 0], sizes = [8, 32], strides = [1, 1]} : vector<800x32xf32> to vector<8x32xf32>
    %159 = vector.extract_strided_slice %7 {offsets = [584, 0], sizes = [8, 32], strides = [1, 1]} : vector<800x32xf32> to vector<8x32xf32>
    %160 = tpu.concatenate %144, %145, %146, %147, %148, %149, %150, %151, %152, %153, %154, %155, %156, %157, %158, %159 in 1 : vector<8x32xf32>, vector<8x32xf32>, vector<8x32xf32>, vector<8x32xf32>, vector<8x32xf32>, vector<8x32xf32>, vector<8x32xf32>, vector<8x32xf32>, vector<8x32xf32>, vector<8x32xf32>, vector<8x32xf32>, vector<8x32xf32>, vector<8x32xf32>, vector<8x32xf32>, vector<8x32xf32>, vector<8x32xf32> -> vector<8x512xf32>
    %161 = vector.extract_strided_slice %7 {offsets = [336, 0], sizes = [8, 32], strides = [1, 1]} : vector<800x32xf32> to vector<8x32xf32>
    %162 = vector.extract_strided_slice %7 {offsets = [344, 0], sizes = [8, 32], strides = [1, 1]} : vector<800x32xf32> to vector<8x32xf32>
    %163 = vector.extract_strided_slice %7 {offsets = [352, 0], sizes = [8, 32], strides = [1, 1]} : vector<800x32xf32> to vector<8x32xf32>
    %164 = vector.extract_strided_slice %7 {offsets = [360, 0], sizes = [8, 32], strides = [1, 1]} : vector<800x32xf32> to vector<8x32xf32>
    %165 = vector.extract_strided_slice %7 {offsets = [416, 0], sizes = [8, 32], strides = [1, 1]} : vector<800x32xf32> to vector<8x32xf32>
    %166 = vector.extract_strided_slice %7 {offsets = [424, 0], sizes = [8, 32], strides = [1, 1]} : vector<800x32xf32> to vector<8x32xf32>
    %167 = vector.extract_strided_slice %7 {offsets = [432, 0], sizes = [8, 32], strides = [1, 1]} : vector<800x32xf32> to vector<8x32xf32>
    %168 = vector.extract_strided_slice %7 {offsets = [440, 0], sizes = [8, 32], strides = [1, 1]} : vector<800x32xf32> to vector<8x32xf32>
    %169 = vector.extract_strided_slice %7 {offsets = [496, 0], sizes = [8, 32], strides = [1, 1]} : vector<800x32xf32> to vector<8x32xf32>
    %170 = vector.extract_strided_slice %7 {offsets = [504, 0], sizes = [8, 32], strides = [1, 1]} : vector<800x32xf32> to vector<8x32xf32>
    %171 = vector.extract_strided_slice %7 {offsets = [512, 0], sizes = [8, 32], strides = [1, 1]} : vector<800x32xf32> to vector<8x32xf32>
    %172 = vector.extract_strided_slice %7 {offsets = [520, 0], sizes = [8, 32], strides = [1, 1]} : vector<800x32xf32> to vector<8x32xf32>
    %173 = vector.extract_strided_slice %7 {offsets = [576, 0], sizes = [8, 32], strides = [1, 1]} : vector<800x32xf32> to vector<8x32xf32>
    %174 = vector.extract_strided_slice %7 {offsets = [584, 0], sizes = [8, 32], strides = [1, 1]} : vector<800x32xf32> to vector<8x32xf32>
    %175 = vector.extract_strided_slice %7 {offsets = [592, 0], sizes = [8, 32], strides = [1, 1]} : vector<800x32xf32> to vector<8x32xf32>
    %176 = vector.extract_strided_slice %7 {offsets = [600, 0], sizes = [8, 32], strides = [1, 1]} : vector<800x32xf32> to vector<8x32xf32>
    %177 = tpu.concatenate %161, %162, %163, %164, %165, %166, %167, %168, %169, %170, %171, %172, %173, %174, %175, %176 in 1 : vector<8x32xf32>, vector<8x32xf32>, vector<8x32xf32>, vector<8x32xf32>, vector<8x32xf32>, vector<8x32xf32>, vector<8x32xf32>, vector<8x32xf32>, vector<8x32xf32>, vector<8x32xf32>, vector<8x32xf32>, vector<8x32xf32>, vector<8x32xf32>, vector<8x32xf32>, vector<8x32xf32>, vector<8x32xf32> -> vector<8x512xf32>
    %178 = vector.extract_strided_slice %7 {offsets = [352, 0], sizes = [8, 32], strides = [1, 1]} : vector<800x32xf32> to vector<8x32xf32>
    %179 = vector.extract_strided_slice %7 {offsets = [360, 0], sizes = [8, 32], strides = [1, 1]} : vector<800x32xf32> to vector<8x32xf32>
    %180 = vector.extract_strided_slice %7 {offsets = [368, 0], sizes = [8, 32], strides = [1, 1]} : vector<800x32xf32> to vector<8x32xf32>
    %181 = vector.extract_strided_slice %7 {offsets = [376, 0], sizes = [8, 32], strides = [1, 1]} : vector<800x32xf32> to vector<8x32xf32>
    %182 = vector.extract_strided_slice %7 {offsets = [432, 0], sizes = [8, 32], strides = [1, 1]} : vector<800x32xf32> to vector<8x32xf32>
    %183 = vector.extract_strided_slice %7 {offsets = [440, 0], sizes = [8, 32], strides = [1, 1]} : vector<800x32xf32> to vector<8x32xf32>
    %184 = vector.extract_strided_slice %7 {offsets = [448, 0], sizes = [8, 32], strides = [1, 1]} : vector<800x32xf32> to vector<8x32xf32>
    %185 = vector.extract_strided_slice %7 {offsets = [456, 0], sizes = [8, 32], strides = [1, 1]} : vector<800x32xf32> to vector<8x32xf32>
    %186 = vector.extract_strided_slice %7 {offsets = [512, 0], sizes = [8, 32], strides = [1, 1]} : vector<800x32xf32> to vector<8x32xf32>
    %187 = vector.extract_strided_slice %7 {offsets = [520, 0], sizes = [8, 32], strides = [1, 1]} : vector<800x32xf32> to vector<8x32xf32>
    %188 = vector.extract_strided_slice %7 {offsets = [528, 0], sizes = [8, 32], strides = [1, 1]} : vector<800x32xf32> to vector<8x32xf32>
    %189 = vector.extract_strided_slice %7 {offsets = [536, 0], sizes = [8, 32], strides = [1, 1]} : vector<800x32xf32> to vector<8x32xf32>
    %190 = vector.extract_strided_slice %7 {offsets = [592, 0], sizes = [8, 32], strides = [1, 1]} : vector<800x32xf32> to vector<8x32xf32>
    %191 = vector.extract_strided_slice %7 {offsets = [600, 0], sizes = [8, 32], strides = [1, 1]} : vector<800x32xf32> to vector<8x32xf32>
    %192 = vector.extract_strided_slice %7 {offsets = [608, 0], sizes = [8, 32], strides = [1, 1]} : vector<800x32xf32> to vector<8x32xf32>
    %193 = vector.extract_strided_slice %7 {offsets = [616, 0], sizes = [8, 32], strides = [1, 1]} : vector<800x32xf32> to vector<8x32xf32>
    %194 = tpu.concatenate %178, %179, %180, %181, %182, %183, %184, %185, %186, %187, %188, %189, %190, %191, %192, %193 in 1 : vector<8x32xf32>, vector<8x32xf32>, vector<8x32xf32>, vector<8x32xf32>, vector<8x32xf32>, vector<8x32xf32>, vector<8x32xf32>, vector<8x32xf32>, vector<8x32xf32>, vector<8x32xf32>, vector<8x32xf32>, vector<8x32xf32>, vector<8x32xf32>, vector<8x32xf32>, vector<8x32xf32>, vector<8x32xf32> -> vector<8x512xf32>
    %195 = vector.extract_strided_slice %7 {offsets = [368, 0], sizes = [8, 32], strides = [1, 1]} : vector<800x32xf32> to vector<8x32xf32>
    %196 = vector.extract_strided_slice %7 {offsets = [376, 0], sizes = [8, 32], strides = [1, 1]} : vector<800x32xf32> to vector<8x32xf32>
    %197 = vector.extract_strided_slice %7 {offsets = [384, 0], sizes = [8, 32], strides = [1, 1]} : vector<800x32xf32> to vector<8x32xf32>
    %198 = vector.extract_strided_slice %7 {offsets = [392, 0], sizes = [8, 32], strides = [1, 1]} : vector<800x32xf32> to vector<8x32xf32>
    %199 = vector.extract_strided_slice %7 {offsets = [448, 0], sizes = [8, 32], strides = [1, 1]} : vector<800x32xf32> to vector<8x32xf32>
    %200 = vector.extract_strided_slice %7 {offsets = [456, 0], sizes = [8, 32], strides = [1, 1]} : vector<800x32xf32> to vector<8x32xf32>
    %201 = vector.extract_strided_slice %7 {offsets = [464, 0], sizes = [8, 32], strides = [1, 1]} : vector<800x32xf32> to vector<8x32xf32>
    %202 = vector.extract_strided_slice %7 {offsets = [472, 0], sizes = [8, 32], strides = [1, 1]} : vector<800x32xf32> to vector<8x32xf32>
    %203 = vector.extract_strided_slice %7 {offsets = [528, 0], sizes = [8, 32], strides = [1, 1]} : vector<800x32xf32> to vector<8x32xf32>
    %204 = vector.extract_strided_slice %7 {offsets = [536, 0], sizes = [8, 32], strides = [1, 1]} : vector<800x32xf32> to vector<8x32xf32>
    %205 = vector.extract_strided_slice %7 {offsets = [544, 0], sizes = [8, 32], strides = [1, 1]} : vector<800x32xf32> to vector<8x32xf32>
    %206 = vector.extract_strided_slice %7 {offsets = [552, 0], sizes = [8, 32], strides = [1, 1]} : vector<800x32xf32> to vector<8x32xf32>
    %207 = vector.extract_strided_slice %7 {offsets = [608, 0], sizes = [8, 32], strides = [1, 1]} : vector<800x32xf32> to vector<8x32xf32>
    %208 = vector.extract_strided_slice %7 {offsets = [616, 0], sizes = [8, 32], strides = [1, 1]} : vector<800x32xf32> to vector<8x32xf32>
    %209 = vector.extract_strided_slice %7 {offsets = [624, 0], sizes = [8, 32], strides = [1, 1]} : vector<800x32xf32> to vector<8x32xf32>
    %210 = vector.extract_strided_slice %7 {offsets = [632, 0], sizes = [8, 32], strides = [1, 1]} : vector<800x32xf32> to vector<8x32xf32>
    %211 = tpu.concatenate %195, %196, %197, %198, %199, %200, %201, %202, %203, %204, %205, %206, %207, %208, %209, %210 in 1 : vector<8x32xf32>, vector<8x32xf32>, vector<8x32xf32>, vector<8x32xf32>, vector<8x32xf32>, vector<8x32xf32>, vector<8x32xf32>, vector<8x32xf32>, vector<8x32xf32>, vector<8x32xf32>, vector<8x32xf32>, vector<8x32xf32>, vector<8x32xf32>, vector<8x32xf32>, vector<8x32xf32>, vector<8x32xf32> -> vector<8x512xf32>
    %212 = vector.extract_strided_slice %7 {offsets = [480, 0], sizes = [8, 32], strides = [1, 1]} : vector<800x32xf32> to vector<8x32xf32>
    %213 = vector.extract_strided_slice %7 {offsets = [488, 0], sizes = [8, 32], strides = [1, 1]} : vector<800x32xf32> to vector<8x32xf32>
    %214 = vector.extract_strided_slice %7 {offsets = [496, 0], sizes = [8, 32], strides = [1, 1]} : vector<800x32xf32> to vector<8x32xf32>
    %215 = vector.extract_strided_slice %7 {offsets = [504, 0], sizes = [8, 32], strides = [1, 1]} : vector<800x32xf32> to vector<8x32xf32>
    %216 = vector.extract_strided_slice %7 {offsets = [560, 0], sizes = [8, 32], strides = [1, 1]} : vector<800x32xf32> to vector<8x32xf32>
    %217 = vector.extract_strided_slice %7 {offsets = [568, 0], sizes = [8, 32], strides = [1, 1]} : vector<800x32xf32> to vector<8x32xf32>
    %218 = vector.extract_strided_slice %7 {offsets = [576, 0], sizes = [8, 32], strides = [1, 1]} : vector<800x32xf32> to vector<8x32xf32>
    %219 = vector.extract_strided_slice %7 {offsets = [584, 0], sizes = [8, 32], strides = [1, 1]} : vector<800x32xf32> to vector<8x32xf32>
    %220 = vector.extract_strided_slice %7 {offsets = [640, 0], sizes = [8, 32], strides = [1, 1]} : vector<800x32xf32> to vector<8x32xf32>
    %221 = vector.extract_strided_slice %7 {offsets = [648, 0], sizes = [8, 32], strides = [1, 1]} : vector<800x32xf32> to vector<8x32xf32>
    %222 = vector.extract_strided_slice %7 {offsets = [656, 0], sizes = [8, 32], strides = [1, 1]} : vector<800x32xf32> to vector<8x32xf32>
    %223 = vector.extract_strided_slice %7 {offsets = [664, 0], sizes = [8, 32], strides = [1, 1]} : vector<800x32xf32> to vector<8x32xf32>
    %224 = vector.extract_strided_slice %7 {offsets = [720, 0], sizes = [8, 32], strides = [1, 1]} : vector<800x32xf32> to vector<8x32xf32>
    %225 = vector.extract_strided_slice %7 {offsets = [728, 0], sizes = [8, 32], strides = [1, 1]} : vector<800x32xf32> to vector<8x32xf32>
    %226 = vector.extract_strided_slice %7 {offsets = [736, 0], sizes = [8, 32], strides = [1, 1]} : vector<800x32xf32> to vector<8x32xf32>
    %227 = vector.extract_strided_slice %7 {offsets = [744, 0], sizes = [8, 32], strides = [1, 1]} : vector<800x32xf32> to vector<8x32xf32>
    %228 = tpu.concatenate %212, %213, %214, %215, %216, %217, %218, %219, %220, %221, %222, %223, %224, %225, %226, %227 in 1 : vector<8x32xf32>, vector<8x32xf32>, vector<8x32xf32>, vector<8x32xf32>, vector<8x32xf32>, vector<8x32xf32>, vector<8x32xf32>, vector<8x32xf32>, vector<8x32xf32>, vector<8x32xf32>, vector<8x32xf32>, vector<8x32xf32>, vector<8x32xf32>, vector<8x32xf32>, vector<8x32xf32>, vector<8x32xf32> -> vector<8x512xf32>
    %229 = vector.extract_strided_slice %7 {offsets = [496, 0], sizes = [8, 32], strides = [1, 1]} : vector<800x32xf32> to vector<8x32xf32>
    %230 = vector.extract_strided_slice %7 {offsets = [504, 0], sizes = [8, 32], strides = [1, 1]} : vector<800x32xf32> to vector<8x32xf32>
    %231 = vector.extract_strided_slice %7 {offsets = [512, 0], sizes = [8, 32], strides = [1, 1]} : vector<800x32xf32> to vector<8x32xf32>
    %232 = vector.extract_strided_slice %7 {offsets = [520, 0], sizes = [8, 32], strides = [1, 1]} : vector<800x32xf32> to vector<8x32xf32>
    %233 = vector.extract_strided_slice %7 {offsets = [576, 0], sizes = [8, 32], strides = [1, 1]} : vector<800x32xf32> to vector<8x32xf32>
    %234 = vector.extract_strided_slice %7 {offsets = [584, 0], sizes = [8, 32], strides = [1, 1]} : vector<800x32xf32> to vector<8x32xf32>
    %235 = vector.extract_strided_slice %7 {offsets = [592, 0], sizes = [8, 32], strides = [1, 1]} : vector<800x32xf32> to vector<8x32xf32>
    %236 = vector.extract_strided_slice %7 {offsets = [600, 0], sizes = [8, 32], strides = [1, 1]} : vector<800x32xf32> to vector<8x32xf32>
    %237 = vector.extract_strided_slice %7 {offsets = [656, 0], sizes = [8, 32], strides = [1, 1]} : vector<800x32xf32> to vector<8x32xf32>
    %238 = vector.extract_strided_slice %7 {offsets = [664, 0], sizes = [8, 32], strides = [1, 1]} : vector<800x32xf32> to vector<8x32xf32>
    %239 = vector.extract_strided_slice %7 {offsets = [672, 0], sizes = [8, 32], strides = [1, 1]} : vector<800x32xf32> to vector<8x32xf32>
    %240 = vector.extract_strided_slice %7 {offsets = [680, 0], sizes = [8, 32], strides = [1, 1]} : vector<800x32xf32> to vector<8x32xf32>
    %241 = vector.extract_strided_slice %7 {offsets = [736, 0], sizes = [8, 32], strides = [1, 1]} : vector<800x32xf32> to vector<8x32xf32>
    %242 = vector.extract_strided_slice %7 {offsets = [744, 0], sizes = [8, 32], strides = [1, 1]} : vector<800x32xf32> to vector<8x32xf32>
    %243 = vector.extract_strided_slice %7 {offsets = [752, 0], sizes = [8, 32], strides = [1, 1]} : vector<800x32xf32> to vector<8x32xf32>
    %244 = vector.extract_strided_slice %7 {offsets = [760, 0], sizes = [8, 32], strides = [1, 1]} : vector<800x32xf32> to vector<8x32xf32>
    %245 = tpu.concatenate %229, %230, %231, %232, %233, %234, %235, %236, %237, %238, %239, %240, %241, %242, %243, %244 in 1 : vector<8x32xf32>, vector<8x32xf32>, vector<8x32xf32>, vector<8x32xf32>, vector<8x32xf32>, vector<8x32xf32>, vector<8x32xf32>, vector<8x32xf32>, vector<8x32xf32>, vector<8x32xf32>, vector<8x32xf32>, vector<8x32xf32>, vector<8x32xf32>, vector<8x32xf32>, vector<8x32xf32>, vector<8x32xf32> -> vector<8x512xf32>
    %246 = vector.extract_strided_slice %7 {offsets = [512, 0], sizes = [8, 32], strides = [1, 1]} : vector<800x32xf32> to vector<8x32xf32>
    %247 = vector.extract_strided_slice %7 {offsets = [520, 0], sizes = [8, 32], strides = [1, 1]} : vector<800x32xf32> to vector<8x32xf32>
    %248 = vector.extract_strided_slice %7 {offsets = [528, 0], sizes = [8, 32], strides = [1, 1]} : vector<800x32xf32> to vector<8x32xf32>
    %249 = vector.extract_strided_slice %7 {offsets = [536, 0], sizes = [8, 32], strides = [1, 1]} : vector<800x32xf32> to vector<8x32xf32>
    %250 = vector.extract_strided_slice %7 {offsets = [592, 0], sizes = [8, 32], strides = [1, 1]} : vector<800x32xf32> to vector<8x32xf32>
    %251 = vector.extract_strided_slice %7 {offsets = [600, 0], sizes = [8, 32], strides = [1, 1]} : vector<800x32xf32> to vector<8x32xf32>
    %252 = vector.extract_strided_slice %7 {offsets = [608, 0], sizes = [8, 32], strides = [1, 1]} : vector<800x32xf32> to vector<8x32xf32>
    %253 = vector.extract_strided_slice %7 {offsets = [616, 0], sizes = [8, 32], strides = [1, 1]} : vector<800x32xf32> to vector<8x32xf32>
    %254 = vector.extract_strided_slice %7 {offsets = [672, 0], sizes = [8, 32], strides = [1, 1]} : vector<800x32xf32> to vector<8x32xf32>
    %255 = vector.extract_strided_slice %7 {offsets = [680, 0], sizes = [8, 32], strides = [1, 1]} : vector<800x32xf32> to vector<8x32xf32>
    %256 = vector.extract_strided_slice %7 {offsets = [688, 0], sizes = [8, 32], strides = [1, 1]} : vector<800x32xf32> to vector<8x32xf32>
    %257 = vector.extract_strided_slice %7 {offsets = [696, 0], sizes = [8, 32], strides = [1, 1]} : vector<800x32xf32> to vector<8x32xf32>
    %258 = vector.extract_strided_slice %7 {offsets = [752, 0], sizes = [8, 32], strides = [1, 1]} : vector<800x32xf32> to vector<8x32xf32>
    %259 = vector.extract_strided_slice %7 {offsets = [760, 0], sizes = [8, 32], strides = [1, 1]} : vector<800x32xf32> to vector<8x32xf32>
    %260 = vector.extract_strided_slice %7 {offsets = [768, 0], sizes = [8, 32], strides = [1, 1]} : vector<800x32xf32> to vector<8x32xf32>
    %261 = vector.extract_strided_slice %7 {offsets = [776, 0], sizes = [8, 32], strides = [1, 1]} : vector<800x32xf32> to vector<8x32xf32>
    %262 = tpu.concatenate %246, %247, %248, %249, %250, %251, %252, %253, %254, %255, %256, %257, %258, %259, %260, %261 in 1 : vector<8x32xf32>, vector<8x32xf32>, vector<8x32xf32>, vector<8x32xf32>, vector<8x32xf32>, vector<8x32xf32>, vector<8x32xf32>, vector<8x32xf32>, vector<8x32xf32>, vector<8x32xf32>, vector<8x32xf32>, vector<8x32xf32>, vector<8x32xf32>, vector<8x32xf32>, vector<8x32xf32>, vector<8x32xf32> -> vector<8x512xf32>
    %263 = vector.extract_strided_slice %7 {offsets = [528, 0], sizes = [8, 32], strides = [1, 1]} : vector<800x32xf32> to vector<8x32xf32>
    %264 = vector.extract_strided_slice %7 {offsets = [536, 0], sizes = [8, 32], strides = [1, 1]} : vector<800x32xf32> to vector<8x32xf32>
    %265 = vector.extract_strided_slice %7 {offsets = [544, 0], sizes = [8, 32], strides = [1, 1]} : vector<800x32xf32> to vector<8x32xf32>
    %266 = vector.extract_strided_slice %7 {offsets = [552, 0], sizes = [8, 32], strides = [1, 1]} : vector<800x32xf32> to vector<8x32xf32>
    %267 = vector.extract_strided_slice %7 {offsets = [608, 0], sizes = [8, 32], strides = [1, 1]} : vector<800x32xf32> to vector<8x32xf32>
    %268 = vector.extract_strided_slice %7 {offsets = [616, 0], sizes = [8, 32], strides = [1, 1]} : vector<800x32xf32> to vector<8x32xf32>
    %269 = vector.extract_strided_slice %7 {offsets = [624, 0], sizes = [8, 32], strides = [1, 1]} : vector<800x32xf32> to vector<8x32xf32>
    %270 = vector.extract_strided_slice %7 {offsets = [632, 0], sizes = [8, 32], strides = [1, 1]} : vector<800x32xf32> to vector<8x32xf32>
    %271 = vector.extract_strided_slice %7 {offsets = [688, 0], sizes = [8, 32], strides = [1, 1]} : vector<800x32xf32> to vector<8x32xf32>
    %272 = vector.extract_strided_slice %7 {offsets = [696, 0], sizes = [8, 32], strides = [1, 1]} : vector<800x32xf32> to vector<8x32xf32>
    %273 = vector.extract_strided_slice %7 {offsets = [704, 0], sizes = [8, 32], strides = [1, 1]} : vector<800x32xf32> to vector<8x32xf32>
    %274 = vector.extract_strided_slice %7 {offsets = [712, 0], sizes = [8, 32], strides = [1, 1]} : vector<800x32xf32> to vector<8x32xf32>
    %275 = vector.extract_strided_slice %7 {offsets = [768, 0], sizes = [8, 32], strides = [1, 1]} : vector<800x32xf32> to vector<8x32xf32>
    %276 = vector.extract_strided_slice %7 {offsets = [776, 0], sizes = [8, 32], strides = [1, 1]} : vector<800x32xf32> to vector<8x32xf32>
    %277 = vector.extract_strided_slice %7 {offsets = [784, 0], sizes = [8, 32], strides = [1, 1]} : vector<800x32xf32> to vector<8x32xf32>
    %278 = vector.extract_strided_slice %7 {offsets = [792, 0], sizes = [8, 32], strides = [1, 1]} : vector<800x32xf32> to vector<8x32xf32>
    %279 = tpu.concatenate %263, %264, %265, %266, %267, %268, %269, %270, %271, %272, %273, %274, %275, %276, %277, %278 in 1 : vector<8x32xf32>, vector<8x32xf32>, vector<8x32xf32>, vector<8x32xf32>, vector<8x32xf32>, vector<8x32xf32>, vector<8x32xf32>, vector<8x32xf32>, vector<8x32xf32>, vector<8x32xf32>, vector<8x32xf32>, vector<8x32xf32>, vector<8x32xf32>, vector<8x32xf32>, vector<8x32xf32>, vector<8x32xf32> -> vector<8x512xf32>
    %280 = tpu.concatenate %24, %41, %58, %75, %92, %109, %126, %143, %160, %177, %194, %211, %228, %245, %262, %279 in 0 : vector<8x512xf32>, vector<8x512xf32>, vector<8x512xf32>, vector<8x512xf32>, vector<8x512xf32>, vector<8x512xf32>, vector<8x512xf32>, vector<8x512xf32>, vector<8x512xf32>, vector<8x512xf32>, vector<8x512xf32>, vector<8x512xf32>, vector<8x512xf32>, vector<8x512xf32>, vector<8x512xf32>, vector<8x512xf32> -> vector<128x512xf32>
    %281 = arith.truncf %280 : vector<128x512xf32> to vector<128x512xbf16>
    %c0_6 = arith.constant 0 : index
    %c0_7 = arith.constant 0 : index
    %282 = vector.load %arg4[%c0_6, %c0_7] : memref<512x64xbf16, #tpu.memory_space<vmem>>, vector<512x64xbf16>
    %cst_8 = arith.constant dense<0.000000e+00> : vector<128x64xf32>
    %283 = tpu.matmul %281, %282, %cst_8 {dimension_numbers = #tpu.dot_dimension_numbers<[1], [0], [0], [1], [0, 0, 1, 1], [], []>} : vector<128x512xbf16>, vector<512x64xbf16>, vector<128x64xf32> -> vector<128x64xf32>
    %c0_9 = arith.constant 0 : index
    %c0_10 = arith.constant 0 : index
    %284 = vector.load %arg5[%c0_9, %c0_10] : memref<1x64xf32, #tpu.memory_space<vmem>>, vector<1x64xf32>
    %285 = vector.broadcast %284 : vector<1x64xf32> to vector<128x64xf32>
    %286 = arith.addf %283, %285 : vector<128x64xf32>
    %cst_11 = arith.constant 0.000000e+00 : f32
    %287 = vector.broadcast %cst_11 : f32 to vector<128x64xf32>
    %288 = arith.maximumf %286, %287 : vector<128x64xf32>
    %289 = vector.extract_strided_slice %288 {offsets = [0, 0], sizes = [8, 64], strides = [1, 1]} : vector<128x64xf32> to vector<8x64xf32>
    %290 = vector.extract_strided_slice %288 {offsets = [8, 0], sizes = [8, 64], strides = [1, 1]} : vector<128x64xf32> to vector<8x64xf32>
    %291 = vector.extract_strided_slice %288 {offsets = [16, 0], sizes = [8, 64], strides = [1, 1]} : vector<128x64xf32> to vector<8x64xf32>
    %292 = vector.extract_strided_slice %288 {offsets = [32, 0], sizes = [8, 64], strides = [1, 1]} : vector<128x64xf32> to vector<8x64xf32>
    %293 = vector.extract_strided_slice %288 {offsets = [40, 0], sizes = [8, 64], strides = [1, 1]} : vector<128x64xf32> to vector<8x64xf32>
    %294 = vector.extract_strided_slice %288 {offsets = [48, 0], sizes = [8, 64], strides = [1, 1]} : vector<128x64xf32> to vector<8x64xf32>
    %295 = vector.extract_strided_slice %288 {offsets = [64, 0], sizes = [8, 64], strides = [1, 1]} : vector<128x64xf32> to vector<8x64xf32>
    %296 = vector.extract_strided_slice %288 {offsets = [72, 0], sizes = [8, 64], strides = [1, 1]} : vector<128x64xf32> to vector<8x64xf32>
    %297 = vector.extract_strided_slice %288 {offsets = [80, 0], sizes = [8, 64], strides = [1, 1]} : vector<128x64xf32> to vector<8x64xf32>
    %298 = tpu.concatenate %289, %290, %291, %292, %293, %294, %295, %296, %297 in 1 : vector<8x64xf32>, vector<8x64xf32>, vector<8x64xf32>, vector<8x64xf32>, vector<8x64xf32>, vector<8x64xf32>, vector<8x64xf32>, vector<8x64xf32>, vector<8x64xf32> -> vector<8x576xf32>
    %299 = vector.extract_strided_slice %288 {offsets = [8, 0], sizes = [8, 64], strides = [1, 1]} : vector<128x64xf32> to vector<8x64xf32>
    %300 = vector.extract_strided_slice %288 {offsets = [16, 0], sizes = [8, 64], strides = [1, 1]} : vector<128x64xf32> to vector<8x64xf32>
    %301 = vector.extract_strided_slice %288 {offsets = [24, 0], sizes = [8, 64], strides = [1, 1]} : vector<128x64xf32> to vector<8x64xf32>
    %302 = vector.extract_strided_slice %288 {offsets = [40, 0], sizes = [8, 64], strides = [1, 1]} : vector<128x64xf32> to vector<8x64xf32>
    %303 = vector.extract_strided_slice %288 {offsets = [48, 0], sizes = [8, 64], strides = [1, 1]} : vector<128x64xf32> to vector<8x64xf32>
    %304 = vector.extract_strided_slice %288 {offsets = [56, 0], sizes = [8, 64], strides = [1, 1]} : vector<128x64xf32> to vector<8x64xf32>
    %305 = vector.extract_strided_slice %288 {offsets = [72, 0], sizes = [8, 64], strides = [1, 1]} : vector<128x64xf32> to vector<8x64xf32>
    %306 = vector.extract_strided_slice %288 {offsets = [80, 0], sizes = [8, 64], strides = [1, 1]} : vector<128x64xf32> to vector<8x64xf32>
    %307 = vector.extract_strided_slice %288 {offsets = [88, 0], sizes = [8, 64], strides = [1, 1]} : vector<128x64xf32> to vector<8x64xf32>
    %308 = tpu.concatenate %299, %300, %301, %302, %303, %304, %305, %306, %307 in 1 : vector<8x64xf32>, vector<8x64xf32>, vector<8x64xf32>, vector<8x64xf32>, vector<8x64xf32>, vector<8x64xf32>, vector<8x64xf32>, vector<8x64xf32>, vector<8x64xf32> -> vector<8x576xf32>
    %309 = vector.extract_strided_slice %288 {offsets = [32, 0], sizes = [8, 64], strides = [1, 1]} : vector<128x64xf32> to vector<8x64xf32>
    %310 = vector.extract_strided_slice %288 {offsets = [40, 0], sizes = [8, 64], strides = [1, 1]} : vector<128x64xf32> to vector<8x64xf32>
    %311 = vector.extract_strided_slice %288 {offsets = [48, 0], sizes = [8, 64], strides = [1, 1]} : vector<128x64xf32> to vector<8x64xf32>
    %312 = vector.extract_strided_slice %288 {offsets = [64, 0], sizes = [8, 64], strides = [1, 1]} : vector<128x64xf32> to vector<8x64xf32>
    %313 = vector.extract_strided_slice %288 {offsets = [72, 0], sizes = [8, 64], strides = [1, 1]} : vector<128x64xf32> to vector<8x64xf32>
    %314 = vector.extract_strided_slice %288 {offsets = [80, 0], sizes = [8, 64], strides = [1, 1]} : vector<128x64xf32> to vector<8x64xf32>
    %315 = vector.extract_strided_slice %288 {offsets = [96, 0], sizes = [8, 64], strides = [1, 1]} : vector<128x64xf32> to vector<8x64xf32>
    %316 = vector.extract_strided_slice %288 {offsets = [104, 0], sizes = [8, 64], strides = [1, 1]} : vector<128x64xf32> to vector<8x64xf32>
    %317 = vector.extract_strided_slice %288 {offsets = [112, 0], sizes = [8, 64], strides = [1, 1]} : vector<128x64xf32> to vector<8x64xf32>
    %318 = tpu.concatenate %309, %310, %311, %312, %313, %314, %315, %316, %317 in 1 : vector<8x64xf32>, vector<8x64xf32>, vector<8x64xf32>, vector<8x64xf32>, vector<8x64xf32>, vector<8x64xf32>, vector<8x64xf32>, vector<8x64xf32>, vector<8x64xf32> -> vector<8x576xf32>
    %319 = vector.extract_strided_slice %288 {offsets = [40, 0], sizes = [8, 64], strides = [1, 1]} : vector<128x64xf32> to vector<8x64xf32>
    %320 = vector.extract_strided_slice %288 {offsets = [48, 0], sizes = [8, 64], strides = [1, 1]} : vector<128x64xf32> to vector<8x64xf32>
    %321 = vector.extract_strided_slice %288 {offsets = [56, 0], sizes = [8, 64], strides = [1, 1]} : vector<128x64xf32> to vector<8x64xf32>
    %322 = vector.extract_strided_slice %288 {offsets = [72, 0], sizes = [8, 64], strides = [1, 1]} : vector<128x64xf32> to vector<8x64xf32>
    %323 = vector.extract_strided_slice %288 {offsets = [80, 0], sizes = [8, 64], strides = [1, 1]} : vector<128x64xf32> to vector<8x64xf32>
    %324 = vector.extract_strided_slice %288 {offsets = [88, 0], sizes = [8, 64], strides = [1, 1]} : vector<128x64xf32> to vector<8x64xf32>
    %325 = vector.extract_strided_slice %288 {offsets = [104, 0], sizes = [8, 64], strides = [1, 1]} : vector<128x64xf32> to vector<8x64xf32>
    %326 = vector.extract_strided_slice %288 {offsets = [112, 0], sizes = [8, 64], strides = [1, 1]} : vector<128x64xf32> to vector<8x64xf32>
    %327 = vector.extract_strided_slice %288 {offsets = [120, 0], sizes = [8, 64], strides = [1, 1]} : vector<128x64xf32> to vector<8x64xf32>
    %328 = tpu.concatenate %319, %320, %321, %322, %323, %324, %325, %326, %327 in 1 : vector<8x64xf32>, vector<8x64xf32>, vector<8x64xf32>, vector<8x64xf32>, vector<8x64xf32>, vector<8x64xf32>, vector<8x64xf32>, vector<8x64xf32>, vector<8x64xf32> -> vector<8x576xf32>
    %329 = tpu.concatenate %298, %308, %318, %328 in 0 : vector<8x576xf32>, vector<8x576xf32>, vector<8x576xf32>, vector<8x576xf32> -> vector<32x576xf32>
    %330 = arith.truncf %329 : vector<32x576xf32> to vector<32x576xbf16>
    %c0_12 = arith.constant 0 : index
    %c0_13 = arith.constant 0 : index
    %331 = vector.load %arg6[%c0_12, %c0_13] : memref<576x64xbf16, #tpu.memory_space<vmem>>, vector<576x64xbf16>
    %cst_14 = arith.constant dense<0.000000e+00> : vector<32x64xf32>
    %332 = tpu.matmul %330, %331, %cst_14 {dimension_numbers = #tpu.dot_dimension_numbers<[1], [0], [0], [1], [0, 0, 1, 1], [], []>} : vector<32x576xbf16>, vector<576x64xbf16>, vector<32x64xf32> -> vector<32x64xf32>
    %c0_15 = arith.constant 0 : index
    %c0_16 = arith.constant 0 : index
    %333 = vector.load %arg7[%c0_15, %c0_16] : memref<1x64xf32, #tpu.memory_space<vmem>>, vector<1x64xf32>
    %334 = vector.broadcast %333 : vector<1x64xf32> to vector<32x64xf32>
    %335 = arith.addf %332, %334 : vector<32x64xf32>
    %cst_17 = arith.constant 0.000000e+00 : f32
    %336 = vector.broadcast %cst_17 : f32 to vector<32x64xf32>
    %337 = arith.maximumf %335, %336 : vector<32x64xf32>
    %338 = vector.extract_strided_slice %337 {offsets = [0, 0], sizes = [8, 64], strides = [1, 1]} : vector<32x64xf32> to vector<8x64xf32>
    %339 = vector.extract_strided_slice %337 {offsets = [8, 0], sizes = [8, 64], strides = [1, 1]} : vector<32x64xf32> to vector<8x64xf32>
    %340 = vector.extract_strided_slice %337 {offsets = [16, 0], sizes = [8, 64], strides = [1, 1]} : vector<32x64xf32> to vector<8x64xf32>
    %341 = vector.extract_strided_slice %337 {offsets = [24, 0], sizes = [8, 64], strides = [1, 1]} : vector<32x64xf32> to vector<8x64xf32>
    %342 = tpu.concatenate %338, %339, %340, %341 in 1 : vector<8x64xf32>, vector<8x64xf32>, vector<8x64xf32>, vector<8x64xf32> -> vector<8x256xf32>
    %343 = arith.truncf %342 : vector<8x256xf32> to vector<8x256xbf16>
    %c0_18 = arith.constant 0 : index
    %c0_19 = arith.constant 0 : index
    %344 = vector.load %arg8[%c0_18, %c0_19] : memref<256x512xbf16, #tpu.memory_space<vmem>>, vector<256x512xbf16>
    %cst_20 = arith.constant dense<0.000000e+00> : vector<8x512xf32>
    %345 = tpu.matmul %343, %344, %cst_20 {dimension_numbers = #tpu.dot_dimension_numbers<[1], [0], [0], [1], [0, 0, 1, 1], [], []>} : vector<8x256xbf16>, vector<256x512xbf16>, vector<8x512xf32> -> vector<8x512xf32>
    %c0_21 = arith.constant 0 : index
    %c0_22 = arith.constant 0 : index
    %346 = vector.load %arg9[%c0_21, %c0_22] : memref<1x512xf32, #tpu.memory_space<vmem>>, vector<1x512xf32>
    %347 = vector.broadcast %346 : vector<1x512xf32> to vector<8x512xf32>
    %348 = arith.addf %345, %347 : vector<8x512xf32>
    %cst_23 = arith.constant 0.000000e+00 : f32
    %349 = vector.broadcast %cst_23 : f32 to vector<8x512xf32>
    %350 = arith.maximumf %348, %349 : vector<8x512xf32>
    %351 = arith.truncf %350 : vector<8x512xf32> to vector<8x512xbf16>
    %c0_24 = arith.constant 0 : index
    %c0_25 = arith.constant 0 : index
    %352 = vector.load %arg10[%c0_24, %c0_25] : memref<512x384xbf16, #tpu.memory_space<vmem>>, vector<512x384xbf16>
    %cst_26 = arith.constant dense<0.000000e+00> : vector<8x384xf32>
    %353 = tpu.matmul %351, %352, %cst_26 {dimension_numbers = #tpu.dot_dimension_numbers<[1], [0], [0], [1], [0, 0, 1, 1], [], []>} : vector<8x512xbf16>, vector<512x384xbf16>, vector<8x384xf32> -> vector<8x384xf32>
    %c0_27 = arith.constant 0 : index
    %c0_28 = arith.constant 0 : index
    %354 = vector.load %arg11[%c0_27, %c0_28] : memref<1x384xf32, #tpu.memory_space<vmem>>, vector<1x384xf32>
    %355 = vector.broadcast %354 : vector<1x384xf32> to vector<8x384xf32>
    %356 = arith.addf %353, %355 : vector<8x384xf32>
    %357 = vector.extract_strided_slice %356 {offsets = [0, 0], sizes = [8, 51], strides = [1, 1]} : vector<8x384xf32> to vector<8x51xf32>
    %cst_29 = arith.constant dense<0xFF800000> : vector<8xf32>
    %358 = vector.multi_reduction <maximumf>, %357, %cst_29 [1] : vector<8x51xf32> to vector<8xf32>
    %359 = vector.shape_cast %358 : vector<8xf32> to vector<8x1xf32>
    %360 = vector.broadcast %359 : vector<8x1xf32> to vector<8x51xf32>
    %361 = arith.subf %357, %360 : vector<8x51xf32>
    %362 = math.exp %361 : vector<8x51xf32>
    %cst_30 = arith.constant dense<0.000000e+00> : vector<8xf32>
    %363 = vector.multi_reduction <add>, %362, %cst_30 [1] : vector<8x51xf32> to vector<8xf32>
    %364 = vector.shape_cast %363 : vector<8xf32> to vector<8x1xf32>
    %365 = tpu.reciprocal %364 : vector<8x1xf32> -> vector<8x1xf32>
    %366 = vector.broadcast %365 : vector<8x1xf32> to vector<8x51xf32>
    %367 = arith.mulf %362, %366 : vector<8x51xf32>
    %368 = vector.extract_strided_slice %356 {offsets = [0, 51], sizes = [8, 51], strides = [1, 1]} : vector<8x384xf32> to vector<8x51xf32>
    %cst_31 = arith.constant dense<0xFF800000> : vector<8xf32>
    %369 = vector.multi_reduction <maximumf>, %368, %cst_31 [1] : vector<8x51xf32> to vector<8xf32>
    %370 = vector.shape_cast %369 : vector<8xf32> to vector<8x1xf32>
    %371 = vector.broadcast %370 : vector<8x1xf32> to vector<8x51xf32>
    %372 = arith.subf %368, %371 : vector<8x51xf32>
    %373 = math.exp %372 : vector<8x51xf32>
    %cst_32 = arith.constant dense<0.000000e+00> : vector<8xf32>
    %374 = vector.multi_reduction <add>, %373, %cst_32 [1] : vector<8x51xf32> to vector<8xf32>
    %375 = vector.shape_cast %374 : vector<8xf32> to vector<8x1xf32>
    %376 = tpu.reciprocal %375 : vector<8x1xf32> -> vector<8x1xf32>
    %377 = vector.broadcast %376 : vector<8x1xf32> to vector<8x51xf32>
    %378 = arith.mulf %373, %377 : vector<8x51xf32>
    %379 = vector.extract_strided_slice %356 {offsets = [0, 102], sizes = [8, 51], strides = [1, 1]} : vector<8x384xf32> to vector<8x51xf32>
    %cst_33 = arith.constant dense<0xFF800000> : vector<8xf32>
    %380 = vector.multi_reduction <maximumf>, %379, %cst_33 [1] : vector<8x51xf32> to vector<8xf32>
    %381 = vector.shape_cast %380 : vector<8xf32> to vector<8x1xf32>
    %382 = vector.broadcast %381 : vector<8x1xf32> to vector<8x51xf32>
    %383 = arith.subf %379, %382 : vector<8x51xf32>
    %384 = math.exp %383 : vector<8x51xf32>
    %cst_34 = arith.constant dense<0.000000e+00> : vector<8xf32>
    %385 = vector.multi_reduction <add>, %384, %cst_34 [1] : vector<8x51xf32> to vector<8xf32>
    %386 = vector.shape_cast %385 : vector<8xf32> to vector<8x1xf32>
    %387 = tpu.reciprocal %386 : vector<8x1xf32> -> vector<8x1xf32>
    %388 = vector.broadcast %387 : vector<8x1xf32> to vector<8x51xf32>
    %389 = arith.mulf %384, %388 : vector<8x51xf32>
    %390 = vector.extract_strided_slice %356 {offsets = [0, 153], sizes = [8, 51], strides = [1, 1]} : vector<8x384xf32> to vector<8x51xf32>
    %cst_35 = arith.constant dense<0xFF800000> : vector<8xf32>
    %391 = vector.multi_reduction <maximumf>, %390, %cst_35 [1] : vector<8x51xf32> to vector<8xf32>
    %392 = vector.shape_cast %391 : vector<8xf32> to vector<8x1xf32>
    %393 = vector.broadcast %392 : vector<8x1xf32> to vector<8x51xf32>
    %394 = arith.subf %390, %393 : vector<8x51xf32>
    %395 = math.exp %394 : vector<8x51xf32>
    %cst_36 = arith.constant dense<0.000000e+00> : vector<8xf32>
    %396 = vector.multi_reduction <add>, %395, %cst_36 [1] : vector<8x51xf32> to vector<8xf32>
    %397 = vector.shape_cast %396 : vector<8xf32> to vector<8x1xf32>
    %398 = tpu.reciprocal %397 : vector<8x1xf32> -> vector<8x1xf32>
    %399 = vector.broadcast %398 : vector<8x1xf32> to vector<8x51xf32>
    %400 = arith.mulf %395, %399 : vector<8x51xf32>
    %401 = vector.extract_strided_slice %356 {offsets = [0, 204], sizes = [8, 51], strides = [1, 1]} : vector<8x384xf32> to vector<8x51xf32>
    %cst_37 = arith.constant dense<0xFF800000> : vector<8xf32>
    %402 = vector.multi_reduction <maximumf>, %401, %cst_37 [1] : vector<8x51xf32> to vector<8xf32>
    %403 = vector.shape_cast %402 : vector<8xf32> to vector<8x1xf32>
    %404 = vector.broadcast %403 : vector<8x1xf32> to vector<8x51xf32>
    %405 = arith.subf %401, %404 : vector<8x51xf32>
    %406 = math.exp %405 : vector<8x51xf32>
    %cst_38 = arith.constant dense<0.000000e+00> : vector<8xf32>
    %407 = vector.multi_reduction <add>, %406, %cst_38 [1] : vector<8x51xf32> to vector<8xf32>
    %408 = vector.shape_cast %407 : vector<8xf32> to vector<8x1xf32>
    %409 = tpu.reciprocal %408 : vector<8x1xf32> -> vector<8x1xf32>
    %410 = vector.broadcast %409 : vector<8x1xf32> to vector<8x51xf32>
    %411 = arith.mulf %406, %410 : vector<8x51xf32>
    %412 = vector.extract_strided_slice %356 {offsets = [0, 255], sizes = [8, 51], strides = [1, 1]} : vector<8x384xf32> to vector<8x51xf32>
    %cst_39 = arith.constant dense<0xFF800000> : vector<8xf32>
    %413 = vector.multi_reduction <maximumf>, %412, %cst_39 [1] : vector<8x51xf32> to vector<8xf32>
    %414 = vector.shape_cast %413 : vector<8xf32> to vector<8x1xf32>
    %415 = vector.broadcast %414 : vector<8x1xf32> to vector<8x51xf32>
    %416 = arith.subf %412, %415 : vector<8x51xf32>
    %417 = math.exp %416 : vector<8x51xf32>
    %cst_40 = arith.constant dense<0.000000e+00> : vector<8xf32>
    %418 = vector.multi_reduction <add>, %417, %cst_40 [1] : vector<8x51xf32> to vector<8xf32>
    %419 = vector.shape_cast %418 : vector<8xf32> to vector<8x1xf32>
    %420 = tpu.reciprocal %419 : vector<8x1xf32> -> vector<8x1xf32>
    %421 = vector.broadcast %420 : vector<8x1xf32> to vector<8x51xf32>
    %422 = arith.mulf %417, %421 : vector<8x51xf32>
    %cst_41 = arith.constant 0.000000e+00 : f32
    %423 = vector.broadcast %cst_41 : f32 to vector<8x78xf32>
    %424 = tpu.concatenate %367, %378, %389, %400, %411, %422, %423 in 1 : vector<8x51xf32>, vector<8x51xf32>, vector<8x51xf32>, vector<8x51xf32>, vector<8x51xf32>, vector<8x51xf32>, vector<8x78xf32> -> vector<8x384xf32>
    %c0_42 = arith.constant 0 : index
    %c0_43 = arith.constant 0 : index
    %425 = vector.load %arg12[%c0_42, %c0_43] : memref<8x384xf32, #tpu.memory_space<vmem>>, vector<8x384xf32>
    tpu.vector_store %arg12[%c0_42, %c0_43], %424 {strides = array<i32>} : memref<8x384xf32, #tpu.memory_space<vmem>>, vector<8x384xf32>,
    return
  }
  func.func @transform_0(%arg0: i32) -> (i32, i32) {
    %c0_i32 = arith.constant 0 : i32
    %c0_i32_0 = arith.constant 0 : i32
    return %arg0, %c0_i32 : i32, i32
  }
  func.func @transform_1(%arg0: i32) -> (i32, i32) {
    %c0_i32 = arith.constant 0 : i32
    %c0_i32_0 = arith.constant 0 : i32
    %c0_i32_1 = arith.constant 0 : i32
    return %c0_i32, %c0_i32_0 : i32, i32
  }
  func.func @transform_2(%arg0: i32) -> (i32, i32) {
    %c0_i32 = arith.constant 0 : i32
    %c0_i32_0 = arith.constant 0 : i32
    %c0_i32_1 = arith.constant 0 : i32
    return %c0_i32, %c0_i32_0 : i32, i32
  }
  func.func @transform_3(%arg0: i32) -> (i32, i32) {
    %c0_i32 = arith.constant 0 : i32
    %c0_i32_0 = arith.constant 0 : i32
    %c0_i32_1 = arith.constant 0 : i32
    return %c0_i32, %c0_i32_0 : i32, i32
  }
  func.func @transform_4(%arg0: i32) -> (i32, i32) {
    %c0_i32 = arith.constant 0 : i32
    %c0_i32_0 = arith.constant 0 : i32
    %c0_i32_1 = arith.constant 0 : i32
    return %c0_i32, %c0_i32_0 : i32, i32
  }
  func.func @transform_5(%arg0: i32) -> (i32, i32) {
    %c0_i32 = arith.constant 0 : i32
    %c0_i32_0 = arith.constant 0 : i32
    %c0_i32_1 = arith.constant 0 : i32
    return %c0_i32, %c0_i32_0 : i32, i32
  }
  func.func @transform_6(%arg0: i32) -> (i32, i32) {
    %c0_i32 = arith.constant 0 : i32
    %c0_i32_0 = arith.constant 0 : i32
    %c0_i32_1 = arith.constant 0 : i32
    return %c0_i32, %c0_i32_0 : i32, i32
  }
  func.func @transform_7(%arg0: i32) -> (i32, i32) {
    %c0_i32 = arith.constant 0 : i32
    %c0_i32_0 = arith.constant 0 : i32
    %c0_i32_1 = arith.constant 0 : i32
    return %c0_i32, %c0_i32_0 : i32, i32
  }
  func.func @transform_8(%arg0: i32) -> (i32, i32) {
    %c0_i32 = arith.constant 0 : i32
    %c0_i32_0 = arith.constant 0 : i32
    %c0_i32_1 = arith.constant 0 : i32
    return %c0_i32, %c0_i32_0 : i32, i32
  }
  func.func @transform_9(%arg0: i32) -> (i32, i32) {
    %c0_i32 = arith.constant 0 : i32
    %c0_i32_0 = arith.constant 0 : i32
    %c0_i32_1 = arith.constant 0 : i32
    return %c0_i32, %c0_i32_0 : i32, i32
  }
  func.func @transform_10(%arg0: i32) -> (i32, i32) {
    %c0_i32 = arith.constant 0 : i32
    %c0_i32_0 = arith.constant 0 : i32
    %c0_i32_1 = arith.constant 0 : i32
    return %c0_i32, %c0_i32_0 : i32, i32
  }
  func.func @transform_11(%arg0: i32) -> (i32, i32) {
    %c0_i32 = arith.constant 0 : i32
    %c0_i32_0 = arith.constant 0 : i32
    return %arg0, %c0_i32 : i32, i32
  }
}

</mosaic_0001>

<bundles_post_ra>
// kernel: categorical_dqn_forward.1
= control target key start
LH: loop header
LB: loop body
LE: loop exit
PB: predicated region body
PF: predicated region fallthrough
CT: control target
= control target key end

     0   :  { %s6279_s17 = smov 0   ;;  %s7989_s0 = inlined_call_operand.vmem [shape: bf16[3200,256], index: 0, kind: input, shape index: {}]   ;;  %s7990_s1 = inlined_call_operand.vmem [shape: bf16[256,32], index: 1, kind: input, shape index: {}]   ;;  %s7991_s2 = inlined_call_operand.vmem [shape: f32[1,32], index: 2, kind: input, shape index: {}]   ;;  %s7992_s3 = inlined_call_operand.vmem [shape: bf16[512,64], index: 3, kind: input, shape index: {}]   ;;  %s7993_s4 = inlined_call_operand.vmem [shape: f32[1,64], index: 4, kind: input, shape index: {}]   ;;  %s7994_s5 = inlined_call_operand.vmem [shape: bf16[576,64], index: 5, kind: input, shape index: {}]   ;;  %s7995_s6 = inlined_call_operand.vmem [shape: f32[1,64], index: 6, kind: input, shape index: {}]   ;;  %s7996_s7 = inlined_call_operand.vmem [shape: bf16[256,512], index: 7, kind: input, shape index: {}]   ;;  %s7997_s8 = inlined_call_operand.vmem [shape: f32[1,512], index: 8, kind: input, shape index: {}]   ;;  %s7998_s9 = inlined_call_operand.vmem [shape: bf16[512,384], index: 9, kind: input, shape index: {}]   ;;  %s7999_s10 = inlined_call_operand.vmem [shape: f32[1,384], index: 10, kind: input, shape index: {}]   ;;  %s8000_s11 = inlined_call_operand.vmem [shape: f32[32,384], index: 11, kind: output, shape index: {}]  }
   0x1 LB: > { %s6285_s18 = sadd.s32 4294967295, %s6208_s17   ;;  %p4765_p0 = scmp.ge.s32.totalorder %s6208_s17, 1  ;;  %s6208_s17 = sphi %s6279_s17, %s21_s17  }
   0x2   : > { %p339_p1 = scmp.lt.s32.totalorder %s6208_s17, 5 }
   0x4   : > { %p340_p2 = pnand %p4765_p0, %p339_p1 }
   0x5   : > { %s380_s21 = smul.u32 (!%p340_p2), 100, %s6285_s18  ;;  %s6211_s25 = smov (!%p340_p2), 32  }
   0x6   : > { %343 = sbr.rel (%p340_p2) target bundleno = 2359 (0x937), region = 64  ;;  %s6212_s26 = smov (!%p340_p2), 64  }
   0x7   : > { %p381_p3 = scmp.lt.s32.totalorder (!%p340_p2), %s380_s21, 399  ;;  %s6213_s29 = smov (!%p340_p2), 96  }
   0x8   : > { %s6214_s23 = smov (!%p340_p2), 77   ;;  %s6215_s24 = smov (!%p340_p2), 103  }
   0x9   : > { %s6216_s27 = smov (!%p340_p2), 26   ;;  %s6218_s30 = smov (!%p340_p2), 1  }
   0xa   : > { %p387_p4 = scmp.lt.s32.totalorder (!%p340_p2), %s6285_s18, 3 }
   0xb   : > { %v5715_v0 = vld [vmem:[%s7990_s1 + $0x38] sm:$0xff]   ;;  %v6210_v1 = vmov 0   ;;  %v5716_v2 = vld [vmem:[%s7990_s1 + $0x30] sm:$0xff]   ;;  %v5717_v3 = vld [vmem:[%s7990_s1 + $0x28] sm:$0xff]   ;;  %s8002_s21 = smov (!%p381_p3, %s380_s21), 399  ;;  %vm1709_vm0 = vcmask 261120  }
   0xc   : > { %1128 = vmatprep.subr.bf16.mxu0 %v6210_v1  ;;  %v5718_v4 = vld [vmem:[%s7990_s1 + $0x20] sm:$0xff]   ;;  %s5120_s28 = sshll.u32 %s8002_s21, 3  ;;  %v5719_v5 = vld [vmem:[%s7990_s1 + $0x18] sm:$0xff]   ;;  %v5720_v7 = vld [vmem:[%s7990_s1 + $0x10] sm:$0xff]   ;;  %vm1711_vm1 = vcmask 523264   ;;  %vm1713_vm2 = vcmask 785408  }
   0xd   : > { %1129 = vmatpush1.bf16.msra.mxu0 %v5715_v0  ;;  %s6308_s14 = scalar_lea.vmem %s7989_s0, %s5120_s28  ;;  %v5721_v8 = vld [vmem:[%s7990_s1 + $0x8] sm:$0xff]   ;;  %v5722_v9 = vld [vmem:[%s7990_s1] sm:$0xff]   ;;  %v5723_v10 = vld [vmem:[%s7990_s1 + $0x78] sm:$0xff]   ;;  %vm4590_vm3 = vcmask 834968   ;;  %vm4634_vm4 = vcmask 621768   ;;  %vm4606_vm5 = vcmask 1048368  }
   0xe   : > { %1130 = vmatprep.subr.bf16.mxu0 %v6210_v1  ;;  %v5733_v6 = vld [vmem:[%s6308_s14 + $0x4] ss:$8 sps:$4 sm:$0xff]   ;;  %v5724_v11 = vld [vmem:[%s7990_s1 + $0x70] sm:$0xff]   ;;  %v5727_v14 = vld [vmem:[%s7990_s1 + $0x58] sm:$0xff]   ;;  %vm4608_vm6 = vcmask 203776   ;;  %vm4666_vm7 = vcmask 1048568  }
   0xf   : > { %1160 = vmatprep.mubr.bf16.mxu0 %v5733_v6  ;;  %v5725_v12 = vld [vmem:[%s7990_s1 + $0x68] sm:$0xff]   ;;  %v5726_v13 = vld [vmem:[%s7990_s1 + $0x60] sm:$0xff]   ;;  %v5728_v15 = vld [vmem:[%s7990_s1 + $0x50] sm:$0xff]   ;;  %vm4668_vm8 = vcmask 408576   ;;  %vm4650_vm9 = vcmask 1039968   ;;  %vm4578_vm10 = vcmask 416768  }
  0x10   : > { %v5729_v16 = vld [vmem:[%s7990_s1 + $0x48] sm:$0xff]   ;;  %v5730_v17 = vld [vmem:[%s7990_s1 + $0x40] sm:$0xff]   ;;  %v5734_v19 = vld [vmem:[%s6308_s14 + $0x14] ss:$8 sps:$4 sm:$0xff]   ;;  %s6217_s28 = smov 52   ;;  %vm4625_vm11 = vcmask 211968  }
  0x11   : > { %1131 = vmatpush1.bf16.msra.mxu0 %v5716_v2  ;;  %v5731_v18 = vld [vmem:[%s6308_s14] ss:$8 sps:$4 sm:$0xff]   ;;  %v5736_v20 = vld [vmem:[%s6308_s14 + $0x10] ss:$8 sps:$4 sm:$0xff]   ;;  %v5737_v21 = vld [vmem:[%s6308_s14 + $0x24] ss:$8 sps:$4 sm:$0xff]  }
  0x12   : > { %1132 = vmatprep.subr.bf16.mxu0 %v6210_v1  ;;  %v5739_v22 = vld [vmem:[%s6308_s14 + $0x20] ss:$8 sps:$4 sm:$0xff]   ;;  %v5740_v23 = vld [vmem:[%s6308_s14 + $0x34] ss:$8 sps:$4 sm:$0xff]   ;;  %v5742_v24 = vld [vmem:[%s6308_s14 + $0x30] ss:$8 sps:$4 sm:$0xff]  }
  0x13   : > { %v5743_v25 = vld [vmem:[%s6308_s14 + $0x44] ss:$8 sps:$4 sm:$0xff]   ;;  %v5745_v26 = vld [vmem:[%s6308_s14 + $0x40] ss:$8 sps:$4 sm:$0xff]   ;;  %v5746_v27 = vld [vmem:[%s6308_s14 + $0x54] ss:$8 sps:$4 sm:$0xff]  }
  0x14   : > { %v5748_v28 = vld [vmem:[%s6308_s14 + $0x50] ss:$8 sps:$4 sm:$0xff]   ;;  %v5749_v29 = vld [vmem:[%s6308_s14 + $0x64] ss:$8 sps:$4 sm:$0xff]   ;;  %v5751_v30 = vld [vmem:[%s6308_s14 + $0x60] ss:$8 sps:$4 sm:$0xff]  }
  0x15   : > { %1133 = vmatpush1.bf16.msra.mxu0 %v5717_v3  ;;  %v5752_v31 = vld [vmem:[%s6308_s14 + $0x74] ss:$8 sps:$4 sm:$0xff]   ;;  %v5754_v32 = vld [vmem:[%s6308_s14 + $0x70] ss:$8 sps:$4 sm:$0xff]   ;;  %v5755_v33 = vld [vmem:[%s6308_s14 + $0x84] ss:$8 sps:$4 sm:$0xff]  }
  0x16   : > { %1134 = vmatprep.subr.bf16.mxu0 %v6210_v1  ;;  %v5757_v34 = vld [vmem:[%s6308_s14 + $0x80] ss:$8 sps:$4 sm:$0xff]   ;;  %v5758_v35 = vld [vmem:[%s6308_s14 + $0x94] ss:$8 sps:$4 sm:$0xff]   ;;  %v5760_v36 = vld [vmem:[%s6308_s14 + $0x90] ss:$8 sps:$4 sm:$0xff]  }
  0x17   : > { %v5761_v37 = vld [vmem:[%s6308_s14 + $0xa4] ss:$8 sps:$4 sm:$0xff]   ;;  %v5763_v38 = vld [vmem:[%s6308_s14 + $0xa0] ss:$8 sps:$4 sm:$0xff]   ;;  %v5764_v39 = vld [vmem:[%s6308_s14 + $0xb4] ss:$8 sps:$4 sm:$0xff]  }
  0x18   : > { %v5766_v40 = vld [vmem:[%s6308_s14 + $0xb0] ss:$8 sps:$4 sm:$0xff]   ;;  %v5767_v41 = vld [vmem:[%s6308_s14 + $0xc4] ss:$8 sps:$4 sm:$0xff]   ;;  %v5769_v42 = vld [vmem:[%s6308_s14 + $0xc0] ss:$8 sps:$4 sm:$0xff]  }
  0x19   : > { %1135 = vmatpush1.bf16.msra.mxu0 %v5718_v4  ;;  %v5770_v43 = vld [vmem:[%s6308_s14 + $0xd4] ss:$8 sps:$4 sm:$0xff]   ;;  %v5772_v44 = vld [vmem:[%s6308_s14 + $0xd0] ss:$8 sps:$4 sm:$0xff]   ;;  %v5773_v45 = vld [vmem:[%s6308_s14 + $0xe4] ss:$8 sps:$4 sm:$0xff]  }
  0x1a   : > { %1136 = vmatprep.subr.bf16.mxu0 %v6210_v1  ;;  %v5775_v46 = vld [vmem:[%s6308_s14 + $0xe0] ss:$8 sps:$4 sm:$0xff]   ;;  %v5776_v47 = vld [vmem:[%s6308_s14 + $0xf4] ss:$8 sps:$4 sm:$0xff]   ;;  %v5778_v48 = vld [vmem:[%s6308_s14 + $0xf0] ss:$8 sps:$4 sm:$0xff]  }
  0x1b   : > { %v5779_v49 = vld [vmem:[%s6308_s14 + $0x104] ss:$8 sps:$4 sm:$0xff]   ;;  %v5781_v50 = vld [vmem:[%s6308_s14 + $0x100] ss:$8 sps:$4 sm:$0xff]   ;;  %v5782_v51 = vld [vmem:[%s6308_s14 + $0x114] ss:$8 sps:$4 sm:$0xff]  }
  0x1c   : > { %v5784_v52 = vld [vmem:[%s6308_s14 + $0x110] ss:$8 sps:$4 sm:$0xff]   ;;  %v5785_v53 = vld [vmem:[%s6308_s14 + $0x124] ss:$8 sps:$4 sm:$0xff]   ;;  %v5787_v54 = vld [vmem:[%s6308_s14 + $0x120] ss:$8 sps:$4 sm:$0xff]  }
  0x1d   : > { %1137 = vmatpush1.bf16.msra.mxu0 %v5719_v5  ;;  %v5788_v55 = vld [vmem:[%s6308_s14 + $0x134] ss:$8 sps:$4 sm:$0xff]   ;;  %v5790_v56 = vld [vmem:[%s6308_s14 + $0x130] ss:$8 sps:$4 sm:$0xff]   ;;  %v5791_v57 = vld [vmem:[%s6308_s14 + $0x144] ss:$8 sps:$4 sm:$0xff]  }
  0x1e   : > { %1138 = vmatprep.subr.bf16.mxu0 %v6210_v1  ;;  %v5793_v58 = vld [vmem:[%s6308_s14 + $0x140] ss:$8 sps:$4 sm:$0xff]   ;;  %v5794_v59 = vld [vmem:[%s6308_s14 + $0x154] ss:$8 sps:$4 sm:$0xff]   ;;  %v5796_v60 = vld [vmem:[%s6308_s14 + $0x150] ss:$8 sps:$4 sm:$0xff]  }
  0x1f   : > { %v5797_v61 = vld [vmem:[%s6308_s14 + $0x164] ss:$8 sps:$4 sm:$0xff]   ;;  %v5799_v62 = vld [vmem:[%s6308_s14 + $0x160] ss:$8 sps:$4 sm:$0xff]   ;;  %v5800_v63 = vld [vmem:[%s6308_s14 + $0x174] ss:$8 sps:$4 sm:$0xff]  }
  0x20   : > { %v5802_v0 = vld [vmem:[%s6308_s14 + $0x170] ss:$8 sps:$4 sm:$0xff]   ;;  %v5805_v2 = vld [vmem:[%s6308_s14 + $0x180] ss:$8 sps:$4 sm:$0xff]   ;;  %v5806_v3 = vld [vmem:[%s6308_s14 + $0x194] ss:$8 sps:$4 sm:$0xff]  }
  0x21   : > { %1139 = vmatpush1.bf16.msra.mxu0 %v5720_v7  ;;  %v5808_v7 = vld [vmem:[%s6308_s14 + $0x190] ss:$8 sps:$4 sm:$0xff]   ;;  %vm4685_vm12 = vcmask 7168   ;;  %s8004_s18 = smov (!%p387_p4, %s6285_s18), 3  ;;  %vm4695_vm13 = vcmask 834560   ;;  %vm4698_vm14 = vcmask 621568  }
  0x22   : > { %1140 = vmatprep.subr.bf16.mxu0 %v6210_v1  ;;  %s5367_s12 = smul.u32 24, %s8004_s18  ;;  %vm4700_vm15 = vcmask 1039360  }
  0x25   : > { %1141 = vmatpush1.bf16.msra.mxu0 %v5721_v8  ;;  %v5809_v8 = vld [vmem:[%s6308_s14 + $0x1a4] ss:$8 sps:$4 sm:$0xff]  }
  0x26   : > { %1142 = vmatprep.subr.bf16.mxu0 %v6210_v1 }
  0x29   : > { %1143 = vmatpush1.bf16.msra.mxu0 %v5722_v9 }
  0x2a   : > { %1144 = vmatprep.subr.bf16.mxu0 %v6210_v1 }
  0x2d   : > { %1145 = vmatpush2.bf16.msra.mxu0 %v5723_v10 }
  0x2e   : > { %1146 = vmatprep.subr.bf16.mxu0 %v6210_v1 }
  0x31   : > { %1147 = vmatpush2.bf16.msra.mxu0 %v5724_v11  ;;  %v6401_v11 = vld [vmem:[%s7991_s2] ss:$0 sm:$0xff] }
  0x32   : > { %1148 = vmatprep.subr.bf16.mxu0 %v6210_v1 }
  0x35   : > { %1149 = vmatpush2.bf16.msra.mxu0 %v5725_v12 }
  0x36   : > { %1150 = vmatprep.subr.bf16.mxu0 %v6210_v1 }
  0x39   : > { %1151 = vmatpush2.bf16.msra.mxu0 %v5726_v13 }
  0x3a   : > { %1152 = vmatprep.subr.bf16.mxu0 %v6210_v1 }
  0x3d   : > { %1153 = vmatpush2.bf16.msra.mxu0 %v5727_v14 }
  0x3e   : > { %1154 = vmatprep.subr.bf16.mxu0 %v6210_v1 }
  0x41   : > { %1155 = vmatpush2.bf16.msra.mxu0 %v5728_v15  ;;  %v5811_v15 = vld [vmem:[%s6308_s14 + $0x1a0] ss:$8 sps:$4 sm:$0xff]  }
  0x42   : > { %1156 = vmatprep.subr.bf16.mxu0 %v6210_v1 }
  0x45   : > { %1157 = vmatpush2.bf16.msra.mxu0 %v5729_v16 }
  0x46   : > { %1158 = vmatprep.subr.bf16.mxu0 %v6210_v1  ;;  %v5803_v1 = vld [vmem:[%s6308_s14 + $0x184] ss:$8 sps:$4 sm:$0xff]  }
  0x49   : > { %1159 = vmatpush2.bf16.msra.mxu0 %v5730_v17  ;;  %v5812_v17 = vld [vmem:[%s6308_s14 + $0x1b4] ss:$8 sps:$4 sm:$0xff]  }
  0x4c   : > { %1161 = vmatmul.mubr.bf16.vlgmr.msra.gmra.mxu0 %v5731_v18 }
  0x4d   : > { %1168 = vmatprep.mubr.bf16.mxu0 %v5734_v19 }
  0x54   : > { %1169 = vmatmul.mubr.bf16.gmra.mxu0 %v5736_v20 }
  0x55   : > { %1176 = vmatprep.mubr.bf16.mxu0 %v5737_v21 }
  0x5c   : > { %1177 = vmatmul.mubr.bf16.gmra.mxu0 %v5739_v22 }
  0x5d   : > { %1184 = vmatprep.mubr.bf16.mxu0 %v5740_v23 }
  0x64   : > { %1185 = vmatmul.mubr.bf16.gmra.mxu0 %v5742_v24 }
  0x65   : > { %1192 = vmatprep.mubr.bf16.mxu0 %v5743_v25 }
  0x6c   : > { %1193 = vmatmul.mubr.bf16.gmra.mxu0 %v5745_v26 }
  0x6d   : > { %1200 = vmatprep.mubr.bf16.mxu0 %v5746_v27 }
  0x74   : > { %1201 = vmatmul.mubr.bf16.gmra.mxu0 %v5748_v28 }
  0x75   : > { %1208 = vmatprep.mubr.bf16.mxu0 %v5749_v29  ;;  %v5814_v29 = vld [vmem:[%s6308_s14 + $0x1b0] ss:$8 sps:$4 sm:$0xff]  }
  0x7c   : > { %1209 = vmatmul.mubr.bf16.gmra.mxu0 %v5751_v30 }
  0x7d   : > { %1216 = vmatprep.mubr.bf16.mxu0 %v5752_v31 }
  0x84   : > { %1217 = vmatmul.mubr.bf16.gmra.mxu0 %v5754_v32  ;;  %v5817_v32 = vld [vmem:[%s6308_s14 + $0x1c4] ss:$8 sps:$4 sm:$0xff]  }
  0x85   : > { %1224 = vmatprep.mubr.bf16.mxu0 %v5755_v33 }
  0x8c   : > { %1225 = vmatmul.mubr.bf16.gmra.mxu0 %v5757_v34 }
  0x8d   : > { %1232 = vmatprep.mubr.bf16.mxu0 %v5758_v35 }
  0x94   : > { %1233 = vmatmul.mubr.bf16.gmra.mxu0 %v5760_v36 }
  0x95   : > { %1240 = vmatprep.mubr.bf16.mxu0 %v5761_v37 }
  0x9c   : > { %1241 = vmatmul.mubr.bf16.gmra.mxu0 %v5763_v38  ;;  %v5863_v38 = vld [vmem:[%s7992_s3 + $0x78] sm:$0xff]  }
  0x9d   : > { %1248 = vmatprep.mubr.bf16.mxu0 %v5764_v39  ;;  %v5864_v39 = vld [vmem:[%s7992_s3 + $0x38] sm:$0xff]   ;;  %5121 = vmatprep.subr.bf16.mxu1 %v5863_v38 }
  0x9e   : > { %5122 = vmatpush3.bf16.msra.mxu1 %v5864_v39 }
  0xa4   : > { %1249 = vmatmul.mubr.bf16.gmra.mxu0 %v5766_v40 }
  0xa5   : > { %1256 = vmatprep.mubr.bf16.mxu0 %v5767_v41  ;;  %v5815_v41 = vld [vmem:[%s6308_s14 + $0x1c0] ss:$8 sps:$4 sm:$0xff]  }
  0xac   : > { %1257 = vmatmul.mubr.bf16.gmra.mxu0 %v5769_v42 }
  0xad   : > { %1264 = vmatprep.mubr.bf16.mxu0 %v5770_v43  ;;  %v5820_v43 = vld [vmem:[%s6308_s14 + $0x1d4] ss:$8 sps:$4 sm:$0xff]  }
  0xb4   : > { %1265 = vmatmul.mubr.bf16.gmra.mxu0 %v5772_v44 }
  0xb5   : > { %1272 = vmatprep.mubr.bf16.mxu0 %v5773_v45  ;;  %v5868_v45 = vld [vmem:[%s7992_s3 + $0x70] sm:$0xff]  }
  0xb6   : > { %5123 = vmatprep.subr.bf16.mxu1 %v5868_v45 }
  0xbc   : > { %1273 = vmatmul.mubr.bf16.gmra.mxu0 %v5775_v46 }
  0xbd   : > { %1280 = vmatprep.mubr.bf16.mxu0 %v5776_v47 }
  0xc4   : > { %1281 = vmatmul.mubr.bf16.gmra.mxu0 %v5778_v48  ;;  %v5869_v48 = vld [vmem:[%s7992_s3 + $0x30] sm:$0xff]  }
  0xc5   : > { %1288 = vmatprep.mubr.bf16.mxu0 %v5779_v49  ;;  %5124 = vmatpush3.bf16.msra.mxu1 %v5869_v48 }
  0xcc   : > { %1289 = vmatmul.mubr.bf16.gmra.mxu0 %v5781_v50 }
  0xcd   : > { %1296 = vmatprep.mubr.bf16.mxu0 %v5782_v51 }
  0xd4   : > { %1297 = vmatmul.mubr.bf16.gmra.mxu0 %v5784_v52 }
  0xd5   : > { %1304 = vmatprep.mubr.bf16.mxu0 %v5785_v53  ;;  %v5870_v53 = vld [vmem:[%s7992_s3 + $0x68] sm:$0xff]  }
  0xd6   : > { %5125 = vmatprep.subr.bf16.mxu1 %v5870_v53 }
  0xdc   : > { %1305 = vmatmul.mubr.bf16.gmra.mxu0 %v5787_v54 }
  0xdd   : > { %1312 = vmatprep.mubr.bf16.mxu0 %v5788_v55 }
  0xe4   : > { %1313 = vmatmul.mubr.bf16.gmra.mxu0 %v5790_v56  ;;  %v5871_v56 = vld [vmem:[%s7992_s3 + $0x28] sm:$0xff]  }
  0xe5   : > { %1320 = vmatprep.mubr.bf16.mxu0 %v5791_v57  ;;  %5126 = vmatpush3.bf16.msra.mxu1 %v5871_v56 }
  0xec   : > { %1321 = vmatmul.mubr.bf16.gmra.mxu0 %v5793_v58  ;;  %v5818_v58 = vld [vmem:[%s6308_s14 + $0x1d0] ss:$8 sps:$4 sm:$0xff]  }
  0xed   : > { %1328 = vmatprep.mubr.bf16.mxu0 %v5794_v59 }
  0xf4   : > { %1329 = vmatmul.mubr.bf16.gmra.mxu0 %v5796_v60 }
  0xf5   : > { %1336 = vmatprep.mubr.bf16.mxu0 %v5797_v61  ;;  %v5823_v61 = vld [vmem:[%s6308_s14 + $0x1e4] ss:$8 sps:$4 sm:$0xff]  }
  0xfc   : > { %1337 = vmatmul.mubr.bf16.gmra.mxu0 %v5799_v62 }
  0xfd   : > { %1344 = vmatprep.mubr.bf16.mxu0 %v5800_v63  ;;  %v5875_v63 = vld [vmem:[%s7992_s3 + $0x60] sm:$0xff]  }
  0xfe   : > { %5127 = vmatprep.subr.bf16.mxu1 %v5875_v63 }
 0x104   : > { %1345 = vmatmul.mubr.bf16.gmra.mxu0 %v5802_v0 }
 0x105   : > { %1352 = vmatprep.mubr.bf16.mxu0 %v5803_v1  ;;  %v5876_v1 = vld [vmem:[%s7992_s3 + $0x20] sm:$0xff]  }
 0x106   : > { %5128 = vmatpush3.bf16.msra.mxu1 %v5876_v1 }
 0x10c   : > { %v6394_v4 = vpop.f32.mrf.mxu0  ;;  %1353 = vmatmul.mubr.bf16.gmra.mxu0 %v5805_v2 }
 0x10d   : > { %1360 = vmatprep.mubr.bf16.mxu0 %v5806_v3 }
 0x10e   : > { %v1164_v5 = vpop.f32.mrf.mxu0 }
 0x110   : > { %v1165_v6 = vpop.f32.mrf.mxu0 }
 0x111   : > { %v1166_v13 = vadd.f32 %v6401_v11, %v1165_v6  ;;  %v5877_v6 = vld [vmem:[%s7992_s3 + $0x58] sm:$0xff]  }
 0x112   : > { %v1167_v9 = vpop.f32.mrf.mxu0  ;;  %5129 = vmatprep.subr.bf16.mxu1 %v5877_v6 }
 0x113   : > { %v1562_v19 = vmax.f32 %v1166_v13, 0.0  ;;  %v5821_v9 = vld [vmem:[%s6308_s14 + $0x1e0] ss:$8 sps:$4 sm:$0xff]   ;;  %v5882_v13 = vld [vmem:[%s7992_s3 + $0x50] sm:$0xff]  }
 0x114   : > { %v1170_v10 = vpop.f32.mrf.mxu0  ;;  %1361 = vmatmul.mubr.bf16.gmra.mxu0 %v5808_v7  ;;  %v5878_v7 = vld [vmem:[%s7992_s3 + $0x18] sm:$0xff]  }
 0x115   : > { %1368 = vmatprep.mubr.bf16.mxu0 %v5809_v8  ;;  %v6408_v20 = vadd.f32 %v6401_v11, %v1170_v10  ;;  %v5826_v10 = vld [vmem:[%s6308_s14 + $0x1f4] ss:$8 sps:$4 sm:$0xff]   ;;  %5130 = vmatpush3.bf16.msra.mxu1 %v5878_v7 }
 0x116   : > { %v1172_v12 = vpop.f32.mrf.mxu0  ;;  %5131 = vmatprep.subr.bf16.mxu1 %v5882_v13  ;;  %v5838_v7 = vld [vmem:[%s6308_s14 + $0x234] ss:$8 sps:$4 sm:$0xff]  }
 0x117   : > { %v1563_v26 = vmax.f32 %v6408_v20, 0.0 }
 0x118   : > { %v1173_v14 = vpop.f32.mrf.mxu0 }
 0x119   : > { %v1174_v16 = vadd.f32 %v6401_v11, %v1173_v14  ;;  %v5883_v14 = vld [vmem:[%s7992_s3 + $0x10] sm:$0xff]  }
 0x11a   : > { %v1175_v18 = vpop.f32.mrf.mxu0  ;;  %5132 = vmatpush3.bf16.msra.mxu1 %v5883_v14 }
 0x11b   : > { %v1564_v21 = vmax.f32 %v1174_v16, 0.0 }
 0x11c   : > { %v1178_v22 = vpop.f32.mrf.mxu0  ;;  %1369 = vmatmul.mubr.bf16.gmra.mxu0 %v5811_v15 }
 0x11d   : > { %v6411_v23 = vadd.f32 %v6401_v11, %v1178_v22  ;;  %v5385_v24 = vpack.i.bf16 %v1564_v21, %v1562_v19  ;;  %1376 = vmatprep.mubr.bf16.mxu0 %v5812_v17  ;;  %v5884_v17 = vld [vmem:[%s7992_s3 + $0x48] sm:$0xff]   ;;  %v5824_v22 = vld [vmem:[%s6308_s14 + $0x1f0] ss:$8 sps:$4 sm:$0xff]  }
 0x11e   : > { %v1180_v25 = vpop.f32.mrf.mxu0  ;;  %v5885_v19 = vld [vmem:[%s7992_s3 + $0x8] sm:$0xff]   ;;  %5133 = vmatprep.subr.bf16.mxu1 %v5884_v17 }
 0x11f   : > { %v1565_v27 = vmax.f32 %v6411_v23, 0.0  ;;  %5386 = vrot.lane.b32.xlu0 %v5385_v24, %s6211_s25  ;;  %v5829_v25 = vld [vmem:[%s6308_s14 + $0x204] ss:$8 sps:$4 sm:$0xff]   ;;  %5134 = vmatpush3.bf16.msra.mxu1 %v5885_v19 }
 0x120   : > { %v1181_v28 = vpop.f32.mrf.mxu0 }
 0x121   : > { %v1182_v30 = vadd.f32 %v6401_v11, %v1181_v28  ;;  %v5390_v31 = vpack.i.bf16 %v1565_v27, %v1563_v26 }
 0x122   : > { %v1183_v33 = vpop.f32.mrf.mxu0 }
 0x123   : > { %v1566_v34 = vmax.f32 %v1182_v30, 0.0  ;;  %5391 = vrot.lane.b32.xlu1 %v5390_v31, %s6212_s26  ;;  %v5890_v33 = vld [vmem:[%s7992_s3] sm:$0xff]  }
 0x124   : > { %v1186_v35 = vpop.f32.mrf.mxu0  ;;  %1377 = vmatmul.mubr.bf16.gmra.mxu0 %v5814_v29  ;;  %v5889_v29 = vld [vmem:[%s7992_s3 + $0x40] sm:$0xff]  }
 0x125   : > { %v5395_v36 = vpack.i.bf16 %v1566_v34, %v1564_v21  ;;  %1384 = vmatprep.mubr.bf16.mxu0 %v5817_v32  ;;  %v6438_v46 = vadd.f32 %v6401_v11, %v1186_v35  ;;  %5135 = vmatprep.subr.bf16.mxu1 %v5889_v29 }
 0x126   : > { %v1188_v37 = vpop.f32.mrf.mxu0  ;;  %5136 = vmatpush3.bf16.msra.mxu1 %v5890_v33 }
 0x127   : > { %5396 = vrot.lane.b32.xlu1 %v5395_v36, %s6213_s29  ;;  %v1567_v54 = vmax.f32 %v6438_v46, 0.0 }
 0x128   : > { %v1189_v40 = vpop.f32.mrf.mxu0 }
 0x129   : > { %v1190_v42 = vadd.f32 %v6401_v11, %v1189_v40 }
 0x12a   : > { %v1191_v44 = vpop.f32.mrf.mxu0 }
 0x12b   : > { %v1568_v47 = vmax.f32 %v1190_v42, 0.0  ;;  %v5832_v44 = vld [vmem:[%s6308_s14 + $0x214] ss:$8 sps:$4 sm:$0xff]  }
 0x12c   : > { %v1194_v49 = vpop.f32.mrf.mxu0  ;;  %1385 = vmatmul.mubr.bf16.gmra.mxu0 %v5815_v41  ;;  %v5827_v41 = vld [vmem:[%s6308_s14 + $0x200] ss:$8 sps:$4 sm:$0xff]  }
 0x12d   : > { %v5400_v50 = vpack.i.bf16 %v1568_v47, %v1566_v34  ;;  %v1195_v51 = vadd.f32 %v6401_v11, %v1194_v49  ;;  %1392 = vmatprep.mubr.bf16.mxu0 %v5820_v43 }
 0x12e   : > { %v1196_v52 = vpop.f32.mrf.mxu0 }
 0x12f   : > { %v1569_v55 = vmax.f32 %v1195_v51, 0.0  ;;  %5401 = vrot.lane.b32.xlu1 %v5400_v50, %s6211_s25  ;;  %v5830_v52 = vld [vmem:[%s6308_s14 + $0x210] ss:$8 sps:$4 sm:$0xff]  }
 0x130   : > { %v1197_v57 = vpop.f32.mrf.mxu0 }
 0x131   : > { %v5405_v59 = vpack.i.bf16 %v1569_v55, %v1567_v54  ;;  %v1198_v60 = vadd.f32 %v6401_v11, %v1197_v57  ;;  %v5835_v55 = vld [vmem:[%s6308_s14 + $0x224] ss:$8 sps:$4 sm:$0xff]  }
 0x132   : > { %v1199_v62 = vpop.f32.mrf.mxu0 }
 0x133   : > { %v1570_v0 = vmax.f32 %v1198_v60, 0.0  ;;  %5406 = vrot.lane.b32.xlu1 %v5405_v59, %s6212_s26 }
 0x134   : > { %v6464_v2 = vpop.f32.mrf.mxu0  ;;  %1393 = vmatmul.mubr.bf16.gmra.mxu0 %v5818_v58 }
 0x135   : > { %v5410_v3 = vpack.i.bf16 %v1570_v0, %v1568_v47  ;;  %1400 = vmatprep.mubr.bf16.mxu0 %v5823_v61 }
 0x136   : > { %v1204_v5 = vpop.f32.mrf.mxu0 }
 0x137   : > { %5411 = vrot.lane.b32.xlu1 %v5410_v3, %s6213_s29  ;;  %v5833_v3 = vld [vmem:[%s6308_s14 + $0x220] ss:$8 sps:$4 sm:$0xff]  }
 0x138   : > { %v1205_v8 = vpop.f32.mrf.mxu0 }
 0x139   : > { %v1206_v18 = vadd.f32 %v6401_v11, %v1205_v8 }
 0x13a   : > { %v1207_v12 = vpop.f32.mrf.mxu0 }
 0x13b   : > { %v1572_v30 = vmax.f32 %v1206_v18, 0.0 }
 0x13c   : > { %v1210_v15 = vpop.f32.mrf.mxu0  ;;  %1401 = vmatmul.mubr.bf16.gmra.mxu0 %v5821_v9 }
 0x13d   : > { %1408 = vmatprep.mubr.bf16.mxu0 %v5826_v10  ;;  %v6495_v31 = vadd.f32 %v6401_v11, %v1210_v15  ;;  %v5836_v15 = vld [vmem:[%s6308_s14 + $0x230] ss:$8 sps:$4 sm:$0xff]  }
 0x13e   : > { %v1212_v16 = vpop.f32.mrf.mxu0 }
 0x13f   : > { %v1573_v38 = vmax.f32 %v6495_v31, 0.0  ;;  %v5841_v16 = vld [vmem:[%s6308_s14 + $0x244] ss:$8 sps:$4 sm:$0xff]  }
 0x140   : > { %v1213_v21 = vpop.f32.mrf.mxu0 }
 0x141   : > { %v1214_v24 = vadd.f32 %v6401_v11, %v1213_v21 }
 0x142   : > { %v1215_v28 = vpop.f32.mrf.mxu0 }
 0x143   : > { %v1574_v32 = vmax.f32 %v1214_v24, 0.0  ;;  %v5839_v24 = vld [vmem:[%s6308_s14 + $0x240] ss:$8 sps:$4 sm:$0xff]   ;;  %v5844_v28 = vld [vmem:[%s6308_s14 + $0x254] ss:$8 sps:$4 sm:$0xff]  }
 0x144   : > { %v1218_v34 = vpop.f32.mrf.mxu0  ;;  %1409 = vmatmul.mubr.bf16.gmra.mxu0 %v5824_v22 }
 0x145   : > { %v5415_v35 = vpack.i.bf16 %v1574_v32, %v1572_v30  ;;  %v6501_v36 = vadd.f32 %v6401_v11, %v1218_v34  ;;  %1416 = vmatprep.mubr.bf16.mxu0 %v5829_v25 }
 0x146   : > { %v1220_v37 = vpop.f32.mrf.mxu0 }
 0x147   : > { %v1575_v39 = vmax.f32 %v6501_v36, 0.0  ;;  %5416 = vrot.lane.b32.xlu0 %v5415_v35, %s6211_s25 }
 0x148   : > { %v1221_v40 = vpop.f32.mrf.mxu0 }
 0x149   : > { %v5420_v42 = vpack.i.bf16 %v1575_v39, %v1573_v38  ;;  %v1222_v43 = vadd.f32 %v6401_v11, %v1221_v40 }
 0x14a   : > { %v1223_v45 = vpop.f32.mrf.mxu0 }
 0x14b   : > { %v1576_v47 = vmax.f32 %v1222_v43, 0.0  ;;  %5421 = vrot.lane.b32.xlu1 %v5420_v42, %s6212_s26 }
 0x14c   : > { %v1226_v48 = vpop.f32.mrf.mxu0  ;;  %1417 = vmatmul.mubr.bf16.gmra.mxu0 %v5827_v41 }
 0x14d   : > { %v5425_v49 = vpack.i.bf16 %v1576_v47, %v1574_v32  ;;  %1424 = vmatprep.mubr.bf16.mxu0 %v5832_v44  ;;  %v6519_v57 = vadd.f32 %v6401_v11, %v1226_v48  ;;  %v5842_v44 = vld [vmem:[%s6308_s14 + $0x250] ss:$8 sps:$4 sm:$0xff]   ;;  %v5847_v48 = vld [vmem:[%s6308_s14 + $0x264] ss:$8 sps:$4 sm:$0xff]  }
 0x14e   : > { %v1228_v50 = vpop.f32.mrf.mxu0 }
 0x14f   : > { %5426 = vrot.lane.b32.xlu0 %v5425_v49, %s6213_s29  ;;  %v1577_v63 = vmax.f32 %v6519_v57, 0.0 }
 0x150   : > { %v1229_v51 = vpop.f32.mrf.mxu0 }
 0x151   : > { %v1230_v53 = vadd.f32 %v6401_v11, %v1229_v51 }
 0x152   : > { %v1231_v56 = vpop.f32.mrf.mxu0 }
 0x153   : > { %v1578_v58 = vmax.f32 %v1230_v53, 0.0  ;;  %v5845_v56 = vld [vmem:[%s6308_s14 + $0x260] ss:$8 sps:$4 sm:$0xff]  }
 0x154   : > { %v1234_v59 = vpop.f32.mrf.mxu0  ;;  %1425 = vmatmul.mubr.bf16.gmra.mxu0 %v5830_v52 }
 0x155   : > { %v5430_v60 = vpack.i.bf16 %v1578_v58, %v1576_v47  ;;  %v1235_v61 = vadd.f32 %v6401_v11, %v1234_v59  ;;  %1432 = vmatprep.mubr.bf16.mxu0 %v5835_v55  ;;  %v5850_v59 = vld [vmem:[%s6308_s14 + $0x274] ss:$8 sps:$4 sm:$0xff]  }
 0x156   : > { %v1236_v62 = vpop.f32.mrf.mxu0 }
 0x157   : > { %v1579_v0 = vmax.f32 %v1235_v61, 0.0  ;;  %5431 = vrot.lane.b32.xlu0 %v5430_v60, %s6211_s25 }
 0x158   : > { %v1237_v1 = vpop.f32.mrf.mxu0 }
 0x159   : > { %v5435_v5 = vpack.i.bf16 %v1579_v0, %v1577_v63  ;;  %v1238_v6 = vadd.f32 %v6401_v11, %v1237_v1 }
 0x15a   : > { %v1239_v8 = vpop.f32.mrf.mxu0 }
 0x15b   : > { %v1580_v9 = vmax.f32 %v1238_v6, 0.0  ;;  %5436 = vrot.lane.b32.xlu0 %v5435_v5, %s6212_s26 }
 0x15c   : > { %v6530_v10 = vpop.f32.mrf.mxu0  ;;  %1433 = vmatmul.mubr.bf16.gmra.mxu0 %v5833_v3 }
 0x15d   : > { %v5440_v12 = vpack.i.bf16 %v1580_v9, %v1578_v58  ;;  %1440 = vmatprep.mubr.bf16.mxu0 %v5838_v7  ;;  %v5848_v9 = vld [vmem:[%s6308_s14 + $0x270] ss:$8 sps:$4 sm:$0xff]  }
 0x15e   : > { %v1244_v13 = vpop.f32.mrf.mxu0 }
 0x15f   : > { %5441 = vrot.lane.b32.xlu0 %v5440_v12, %s6213_s29 }
 0x160   : > { %v1245_v14 = vpop.f32.mrf.mxu0 }
 0x161   : > { %v1246_v21 = vadd.f32 %v6401_v11, %v1245_v14  ;;  %v5853_v14 = vld [vmem:[%s6308_s14 + $0x284] ss:$8 sps:$4 sm:$0xff]  }
 0x162   : > { %v1247_v17 = vpop.f32.mrf.mxu0 }
 0x163   : > { %v1582_v30 = vmax.f32 %v1246_v21, 0.0 }
 0x164   : > { %v1250_v18 = vpop.f32.mrf.mxu0  ;;  %1441 = vmatmul.mubr.bf16.gmra.mxu0 %v5836_v15 }
 0x165   : > { %1448 = vmatprep.mubr.bf16.mxu0 %v5841_v16  ;;  %v6540_v32 = vadd.f32 %v6401_v11, %v1250_v18 }
 0x166   : > { %v1252_v19 = vpop.f32.mrf.mxu0 }
 0x167   : > { %v1583_v41 = vmax.f32 %v6540_v32, 0.0 }
 0x168   : > { %v1253_v22 = vpop.f32.mrf.mxu0 }
 0x169   : > { %v1254_v25 = vadd.f32 %v6401_v11, %v1253_v22  ;;  %v5851_v22 = vld [vmem:[%s6308_s14 + $0x280] ss:$8 sps:$4 sm:$0xff]  }
 0x16a   : > { %v1255_v29 = vpop.f32.mrf.mxu0 }
 0x16b   : > { %v1584_v33 = vmax.f32 %v1254_v25, 0.0 }
 0x16c   : > { %v1258_v34 = vpop.f32.mrf.mxu0  ;;  %1449 = vmatmul.mubr.bf16.gmra.mxu0 %v5839_v24  ;;  %v5856_v24 = vld [vmem:[%s6308_s14 + $0x294] ss:$8 sps:$4 sm:$0xff]  }
 0x16d   : > { %v5445_v35 = vpack.i.bf16 %v1584_v33, %v1582_v30  ;;  %v6543_v37 = vadd.f32 %v6401_v11, %v1258_v34  ;;  %1456 = vmatprep.mubr.bf16.mxu0 %v5844_v28  ;;  %v5854_v34 = vld [vmem:[%s6308_s14 + $0x290] ss:$8 sps:$4 sm:$0xff]  }
 0x16e   : > { %v1260_v40 = vpop.f32.mrf.mxu0 }
 0x16f   : > { %v1585_v42 = vmax.f32 %v6543_v37, 0.0  ;;  %5446 = vrot.lane.b32.xlu1 %v5445_v35, %s6211_s25  ;;  %v5859_v40 = vld [vmem:[%s6308_s14 + $0x2a4] ss:$8 sps:$4 sm:$0xff]  }
 0x170   : > { %v1261_v43 = vpop.f32.mrf.mxu0 }
 0x171   : > { %v5450_v45 = vpack.i.bf16 %v1585_v42, %v1583_v41  ;;  %v1262_v47 = vadd.f32 %v6401_v11, %v1261_v43 }
 0x172   : > { %v1263_v49 = vpop.f32.mrf.mxu0 }
 0x173   : > { %v1586_v50 = vmax.f32 %v1262_v47, 0.0  ;;  %5451 = vrot.lane.b32.xlu1 %v5450_v45, %s6212_s26 }
 0x174   : > { %v1266_v51 = vpop.f32.mrf.mxu0  ;;  %1457 = vmatmul.mubr.bf16.gmra.mxu0 %v5842_v44 }
 0x175   : > { %v5455_v52 = vpack.i.bf16 %v1586_v50, %v1584_v33  ;;  %1464 = vmatprep.mubr.bf16.mxu0 %v5847_v48  ;;  %v6561_v61 = vadd.f32 %v6401_v11, %v1266_v51 }
 0x176   : > { %v1268_v53 = vpop.f32.mrf.mxu0 }
 0x177   : > { %5456 = vrot.lane.b32.xlu1 %v5455_v52, %s6213_s29  ;;  %v1587_v6 = vmax.f32 %v6561_v61, 0.0  ;;  %v5899_v61 = vld [vmem:[%s7992_s3 + $0xf0] sm:$0xff]  }
 0x178   : > { %v1269_v55 = vpop.f32.mrf.mxu0 }
 0x179   : > { %v1270_v58 = vadd.f32 %v6401_v11, %v1269_v55 }
 0x17a   : > { %v1271_v60 = vpop.f32.mrf.mxu0 }
 0x17b   : > { %v1588_v62 = vmax.f32 %v1270_v58, 0.0  ;;  %v5862_v60 = vld [vmem:[%s6308_s14 + $0x2b4] ss:$8 sps:$4 sm:$0xff]  }
 0x17c   : > { %v1274_v0 = vpop.f32.mrf.mxu0  ;;  %1465 = vmatmul.mubr.bf16.gmra.mxu0 %v5845_v56  ;;  %v5857_v56 = vld [vmem:[%s6308_s14 + $0x2a0] ss:$8 sps:$4 sm:$0xff]  }
 0x17d   : > { %v5460_v1 = vpack.i.bf16 %v1588_v62, %v1586_v50  ;;  %v1275_v3 = vadd.f32 %v6401_v11, %v1274_v0  ;;  %1472 = vmatprep.mubr.bf16.mxu0 %v5850_v59 }
 0x17e   : > { %v1276_v5 = vpop.f32.mrf.mxu0 }
 0x17f   : > { %v1589_v7 = vmax.f32 %v1275_v3, 0.0  ;;  %5461 = vrot.lane.b32.xlu1 %v5460_v1, %s6211_s25 }
 0x180   : > { %v1277_v8 = vpop.f32.mrf.mxu0 }
 0x181   : > { %v5465_v12 = vpack.i.bf16 %v1589_v7, %v1587_v6  ;;  %v1278_v13 = vadd.f32 %v6401_v11, %v1277_v8  ;;  %v5860_v8 = vld [vmem:[%s6308_s14 + $0x2b0] ss:$8 sps:$4 sm:$0xff]  }
 0x182   : > { %v1279_v15 = vpop.f32.mrf.mxu0 }
 0x183   : > { %v1590_v16 = vmax.f32 %v1278_v13, 0.0  ;;  %5466 = vrot.lane.b32.xlu1 %v5465_v12, %s6212_s26  ;;  %v5867_v12 = vld [vmem:[%s6308_s14 + $0x2c4] ss:$8 sps:$4 sm:$0xff]  }
 0x184   : > { %v6572_v17 = vpop.f32.mrf.mxu0  ;;  %1473 = vmatmul.mubr.bf16.gmra.mxu0 %v5848_v9 }
 0x185   : > { %v5470_v18 = vpack.i.bf16 %v1590_v16, %v1588_v62  ;;  %1480 = vmatprep.mubr.bf16.mxu0 %v5853_v14 }
 0x186   : > { %v1284_v19 = vpop.f32.mrf.mxu0 }
 0x187   : > { %5471 = vrot.lane.b32.xlu1 %v5470_v18, %s6213_s29 }
 0x188   : > { %v1285_v21 = vpop.f32.mrf.mxu0 }
 0x189   : > { %v1286_v30 = vadd.f32 %v6401_v11, %v1285_v21 }
 0x18a   : > { %v1287_v25 = vpop.f32.mrf.mxu0 }
 0x18b   : > { %v1592_v44 = vmax.f32 %v1286_v30, 0.0 }
 0x18c   : > { %v1290_v28 = vpop.f32.mrf.mxu0  ;;  %1481 = vmatmul.mubr.bf16.gmra.mxu0 %v5851_v22 }
 0x18d   : > { %1488 = vmatprep.mubr.bf16.mxu0 %v5856_v24  ;;  %v6582_v45 = vadd.f32 %v6401_v11, %v1290_v28 }
 0x18e   : > { %v1292_v29 = vpop.f32.mrf.mxu0 }
 0x18f   : > { %v1593_v52 = vmax.f32 %v6582_v45, 0.0  ;;  %v5865_v29 = vld [vmem:[%s6308_s14 + $0x2c0] ss:$8 sps:$4 sm:$0xff]  }
 0x190   : > { %v1293_v33 = vpop.f32.mrf.mxu0 }
 0x191   : > { %v1294_v35 = vadd.f32 %v6401_v11, %v1293_v33 }
 0x192   : > { %v1295_v43 = vpop.f32.mrf.mxu0 }
 0x193   : > { %v1594_v47 = vmax.f32 %v1294_v35, 0.0  ;;  %v5874_v35 = vld [vmem:[%s6308_s14 + $0x2d4] ss:$8 sps:$4 sm:$0xff]  }
 0x194   : > { %v1298_v48 = vpop.f32.mrf.mxu0  ;;  %1489 = vmatmul.mubr.bf16.gmra.mxu0 %v5854_v34 }
 0x195   : > { %v5475_v49 = vpack.i.bf16 %v1594_v47, %v1592_v44  ;;  %v6585_v50 = vadd.f32 %v6401_v11, %v1298_v48  ;;  %1496 = vmatprep.mubr.bf16.mxu0 %v5859_v40  ;;  %v6602_v14 = vpop.permute.xlu1 %5391 }
 0x196   : > { %v1300_v51 = vpop.f32.mrf.mxu0 }
 0x197   : > { %v1595_v53 = vmax.f32 %v6585_v50, 0.0  ;;  %5476 = vrot.lane.b32.xlu0 %v5475_v49, %s6211_s25 }
 0x198   : > { %v1301_v55 = vpop.f32.mrf.mxu0 }
 0x199   : > { %v5480_v58 = vpack.i.bf16 %v1595_v53, %v1593_v52  ;;  %v1302_v59 = vadd.f32 %v6401_v11, %v1301_v55  ;;  %v6611_v30 = vpop.permute.xlu1 %5396  ;;  %v5872_v55 = vld [vmem:[%s6308_s14 + $0x2d0] ss:$8 sps:$4 sm:$0xff]  }
 0x19a   : > { %v1303_v62 = vpop.f32.mrf.mxu0 }
 0x19b   : > { %v1596_v0 = vmax.f32 %v1302_v59, 0.0  ;;  %5481 = vrot.lane.b32.xlu0 %v5480_v58, %s6212_s26  ;;  %v1163_v62 = vadd.f32 %v6401_v11, %v6394_v4 }
 0x19c   : > { %v1306_v1 = vpop.f32.mrf.mxu0  ;;  %1497 = vmatmul.mubr.bf16.gmra.mxu0 %v5857_v56  ;;  %v5881_v56 = vld [vmem:[%s6308_s14 + $0x2e4] ss:$8 sps:$4 sm:$0xff]  }
 0x19d   : > { %v5485_v3 = vpack.i.bf16 %v1596_v0, %v1594_v47  ;;  %1504 = vmatprep.mubr.bf16.mxu0 %v5862_v60  ;;  %v6605_v15 = vadd.f32 %v6401_v11, %v1306_v1  ;;  %v5387_v1 = vpop.permute.xlu0 %5386 }
 0x19e   : > { %v1308_v5 = vpop.f32.mrf.mxu0 }
 0x19f   : > { %5486 = vrot.lane.b32.xlu0 %v5485_v3, %s6213_s29  ;;  %v1597_v24 = vmax.f32 %v6605_v15, 0.0 }
 0x1a0   : > { %v1309_v7 = vpop.f32.mrf.mxu0 }
 0x1a1   : > { %v1310_v9 = vadd.f32 %v6401_v11, %v1309_v7  ;;  %v6620_v47 = vpop.permute.xlu1 %5401  ;;  %v5879_v7 = vld [vmem:[%s6308_s14 + $0x2e0] ss:$8 sps:$4 sm:$0xff]  }
 0x1a2   : > { %v1311_v13 = vpop.f32.mrf.mxu0 }
 0x1a3   : > { %v1598_v16 = vmax.f32 %v1310_v9, 0.0  ;;  %v1561_v13 = vmax.f32 %v1163_v62, 0.0 }
 0x1a4   : > { %v1314_v18 = vpop.f32.mrf.mxu0  ;;  %1505 = vmatmul.mubr.bf16.gmra.mxu0 %v5860_v8 }
 0x1a5   : > { %v5490_v19 = vpack.i.bf16 %v1598_v16, %v1596_v0  ;;  %v1315_v21 = vadd.f32 %v6401_v11, %v1314_v18  ;;  %1512 = vmatprep.mubr.bf16.mxu0 %v5867_v12  ;;  %v6625_v59 = vpop.permute.xlu1 %5406  ;;  %v5888_v12 = vld [vmem:[%s6308_s14 + $0x2f4] ss:$8 sps:$4 sm:$0xff]  }
 0x1a6   : > { %v1316_v22 = vpop.f32.mrf.mxu0 }
 0x1a7   : > { %v1599_v25 = vmax.f32 %v1315_v21, 0.0  ;;  %5491 = vrot.lane.b32.xlu0 %v5490_v19, %s6211_s25 }
 0x1a8   : > { %v1317_v28 = vpop.f32.mrf.mxu0 }
 0x1a9   : > { %v5495_v33 = vpack.i.bf16 %v1599_v25, %v1597_v24  ;;  %v1318_v34 = vadd.f32 %v6401_v11, %v1317_v28  ;;  %v6631_v8 = vpop.permute.xlu1 %5411  ;;  %v1203_v25 = vadd.f32 %v6401_v11, %v6464_v2  ;;  %v5389_v28 = vunpack.i.h.bf16 %v5387_v1 }
 0x1aa   : > { %v1319_v40 = vpop.f32.mrf.mxu0  ;;  %v5399_v2 = vunpack.i.h.bf16 %v6611_v30 }
 0x1ab   : > { %v1600_v43 = vmax.f32 %v1318_v34, 0.0  ;;  %5496 = vrot.lane.b32.xlu0 %v5495_v33, %s6212_s26  ;;  %v5394_v34 = vunpack.i.h.bf16 %v6602_v14 }
 0x1ac   : > { %v6618_v44 = vpop.f32.mrf.mxu0  ;;  %1513 = vmatmul.mubr.bf16.gmra.mxu0 %v5865_v29  ;;  %v5393_v29 = vunpack.i.l.bf16 %v6602_v14 }
 0x1ad   : > { %v5500_v48 = vpack.i.bf16 %v1600_v43, %v1598_v16  ;;  %1520 = vmatprep.mubr.bf16.mxu0 %v5874_v35  ;;  %v5388_v16 = vunpack.i.l.bf16 %v5387_v1  ;;  %v5398_v35 = vunpack.i.l.bf16 %v6611_v30  ;;  %v1768_v1 = vsel %vm1709_vm0, %v1563_v26, %v5389_v28 }
 0x1ae   : > { %v1324_v49 = vpop.f32.mrf.mxu0 }
 0x1af   : > { %5501 = vrot.lane.b32.xlu0 %v5500_v48, %s6213_s29  ;;  %v1710_v49 = vsel %vm1709_vm0, %v1561_v13, %v5388_v16 }
 0x1b0   : > { %v1325_v51 = vpop.f32.mrf.mxu0 }
 0x1b1   : > { %v1326_v3 = vadd.f32 %v6401_v11, %v1325_v51 }
 0x1b2   : > { %v1327_v58 = vpop.f32.mrf.mxu0 }
 0x1b3   : > { %v1602_v19 = vmax.f32 %v1326_v3, 0.0  ;;  %v1712_v3 = vsel %vm1711_vm1, %v1710_v49, %v5393_v29 }
 0x1b4   : > { %v1330_v60 = vpop.f32.mrf.mxu0  ;;  %1521 = vmatmul.mubr.bf16.gmra.mxu0 %v5872_v55  ;;  %v1714_v16 = vsel %vm1713_vm2, %v1712_v3, %v5398_v35 }
 0x1b5   : > { %1528 = vmatprep.mubr.bf16.mxu0 %v5881_v56  ;;  %v6636_v21 = vadd.f32 %v6401_v11, %v1330_v60 }
 0x1b6   : > { %v1332_v0 = vpop.f32.mrf.mxu0 }
 0x1b7   : > { %v1603_v58 = vmax.f32 %v6636_v21, 0.0  ;;  %v1571_v0 = vmax.f32 %v1203_v25, 0.0 }
 0x1b8   : > { %v1333_v5 = vpop.f32.mrf.mxu0 }
 0x1b9   : > { %v1334_v9 = vadd.f32 %v6401_v11, %v1333_v5  ;;  %v5417_v22 = vpop.permute.xlu0 %5416  ;;  %v5886_v5 = vld [vmem:[%s6308_s14 + $0x2f0] ss:$8 sps:$4 sm:$0xff]  }
 0x1ba   : > { %v1335_v18 = vpop.f32.mrf.mxu0  ;;  %v5419_v51 = vunpack.i.h.bf16 %v5417_v22  ;;  %v5418_v55 = vunpack.i.l.bf16 %v5417_v22 }
 0x1bb   : > { %v1604_v4 = vmax.f32 %v1334_v9, 0.0  ;;  %v5893_v18 = vld [vmem:[%s6308_s14 + $0x304] ss:$8 sps:$4 sm:$0xff]  }
 0x1bc   : > { %v1338_v33 = vpop.f32.mrf.mxu0  ;;  %1529 = vmatmul.mubr.bf16.gmra.mxu0 %v5879_v7  ;;  %v1769_v7 = vsel %vm1711_vm1, %v1768_v1, %v5394_v34  ;;  %v1715_v22 = vsel %vm1709_vm0, %v1571_v0, %v5418_v55  ;;  %v1771_v25 = vsel %vm1709_vm0, %v1573_v38, %v5419_v51  ;;  %v5403_v0 = vunpack.i.l.bf16 %v6620_v47 }
 0x1bd   : > { %v5505_v40 = vpack.i.bf16 %v1604_v4, %v1602_v19  ;;  %v6644_v43 = vadd.f32 %v6401_v11, %v1338_v33  ;;  %v5422_v48 = vpop.permute.xlu1 %5421  ;;  %1536 = vmatprep.mubr.bf16.mxu0 %v5888_v12  ;;  %v1770_v34 = vsel %vm1713_vm2, %v1769_v7, %v5399_v2 }
 0x1be   : > { %v1340_v56 = vpop.f32.mrf.mxu0  ;;  %v5424_v60 = vunpack.i.h.bf16 %v5422_v48  ;;  %v5423_v62 = vunpack.i.l.bf16 %v5422_v48  ;;  %v2234_v51 = vpack.c.bf16 %v1770_v34, %v1714_v16 }
 0x1bf   : > { %v1605_v14 = vmax.f32 %v6644_v43, 0.0  ;;  %5506 = vrot.lane.b32.xlu1 %v5505_v40, %s6211_s25  ;;  %v5891_v56 = vld [vmem:[%s6308_s14 + $0x300] ss:$8 sps:$4 sm:$0xff]  }
 0x1c0   : > { %v1341_v30 = vpop.f32.mrf.mxu0  ;;  %v1716_v29 = vsel %vm1711_vm1, %v1715_v22, %v5423_v62  ;;  %v1772_v33 = vsel %vm1711_vm1, %v1771_v25, %v5424_v60  ;;  %v5896_v62 = vld [vmem:[%s6308_s14 + $0x314] ss:$8 sps:$4 sm:$0xff]  }
 0x1c1   : > { %v5510_v9 = vpack.i.bf16 %v1605_v14, %v1603_v58  ;;  %v1342_v12 = vadd.f32 %v6401_v11, %v1341_v30  ;;  %v5427_v13 = vpop.permute.xlu0 %5426  ;;  %v5404_v30 = vunpack.i.h.bf16 %v6620_v47  ;;  %v5414_v47 = vunpack.i.h.bf16 %v6631_v8 }
 0x1c2   : > { %v5429_v20 = vunpack.i.h.bf16 %v5427_v13  ;;  %v5428_v19 = vunpack.i.l.bf16 %v5427_v13  ;;  %v1343_v26 = vpop.f32.mrf.mxu0 }
 0x1c3   : > { %v1606_v28 = vmax.f32 %v1342_v12, 0.0  ;;  %5511 = vrot.lane.b32.xlu1 %v5510_v9, %s6212_s26  ;;  %v5409_v9 = vunpack.i.h.bf16 %v6625_v59  ;;  %v5413_v12 = vunpack.i.l.bf16 %v6631_v8 }
 0x1c4   : > { %v1346_v35 = vpop.f32.mrf.mxu0  ;;  %1537 = vmatmul.mubr.bf16.gmra.mxu0 %v5886_v5  ;;  %v1717_v40 = vsel %vm1713_vm2, %v1716_v29, %v5428_v19  ;;  %v1773_v48 = vsel %vm1713_vm2, %v1772_v33, %v5429_v20  ;;  %v5408_v5 = vunpack.i.l.bf16 %v6625_v59  ;;  %v1824_v20 = vsel %vm1709_vm0, %v1565_v27, %v5403_v0  ;;  %v5894_v27 = vld [vmem:[%s6308_s14 + $0x310] ss:$8 sps:$4 sm:$0xff]   ;;  %s391_s14 = scalar_lea.vmem %s8000_s11, %s5367_s12 }
 0x1c5   : > { %v5515_v31 = vpack.i.bf16 %v1606_v28, %v1604_v4  ;;  %v2235_v49 = vpack.c.bf16 %v1773_v48, %v1717_v40  ;;  %1544 = vmatprep.mubr.bf16.mxu0 %v5893_v18  ;;  %v6680_v3 = vadd.f32 %v6401_v11, %v1346_v35 }
 0x1c6   : > { %v1348_v38 = vpop.f32.mrf.mxu0  ;;  %v1825_v23 = vsel %vm1711_vm1, %v1824_v20, %v5408_v5 }
 0x1c7   : > { %5516 = vrot.lane.b32.xlu1 %v5515_v31, %s6213_s29  ;;  %2549 = vmatprep.mubr.bf16.mxu1 %v2235_v49  ;;  %v1607_v25 = vmax.f32 %v6680_v3, 0.0  ;;  %v1826_v31 = vsel %vm1713_vm2, %v1825_v23, %v5413_v12 }
 0x1c8   : > { %v1349_v55 = vpop.f32.mrf.mxu0  ;;  %2550 = vmatmul.mubr.bf16.vlgmr.msra.gmra.mxu1 %v2234_v51 }
 0x1c9   : > { %v1350_v2 = vadd.f32 %v6401_v11, %v1349_v55  ;;  %v5432_v60 = vpop.permute.xlu0 %5431 }
 0x1ca   : > { %v1351_v1 = vpop.f32.mrf.mxu0  ;;  %v5434_v19 = vunpack.i.h.bf16 %v5432_v60  ;;  %v5433_v26 = vunpack.i.l.bf16 %v5432_v60 }
 0x1cb   : > { %v1608_v4 = vmax.f32 %v1350_v2, 0.0 }
 0x1cc   : > { %v1354_v7 = vpop.f32.mrf.mxu0  ;;  %1545 = vmatmul.mubr.bf16.gmra.mxu0 %v5891_v56  ;;  %v1883_v46 = vsel %vm1709_vm0, %v1577_v63, %v5434_v19 }
 0x1cd   : > { %v5520_v13 = vpack.i.bf16 %v1608_v4, %v1606_v28  ;;  %v1355_v16 = vadd.f32 %v6401_v11, %v1354_v7  ;;  %v5437_v18 = vpop.permute.xlu0 %5436  ;;  %1552 = vmatprep.mubr.bf16.mxu0 %v5896_v62  ;;  %v1880_v28 = vsel %vm1709_vm0, %v1567_v54, %v5404_v30  ;;  %v1827_v54 = vsel %vm1709_vm0, %v1575_v39, %v5433_v26 }
 0x1ce   : > { %v1356_v22 = vpop.f32.mrf.mxu0  ;;  %v5439_v29 = vunpack.i.h.bf16 %v5437_v18  ;;  %v5438_v33 = vunpack.i.l.bf16 %v5437_v18  ;;  %v1881_v8 = vsel %vm1711_vm1, %v1880_v28, %v5409_v9 }
 0x1cf   : > { %v1609_v59 = vmax.f32 %v1355_v16, 0.0  ;;  %5521 = vrot.lane.b32.xlu1 %v5520_v13, %s6211_s25  ;;  %v1882_v60 = vsel %vm1713_vm2, %v1881_v8, %v5414_v47 }
 0x1d0   : > { %v1357_v34 = vpop.f32.mrf.mxu0  ;;  %v1828_v55 = vsel %vm1711_vm1, %v1827_v54, %v5438_v33  ;;  %v1884_v56 = vsel %vm1711_vm1, %v1883_v46, %v5439_v29  ;;  %v2238_v1 = vpack.c.bf16 %v1882_v60, %v1826_v31 }
 0x1d1   : > { %v5525_v35 = vpack.i.bf16 %v1609_v59, %v1607_v25  ;;  %v1358_v40 = vadd.f32 %v6401_v11, %v1357_v34  ;;  %v5442_v48 = vpop.permute.xlu0 %5441 }
 0x1d2   : > { %v5444_v49 = vunpack.i.h.bf16 %v5442_v48  ;;  %v5443_v38 = vunpack.i.l.bf16 %v5442_v48  ;;  %v1359_v51 = vpop.f32.mrf.mxu0 }
 0x1d3   : > { %v1610_v2 = vmax.f32 %v1358_v40, 0.0  ;;  %5526 = vrot.lane.b32.xlu1 %v5525_v35, %s6212_s26 }
 0x1d4   : > { %v6713_v62 = vpop.f32.mrf.mxu0  ;;  %1553 = vmatmul.mubr.bf16.gmra.mxu0 %v5894_v27  ;;  %v1829_v57 = vsel %vm1713_vm2, %v1828_v55, %v5443_v38  ;;  %v1885_v36 = vsel %vm1713_vm2, %v1884_v56, %v5444_v49 }
 0x1d5   : > { %v5530_v39 = vpack.i.bf16 %v1610_v2, %v1608_v4  ;;  %v2239_v63 = vpack.c.bf16 %v1885_v36, %v1829_v57 }
 0x1d6   : > { %v1364_v0 = vpop.f32.mrf.mxu0 }
 0x1d7   : > { %5531 = vrot.lane.b32.xlu1 %v5530_v39, %s6213_s29  ;;  %2557 = vmatprep.mubr.bf16.mxu1 %v2239_v63 }
 0x1d8   : > { %v1365_v30 = vpop.f32.mrf.mxu0  ;;  %2558 = vmatmul.mubr.bf16.gmra.mxu1 %v2238_v1 }
 0x1d9   : > { %v1366_v12 = vadd.f32 %v6401_v11, %v1365_v30 }
 0x1da   : > { %v1367_v5 = vpop.f32.mrf.mxu0 }
 0x1db   : > { %v1612_v20 = vmax.f32 %v1366_v12, 0.0 }
 0x1dc   : > { %v1370_v7 = vpop.f32.mrf.mxu0 }
 0x1dd   : > { %v6721_v4 = vadd.f32 %v6401_v11, %v1370_v7 }
 0x1de   : > { %v1372_v9 = vpop.f32.mrf.mxu0 }
 0x1df   : > { %v1613_v29 = vmax.f32 %v6721_v4, 0.0 }
 0x1e0   : > { %v1373_v13 = vpop.f32.mrf.mxu0 }
 0x1e1   : > { %v1374_v16 = vadd.f32 %v6401_v11, %v1373_v13  ;;  %v5447_v7 = vpop.permute.xlu1 %5446 }
 0x1e2   : > { %v1375_v18 = vpop.f32.mrf.mxu0 }
 0x1e3   : > { %v1614_v47 = vmax.f32 %v1374_v16, 0.0 }
 0x1e4   : > { %v1378_v19 = vpop.f32.mrf.mxu0 }
 0x1e5   : > { %v5535_v26 = vpack.i.bf16 %v1614_v47, %v1612_v20  ;;  %v6724_v22 = vadd.f32 %v6401_v11, %v1378_v19  ;;  %v5452_v16 = vpop.permute.xlu1 %5451  ;;  %v1243_v19 = vadd.f32 %v6401_v11, %v6530_v10 }
 0x1e6   : > { %v1380_v59 = vpop.f32.mrf.mxu0 }
 0x1e7   : > { %v1615_v33 = vmax.f32 %v6724_v22, 0.0  ;;  %5536 = vrot.lane.b32.xlu0 %v5535_v26, %s6211_s25 }
 0x1e8   : > { %v1381_v28 = vpop.f32.mrf.mxu0 }
 0x1e9   : > { %v5540_v23 = vpack.i.bf16 %v1615_v33, %v1613_v29  ;;  %v1382_v34 = vadd.f32 %v6401_v11, %v1381_v28 }
 0x1ea   : > { %v1383_v27 = vpop.f32.mrf.mxu0 }
 0x1eb   : > { %v1616_v8 = vmax.f32 %v1382_v34, 0.0  ;;  %5541 = vrot.lane.b32.xlu0 %v5540_v23, %s6212_s26  ;;  %v5448_v23 = vunpack.i.l.bf16 %v5447_v7  ;;  %v5457_v34 = vpop.permute.xlu1 %5456 }
 0x1ec   : > { %v1386_v35 = vpop.f32.mrf.mxu0 }
 0x1ed   : > { %v5545_v40 = vpack.i.bf16 %v1616_v8, %v1614_v47  ;;  %v6738_v49 = vadd.f32 %v6401_v11, %v1386_v35  ;;  %v6757_v35 = vld [vmem:[%s7991_s2] ss:$0 sm:$0xff] }
 0x1ee   : > { %v1388_v48 = vpop.f32.mrf.mxu0  ;;  %v1283_v10 = vadd.f32 %v6757_v35, %v6572_v17 }
 0x1ef   : > { %5546 = vrot.lane.b32.xlu0 %v5545_v40, %s6213_s29  ;;  %v1617_v60 = vmax.f32 %v6738_v49, 0.0 }
 0x1f0   : > { %v1389_v31 = vpop.f32.mrf.mxu0 }
 0x1f1   : > { %v1390_v46 = vadd.f32 %v6401_v11, %v1389_v31  ;;  %v1581_v31 = vmax.f32 %v1243_v19, 0.0 }
 0x1f2   : > { %v1391_v54 = vpop.f32.mrf.mxu0 }
 0x1f3   : > { %v1618_v38 = vmax.f32 %v1390_v46, 0.0  ;;  %v5449_v46 = vunpack.i.h.bf16 %v5447_v7 }
 0x1f4   : > { %v1394_v51 = vpop.f32.mrf.mxu0 }
 0x1f5   : > { %v5550_v55 = vpack.i.bf16 %v1618_v38, %v1616_v8  ;;  %v1395_v56 = vadd.f32 %v6401_v11, %v1394_v51  ;;  %v5458_v51 = vunpack.i.l.bf16 %v5457_v34 }
 0x1f6   : > { %v1396_v2 = vpop.f32.mrf.mxu0 }
 0x1f7   : > { %v1619_v57 = vmax.f32 %v1395_v56, 0.0  ;;  %5551 = vrot.lane.b32.xlu0 %v5550_v55, %s6211_s25 }
 0x1f8   : > { %v1397_v36 = vpop.f32.mrf.mxu0 }
 0x1f9   : > { %v5555_v39 = vpack.i.bf16 %v1619_v57, %v1617_v60  ;;  %v1398_v63 = vadd.f32 %v6401_v11, %v1397_v36  ;;  %v1718_v57 = vsel %vm1709_vm0, %v1581_v31, %v5448_v23  ;;  %v5459_v36 = vunpack.i.h.bf16 %v5457_v34 }
 0x1fa   : > { %v1399_v0 = vpop.f32.mrf.mxu0 }
 0x1fb   : > { %v1620_v1 = vmax.f32 %v1398_v63, 0.0  ;;  %5556 = vrot.lane.b32.xlu0 %v5555_v39, %s6212_s26  ;;  %v6768_v39 = vpop.permute.xlu1 %5461 }
 0x1fc   : > { %v6747_v30 = vpop.f32.mrf.mxu0 }
 0x1fd   : > { %v5560_v5 = vpack.i.bf16 %v1620_v1, %v1618_v38  ;;  %v5454_v38 = vunpack.i.h.bf16 %v5452_v16 }
 0x1fe   : > { %v1404_v9 = vpop.f32.mrf.mxu0 }
 0x1ff   : > { %5561 = vrot.lane.b32.xlu0 %v5560_v5, %s6213_s29 }
 0x200   : > { %v1405_v12 = vpop.f32.mrf.mxu0 }
 0x201   : > { %v1406_v47 = vadd.f32 %v6401_v11, %v1405_v12  ;;  %v1591_v12 = vmax.f32 %v1283_v10, 0.0 }
 0x202   : > { %v1407_v13 = vpop.f32.mrf.mxu0 }
 0x203   : > { %v1622_v8 = vmax.f32 %v1406_v47, 0.0  ;;  %v1774_v13 = vsel %vm1709_vm0, %v1583_v41, %v5449_v46  ;;  %v5467_v46 = vpop.permute.xlu1 %5466 }
 0x204   : > { %v1410_v18 = vpop.f32.mrf.mxu0 }
 0x205   : > { %v6760_v40 = vadd.f32 %v6757_v35, %v1410_v18 }
 0x206   : > { %v1412_v20 = vpop.f32.mrf.mxu0 }
 0x207   : > { %v1623_v17 = vmax.f32 %v6760_v40, 0.0  ;;  %v1775_v20 = vsel %vm1711_vm1, %v1774_v13, %v5454_v38 }
 0x208   : > { %v1413_v26 = vpop.f32.mrf.mxu0  ;;  %v1776_v10 = vsel %vm1713_vm2, %v1775_v20, %v5459_v36 }
 0x209   : > { %v1414_v59 = vadd.f32 %v6401_v11, %v1413_v26  ;;  %v5477_v28 = vpop.permute.xlu0 %5476  ;;  %v5453_v11 = vunpack.i.l.bf16 %v5452_v16 }
 0x20a   : > { %v1415_v27 = vpop.f32.mrf.mxu0  ;;  %v5479_v63 = vunpack.i.h.bf16 %v5477_v28  ;;  %v5478_v0 = vunpack.i.l.bf16 %v5477_v28 }
 0x20b   : > { %v1624_v48 = vmax.f32 %v1414_v59, 0.0  ;;  %v1719_v16 = vsel %vm1711_vm1, %v1718_v57, %v5453_v11 }
 0x20c   : > { %v1418_v54 = vpop.f32.mrf.mxu0  ;;  %v1720_v59 = vsel %vm1713_vm2, %v1719_v16, %v5458_v51  ;;  %v1777_v32 = vsel %vm1709_vm0, %v1593_v52, %v5479_v63  ;;  %v1721_v41 = vsel %vm1709_vm0, %v1591_v12, %v5478_v0  ;;  %v5463_v63 = vunpack.i.l.bf16 %v6768_v39  ;;  %v5472_v0 = vpop.permute.xlu1 %5471 }
 0x20d   : > { %v5565_v55 = vpack.i.bf16 %v1624_v48, %v1622_v8  ;;  %v6765_v56 = vadd.f32 %v6757_v35, %v1418_v54  ;;  %v5482_v2 = vpop.permute.xlu0 %5481  ;;  %v5468_v12 = vunpack.i.l.bf16 %v5467_v46  ;;  %v5469_v16 = vunpack.i.h.bf16 %v5467_v46 }
 0x20e   : > { %v1420_v1 = vpop.f32.mrf.mxu0  ;;  %v5484_v7 = vunpack.i.h.bf16 %v5482_v2  ;;  %v5483_v9 = vunpack.i.l.bf16 %v5482_v2 }
 0x20f   : > { %v1625_v5 = vmax.f32 %v6765_v56, 0.0  ;;  %5566 = vrot.lane.b32.xlu1 %v5565_v55, %s6211_s25  ;;  %v6796_v55 = vpack.c.bf16 %v1776_v10, %v1720_v59  ;;  %v5898_v59 = vld [vmem:[%s7992_s3 + $0xb8] sm:$0xff]  }
 0x210   : > { %v1421_v18 = vpop.f32.mrf.mxu0  ;;  %v1722_v27 = vsel %vm1711_vm1, %v1721_v41, %v5483_v9  ;;  %v1778_v8 = vsel %vm1711_vm1, %v1777_v32, %v5484_v7  ;;  %v5464_v9 = vunpack.i.h.bf16 %v6768_v39  ;;  %v1830_v39 = vsel %vm1709_vm0, %v1585_v42, %v5463_v63 }
 0x211   : > { %v5570_v47 = vpack.i.bf16 %v1625_v5, %v1623_v17  ;;  %v1422_v19 = vadd.f32 %v6757_v35, %v1421_v18  ;;  %v5487_v26 = vpop.permute.xlu0 %5486  ;;  %v5473_v18 = vunpack.i.l.bf16 %v5472_v0  ;;  %v5474_v32 = vunpack.i.h.bf16 %v5472_v0 }
 0x212   : > { %v5489_v28 = vunpack.i.h.bf16 %v5487_v26  ;;  %v5488_v23 = vunpack.i.l.bf16 %v5487_v26  ;;  %v1423_v34 = vpop.f32.mrf.mxu0  ;;  %v5897_v26 = vld [vmem:[%s7992_s3 + $0xf8] sm:$0xff]   ;;  %v1886_v10 = vsel %vm1709_vm0, %v1587_v6, %v5464_v9  ;;  %v1831_v37 = vsel %vm1711_vm1, %v1830_v39, %v5468_v12  ;;  %v5900_v6 = vld [vmem:[%s7992_s3 + $0xb0] sm:$0xff]  }
 0x213   : > { %v1626_v31 = vmax.f32 %v1422_v19, 0.0  ;;  %5571 = vrot.lane.b32.xlu1 %v5570_v47, %s6212_s26  ;;  %5185 = vmatprep.subr.bf16.mxu1 %v5897_v26  ;;  %v1887_v42 = vsel %vm1711_vm1, %v1886_v10, %v5469_v16  ;;  %v5901_v26 = vld [vmem:[%s7992_s3 + $0xe8] sm:$0xff]  }
 0x214   : > { %v1426_v11 = vpop.f32.mrf.mxu0  ;;  %v1723_v45 = vsel %vm1713_vm2, %v1722_v27, %v5488_v23  ;;  %v1779_v52 = vsel %vm1713_vm2, %v1778_v8, %v5489_v28  ;;  %5186 = vmatpush3.bf16.msra.mxu1 %v5898_v59  ;;  %v1888_v12 = vsel %vm1713_vm2, %v1887_v42, %v5474_v32  ;;  %v5902_v32 = vld [vmem:[%s7992_s3 + $0xa8] sm:$0xff]  }
 0x215   : > { %v5575_v54 = vpack.i.bf16 %v1626_v31, %v1624_v48  ;;  %v6794_v38 = vpack.c.bf16 %v1779_v52, %v1723_v45  ;;  %v6804_v48 = vadd.f32 %v6757_v35, %v1426_v11  ;;  %5187 = vmatprep.subr.bf16.mxu1 %v5899_v61 }
 0x216   : > { %v1428_v51 = vpop.f32.mrf.mxu0 }
 0x217   : > { %5576 = vrot.lane.b32.xlu1 %v5575_v54, %s6213_s29  ;;  %2565 = vmatprep.mubr.bf16.mxu1 %v6794_v38  ;;  %v1627_v34 = vmax.f32 %v6804_v48, 0.0  ;;  %v1832_v54 = vsel %vm1713_vm2, %v1831_v37, %v5473_v18 }
 0x218   : > { %v1429_v2 = vpop.f32.mrf.mxu0  ;;  %2566 = vmatmul.mubr.bf16.gmra.mxu1 %v6796_v55  ;;  %v6850_v18 = vpack.c.bf16 %v1888_v12, %v1832_v54 }
 0x219   : > { %v1430_v57 = vadd.f32 %v6757_v35, %v1429_v2  ;;  %v5492_v36 = vpop.permute.xlu0 %5491  ;;  %5188 = vmatpush3.bf16.msra.mxu1 %v5900_v6 }
 0x21a   : > { %v1431_v1 = vpop.f32.mrf.mxu0  ;;  %v5494_v41 = vunpack.i.h.bf16 %v5492_v36  ;;  %v5493_v28 = vunpack.i.l.bf16 %v5492_v36  ;;  %5189 = vmatprep.subr.bf16.mxu1 %v5901_v26 }
 0x21b   : > { %v1628_v7 = vmax.f32 %v1430_v57, 0.0 }
 0x21c   : > { %v1434_v13 = vpop.f32.mrf.mxu0  ;;  %v1889_v51 = vsel %vm1709_vm0, %v1597_v24, %v5494_v41  ;;  %v1833_v2 = vsel %vm1709_vm0, %v1595_v53, %v5493_v28 }
 0x21d   : > { %v5580_v20 = vpack.i.bf16 %v1628_v7, %v1626_v31  ;;  %v1435_v47 = vadd.f32 %v6757_v35, %v1434_v13  ;;  %v5497_v19 = vpop.permute.xlu0 %5496  ;;  %5190 = vmatpush3.bf16.msra.mxu1 %v5902_v32 }
 0x21e   : > { %v1436_v23 = vpop.f32.mrf.mxu0  ;;  %v5499_v8 = vunpack.i.h.bf16 %v5497_v19  ;;  %v5498_v31 = vunpack.i.l.bf16 %v5497_v19 }
 0x21f   : > { %v1629_v27 = vmax.f32 %v1435_v47, 0.0  ;;  %5581 = vrot.lane.b32.xlu1 %v5580_v20, %s6211_s25  ;;  %v5903_v23 = vld [vmem:[%s7992_s3 + $0xe0] sm:$0xff]  }
 0x220   : > { %v1437_v46 = vpop.f32.mrf.mxu0  ;;  %v1834_v0 = vsel %vm1711_vm1, %v1833_v2, %v5498_v31  ;;  %v1890_v1 = vsel %vm1711_vm1, %v1889_v51, %v5499_v8  ;;  %5191 = vmatprep.subr.bf16.mxu1 %v5903_v23 }
 0x221   : > { %v5585_v11 = vpack.i.bf16 %v1629_v27, %v1627_v34  ;;  %v1438_v45 = vadd.f32 %v6757_v35, %v1437_v46  ;;  %v5502_v52 = vpop.permute.xlu0 %5501  ;;  %v5904_v27 = vld [vmem:[%s7992_s3 + $0xa0] sm:$0xff]  }
 0x222   : > { %v5504_v57 = vunpack.i.h.bf16 %v5502_v52  ;;  %v5503_v36 = vunpack.i.l.bf16 %v5502_v52  ;;  %v1439_v63 = vpop.f32.mrf.mxu0  ;;  %5192 = vmatpush3.bf16.msra.mxu1 %v5904_v27 }
 0x223   : > { %v1630_v9 = vmax.f32 %v1438_v45, 0.0  ;;  %5586 = vrot.lane.b32.xlu1 %v5585_v11, %s6212_s26 }
 0x224   : > { %v6844_v15 = vpop.f32.mrf.mxu0  ;;  %v1835_v24 = vsel %vm1713_vm2, %v1834_v0, %v5503_v36  ;;  %v1891_v50 = vsel %vm1713_vm2, %v1890_v1, %v5504_v57  ;;  %v5905_v36 = vld [vmem:[%s7992_s3 + $0xd8] sm:$0xff]  }
 0x225   : > { %v5620_v53 = vpack.i.bf16 %v1630_v9, %v1628_v7  ;;  %v6848_v13 = vpack.c.bf16 %v1891_v50, %v1835_v24  ;;  %5193 = vmatprep.subr.bf16.mxu1 %v5905_v36  ;;  %v5906_v1 = vld [vmem:[%s7992_s3 + $0x98] sm:$0xff]   ;;  %v5907_v50 = vld [vmem:[%s7992_s3 + $0xd0] sm:$0xff]  }
 0x226   : > { %v1444_v16 = vpop.f32.mrf.mxu0  ;;  %5194 = vmatpush3.bf16.msra.mxu1 %v5906_v1  ;;  %v1323_v1 = vadd.f32 %v6757_v35, %v6618_v44 }
 0x227   : > { %5621 = vrot.lane.b32.xlu1 %v5620_v53, %s6213_s29  ;;  %2573 = vmatprep.mubr.bf16.mxu1 %v6848_v13  ;;  %v5908_v53 = vld [vmem:[%s7992_s3 + $0x90] sm:$0xff]  }
 0x228   : > { %v1445_v20 = vpop.f32.mrf.mxu0  ;;  %2574 = vmatmul.mubr.bf16.gmra.mxu1 %v6850_v18  ;;  %5195 = vmatprep.subr.bf16.mxu1 %v5907_v50 }
 0x229   : > { %v1446_v7 = vadd.f32 %v6757_v35, %v1445_v20 }
 0x22a   : > { %v1447_v47 = vpop.f32.mrf.mxu0  ;;  %5196 = vmatpush3.bf16.msra.mxu1 %v5908_v53 }
 0x22b   : > { %v1632_v8 = vmax.f32 %v1446_v7, 0.0  ;;  %v5909_v7 = vld [vmem:[%s7992_s3 + $0xc8] sm:$0xff]  }
 0x22c   : > { %v1450_v19 = vpop.f32.mrf.mxu0  ;;  %5197 = vmatprep.subr.bf16.mxu1 %v5909_v7  ;;  %v1363_v7 = vadd.f32 %v6757_v35, %v6713_v62 }
 0x22d   : > { %v6870_v31 = vadd.f32 %v6757_v35, %v1450_v19 }
 0x22e   : > { %v1452_v59 = vpop.f32.mrf.mxu0 }
 0x22f   : > { %v1633_v45 = vmax.f32 %v6870_v31, 0.0 }
 0x230   : > { %v1453_v39 = vpop.f32.mrf.mxu0 }
 0x231   : > { %v1454_v41 = vadd.f32 %v6757_v35, %v1453_v39 }
 0x232   : > { %v1455_v28 = vpop.f32.mrf.mxu0 }
 0x233   : > { %v1634_v10 = vmax.f32 %v1454_v41, 0.0  ;;  %v5910_v41 = vld [vmem:[%s7992_s3 + $0x88] sm:$0xff]  }
 0x234   : > { %v1458_v37 = vpop.f32.mrf.mxu0  ;;  %5198 = vmatpush3.bf16.msra.mxu1 %v5910_v41 }
 0x235   : > { %v5590_v46 = vpack.i.bf16 %v1634_v10, %v1632_v8  ;;  %v6873_v42 = vadd.f32 %v6757_v35, %v1458_v37  ;;  %v5911_v8 = vld [vmem:[%s7992_s3 + $0xc0] sm:$0xff]  }
 0x236   : > { %v1460_v11 = vpop.f32.mrf.mxu0  ;;  %5199 = vmatprep.subr.bf16.mxu1 %v5911_v8 }
 0x237   : > { %v1635_v52 = vmax.f32 %v6873_v42, 0.0  ;;  %5591 = vrot.lane.b32.xlu0 %v5590_v46, %s6211_s25 }
 0x238   : > { %v1461_v54 = vpop.f32.mrf.mxu0 }
 0x239   : > { %v5595_v61 = vpack.i.bf16 %v1635_v52, %v1633_v45  ;;  %v1462_v6 = vadd.f32 %v6757_v35, %v1461_v54 }
 0x23a   : > { %v1463_v51 = vpop.f32.mrf.mxu0 }
 0x23b   : > { %v1636_v2 = vmax.f32 %v1462_v6, 0.0  ;;  %5596 = vrot.lane.b32.xlu0 %v5595_v61, %s6212_s26  ;;  %v5507_v61 = vpop.permute.xlu1 %5506 }
 0x23c   : > { %v1466_v57 = vpop.f32.mrf.mxu0  ;;  %v5508_v50 = vunpack.i.l.bf16 %v5507_v61 }
 0x23d   : > { %v5600_v63 = vpack.i.bf16 %v1636_v2, %v1634_v10  ;;  %v6899_v16 = vadd.f32 %v6757_v35, %v1466_v57  ;;  %v5912_v10 = vld [vmem:[%s7992_s3 + $0x80] sm:$0xff]  }
 0x23e   : > { %v1468_v0 = vpop.f32.mrf.mxu0  ;;  %5200 = vmatpush3.bf16.msra.mxu1 %v5912_v10 }
 0x23f   : > { %5601 = vrot.lane.b32.xlu0 %v5600_v63, %s6213_s29  ;;  %v1637_v39 = vmax.f32 %v6899_v16, 0.0  ;;  %v5512_v57 = vpop.permute.xlu1 %5511 }
 0x240   : > { %v1469_v9 = vpop.f32.mrf.mxu0  ;;  %v5513_v41 = vunpack.i.l.bf16 %v5512_v57  ;;  %v5514_v44 = vunpack.i.h.bf16 %v5512_v57 }
 0x241   : > { %v1470_v12 = vadd.f32 %v6757_v35, %v1469_v9 }
 0x242   : > { %v1471_v24 = vpop.f32.mrf.mxu0 }
 0x243   : > { %v1638_v20 = vmax.f32 %v1470_v12, 0.0  ;;  %v5517_v53 = vpop.permute.xlu1 %5516 }
 0x244   : > { %v1474_v47 = vpop.f32.mrf.mxu0 }
 0x245   : > { %v5605_v19 = vpack.i.bf16 %v1638_v20, %v1636_v2  ;;  %v1475_v26 = vadd.f32 %v6757_v35, %v1474_v47 }
 0x246   : > { %v1476_v59 = vpop.f32.mrf.mxu0 }
 0x247   : > { %v1639_v32 = vmax.f32 %v1475_v26, 0.0  ;;  %5606 = vrot.lane.b32.xlu0 %v5605_v19, %s6211_s25  ;;  %v1601_v59 = vmax.f32 %v1323_v1, 0.0 }
 0x248   : > { %v1477_v28 = vpop.f32.mrf.mxu0 }
 0x249   : > { %v5610_v23 = vpack.i.bf16 %v1639_v32, %v1637_v39  ;;  %v1478_v27 = vadd.f32 %v6757_v35, %v1477_v28  ;;  %v5509_v32 = vunpack.i.h.bf16 %v5507_v61 }
 0x24a   : > { %v1479_v37 = vpop.f32.mrf.mxu0 }
 0x24b   : > { %v1640_v46 = vmax.f32 %v1478_v27, 0.0  ;;  %5611 = vrot.lane.b32.xlu0 %v5610_v23, %s6212_s26  ;;  %v5518_v23 = vunpack.i.l.bf16 %v5517_v53  ;;  %v1916_v37 = vsel %vm1709_vm0, %v1601_v59, %v5508_v50 }
 0x24c   : > { %v6920_v11 = vpop.f32.mrf.mxu0  ;;  %v1917_v1 = vsel %vm1711_vm1, %v1916_v37, %v5513_v41 }
 0x24d   : > { %v5615_v54 = vpack.i.bf16 %v1640_v46, %v1638_v20  ;;  %v5519_v46 = vunpack.i.h.bf16 %v5517_v53 }
 0x24e   : > { %v1484_v6 = vpop.f32.mrf.mxu0 }
 0x24f   : > { %5616 = vrot.lane.b32.xlu0 %v5615_v54, %s6213_s29  ;;  %v6936_v54 = vpop.permute.xlu1 %5521 }
 0x250   : > { %v1485_v51 = vpop.f32.mrf.mxu0 }
 0x251   : > { %v1486_v0 = vadd.f32 %v6757_v35, %v1485_v51 }
 0x252   : > { %v1487_v2 = vpop.f32.mrf.mxu0 }
 0x253   : > { %v1642_v47 = vmax.f32 %v1486_v0, 0.0  ;;  %v1944_v0 = vsel %vm1709_vm0, %v1603_v58, %v5509_v32 }
 0x254   : > { %v1490_v36 = vpop.f32.mrf.mxu0 }
 0x255   : > { %v6928_v19 = vadd.f32 %v6757_v35, %v1490_v36 }
 0x256   : > { %v1492_v63 = vpop.f32.mrf.mxu0 }
 0x257   : > { %v1643_v62 = vmax.f32 %v6928_v19, 0.0  ;;  %v1611_v63 = vmax.f32 %v1363_v7, 0.0 }
 0x258   : > { %v1493_v9 = vpop.f32.mrf.mxu0 }
 0x259   : > { %v1494_v12 = vadd.f32 %v6757_v35, %v1493_v9  ;;  %v5537_v24 = vpop.permute.xlu0 %5536 }
 0x25a   : > { %v1495_v20 = vpop.f32.mrf.mxu0  ;;  %v5539_v6 = vunpack.i.h.bf16 %v5537_v24  ;;  %v5538_v51 = vunpack.i.l.bf16 %v5537_v24 }
 0x25b   : > { %v1644_v26 = vmax.f32 %v1494_v12, 0.0  ;;  %v1945_v12 = vsel %vm1711_vm1, %v1944_v0, %v5514_v44  ;;  %v1918_v20 = vsel %vm1713_vm2, %v1917_v1, %v5518_v23 }
 0x25c   : > { %v1498_v28 = vpop.f32.mrf.mxu0  ;;  %v1947_v21 = vsel %vm1709_vm0, %v1613_v29, %v5539_v6  ;;  %v1919_v58 = vsel %vm1709_vm0, %v1611_v63, %v5538_v51  ;;  %v1946_v44 = vsel %vm1713_vm2, %v1945_v12, %v5519_v46 }
 0x25d   : > { %v5625_v27 = vpack.i.bf16 %v1644_v26, %v1642_v47  ;;  %v6933_v8 = vadd.f32 %v6757_v35, %v1498_v28  ;;  %v5542_v10 = vpop.permute.xlu0 %5541  ;;  %v6964_v51 = vpack.c.bf16 %v1946_v44, %v1918_v20 }
 0x25e   : > { %v1500_v2 = vpop.f32.mrf.mxu0  ;;  %v5544_v36 = vunpack.i.h.bf16 %v5542_v10  ;;  %v5543_v57 = vunpack.i.l.bf16 %v5542_v10 }
 0x25f   : > { %v1645_v61 = vmax.f32 %v6933_v8, 0.0  ;;  %5626 = vrot.lane.b32.xlu1 %v5625_v27, %s6211_s25  ;;  %v5527_v27 = vpop.permute.xlu1 %5526 }
 0x260   : > { %v1501_v9 = vpop.f32.mrf.mxu0  ;;  %v1920_v32 = vsel %vm1711_vm1, %v1919_v58, %v5543_v57  ;;  %v1948_v41 = vsel %vm1711_vm1, %v1947_v21, %v5544_v36  ;;  %v5523_v57 = vunpack.i.l.bf16 %v6936_v54  ;;  %v5528_v12 = vunpack.i.l.bf16 %v5527_v27 }
 0x261   : > { %v5630_v24 = vpack.i.bf16 %v1645_v61, %v1643_v62  ;;  %v1502_v50 = vadd.f32 %v6757_v35, %v1501_v9  ;;  %v5547_v53 = vpop.permute.xlu0 %5546  ;;  %v5524_v9 = vunpack.i.h.bf16 %v6936_v54 }
 0x262   : > { %v5549_v47 = vunpack.i.h.bf16 %v5547_v53  ;;  %v5548_v59 = vunpack.i.l.bf16 %v5547_v53  ;;  %v1503_v7 = vpop.f32.mrf.mxu0 }
 0x263   : > { %v1646_v28 = vmax.f32 %v1502_v50, 0.0  ;;  %5631 = vrot.lane.b32.xlu1 %v5630_v24, %s6212_s26  ;;  %v5532_v63 = vpop.permute.xlu1 %5531  ;;  %v5529_v50 = vunpack.i.h.bf16 %v5527_v27 }
 0x264   : > { %v1506_v23 = vpop.f32.mrf.mxu0  ;;  %v1921_v4 = vsel %vm1713_vm2, %v1920_v32, %v5548_v59  ;;  %v1949_v29 = vsel %vm1713_vm2, %v1948_v41, %v5549_v47  ;;  %v5533_v53 = vunpack.i.l.bf16 %v5532_v63  ;;  %v1972_v47 = vsel %vm1709_vm0, %v1605_v14, %v5523_v57 }
 0x265   : > { %v5635_v10 = vpack.i.bf16 %v1646_v28, %v1644_v26  ;;  %v6962_v37 = vpack.c.bf16 %v1949_v29, %v1921_v4  ;;  %v6972_v26 = vadd.f32 %v6757_v35, %v1506_v23  ;;  %v5534_v59 = vunpack.i.h.bf16 %v5532_v63 }
 0x266   : > { %v1508_v6 = vpop.f32.mrf.mxu0  ;;  %v1973_v27 = vsel %vm1711_vm1, %v1972_v47, %v5528_v12 }
 0x267   : > { %5636 = vrot.lane.b32.xlu1 %v5635_v10, %s6213_s29  ;;  %2581 = vmatprep.mubr.bf16.mxu1 %v6962_v37  ;;  %v1647_v44 = vmax.f32 %v6972_v26, 0.0 }
 0x268   : > { %v1509_v2 = vpop.f32.mrf.mxu0  ;;  %2582 = vmatmul.mubr.bf16.gmra.mxu1 %v6964_v51 }
 0x269   : > { %v1510_v46 = vadd.f32 %v6757_v35, %v1509_v2  ;;  %v5552_v36 = vpop.permute.xlu0 %5551  ;;  %v1974_v2 = vsel %vm1713_vm2, %v1973_v27, %v5533_v53 }
 0x26a   : > { %v1511_v0 = vpop.f32.mrf.mxu0  ;;  %v5554_v7 = vunpack.i.h.bf16 %v5552_v36  ;;  %v5553_v32 = vunpack.i.l.bf16 %v5552_v36 }
 0x26b   : > { %v1648_v1 = vmax.f32 %v1510_v46, 0.0 }
 0x26c   : > { %v1514_v24 = vpop.f32.mrf.mxu0  ;;  %v2003_v46 = vsel %vm1709_vm0, %v1617_v60, %v5554_v7  ;;  %v1975_v3 = vsel %vm1709_vm0, %v1615_v33, %v5553_v32 }
 0x26d   : > { %v5640_v20 = vpack.i.bf16 %v1648_v1, %v1646_v28  ;;  %v1515_v21 = vadd.f32 %v6757_v35, %v1514_v24  ;;  %v5557_v58 = vpop.permute.xlu0 %5556  ;;  %v2000_v28 = vsel %vm1709_vm0, %v1607_v25, %v5524_v9 }
 0x26e   : > { %v1516_v41 = vpop.f32.mrf.mxu0  ;;  %v5559_v54 = vunpack.i.h.bf16 %v5557_v58  ;;  %v5558_v4 = vunpack.i.l.bf16 %v5557_v58  ;;  %v2001_v14 = vsel %vm1711_vm1, %v2000_v28, %v5529_v50 }
 0x26f   : > { %v1649_v23 = vmax.f32 %v1515_v21, 0.0  ;;  %5641 = vrot.lane.b32.xlu1 %v5640_v20, %s6211_s25  ;;  %v2002_v12 = vsel %vm1713_vm2, %v2001_v14, %v5534_v59 }
 0x270   : > { %v1517_v43 = vpop.f32.mrf.mxu0  ;;  %v1976_v63 = vsel %vm1711_vm1, %v1975_v3, %v5558_v4  ;;  %v2004_v0 = vsel %vm1711_vm1, %v2003_v46, %v5559_v54  ;;  %v7006_v53 = vpack.c.bf16 %v2002_v12, %v1974_v2 }
 0x271   : > { %v5645_v29 = vpack.i.bf16 %v1649_v23, %v1647_v44  ;;  %v1518_v10 = vadd.f32 %v6757_v35, %v1517_v43  ;;  %v5562_v6 = vpop.permute.xlu0 %5561 }
 0x272   : > { %v5564_v25 = vunpack.i.h.bf16 %v5562_v6  ;;  %v5563_v36 = vunpack.i.l.bf16 %v5562_v6  ;;  %v1519_v57 = vpop.f32.mrf.mxu0 }
 0x273   : > { %v1650_v9 = vmax.f32 %v1518_v10, 0.0  ;;  %5646 = vrot.lane.b32.xlu1 %v5645_v29, %s6212_s26 }
 0x274   : > { %v7000_v24 = vpop.f32.mrf.mxu0  ;;  %v1977_v49 = vsel %vm1713_vm2, %v1976_v63, %v5563_v36  ;;  %v2005_v22 = vsel %vm1713_vm2, %v2004_v0, %v5564_v25 }
 0x275   : > { %v5680_v60 = vpack.i.bf16 %v1650_v9, %v1648_v1  ;;  %v7004_v33 = vpack.c.bf16 %v2005_v22, %v1977_v49 }
 0x276   : > { %v1524_v50 = vpop.f32.mrf.mxu0 }
 0x277   : > { %5681 = vrot.lane.b32.xlu1 %v5680_v60, %s6213_s29  ;;  %2589 = vmatprep.mubr.bf16.mxu1 %v7004_v33 }
 0x278   : > { %v1525_v20 = vpop.f32.mrf.mxu0  ;;  %2590 = vmatmul.mubr.bf16.gmra.mxu1 %v7006_v53 }
 0x279   : > { %v1526_v59 = vadd.f32 %v6757_v35, %v1525_v20 }
 0x27a   : > { %v1527_v21 = vpop.f32.mrf.mxu0 }
 0x27b   : > { %v1652_v41 = vmax.f32 %v1526_v59, 0.0 }
 0x27c   : > { %v1530_v58 = vpop.f32.mrf.mxu0 }
 0x27d   : > { %v7014_v23 = vadd.f32 %v6757_v35, %v1530_v58 }
 0x27e   : > { %v1532_v47 = vpop.f32.mrf.mxu0 }
 0x27f   : > { %v1653_v14 = vmax.f32 %v7014_v23, 0.0 }
 0x280   : > { %v1533_v7 = vpop.f32.mrf.mxu0 }
 0x281   : > { %v1534_v1 = vadd.f32 %v6757_v35, %v1533_v7 }
 0x282   : > { %v1535_v32 = vpop.f32.mrf.mxu0 }
 0x283   : > { %v1654_v54 = vmax.f32 %v1534_v1, 0.0 }
 0x284   : > { %v1538_v4 = vpop.f32.mrf.mxu0 }
 0x285   : > { %v5650_v28 = vpack.i.bf16 %v1654_v54, %v1652_v41  ;;  %v7017_v27 = vadd.f32 %v6757_v35, %v1538_v4 }
 0x286   : > { %v1540_v43 = vpop.f32.mrf.mxu0 }
 0x287   : > { %v1655_v29 = vmax.f32 %v7017_v27, 0.0  ;;  %5651 = vrot.lane.b32.xlu0 %v5650_v28, %s6211_s25 }
 0x288   : > { %v1541_v10 = vpop.f32.mrf.mxu0  ;;  %v5137_v6 = vpop.f32.mrf.mxu1 }
 0x289   : > { %v5655_v2 = vpack.i.bf16 %v1655_v29, %v1653_v14  ;;  %v1542_v46 = vadd.f32 %v6757_v35, %v1541_v10 }
 0x28a   : > { %v1543_v3 = vpop.f32.mrf.mxu0  ;;  %v5138_v25 = vpop.f32.mrf.mxu1 }
 0x28b   : > { %v1656_v36 = vmax.f32 %v1542_v46, 0.0  ;;  %v7027_v57 = vadd.f32 %v5138_v25, %v5137_v6  ;;  %5656 = vrot.lane.b32.xlu0 %v5655_v2, %s6212_s26 }
 0x28c   : > { %v1546_v63 = vpop.f32.mrf.mxu0  ;;  %v5140_v0 = vpop.f32.mrf.mxu1 }
 0x28d   : > { %v5660_v9 = vpack.i.bf16 %v1656_v36, %v1654_v54  ;;  %v7035_v21 = vadd.f32 %v6757_v35, %v1546_v63  ;;  %v5567_v63 = vpop.permute.xlu1 %5566 }
 0x28e   : > { %v1548_v12 = vpop.f32.mrf.mxu0  ;;  %v5141_v49 = vpop.f32.mrf.mxu1 }
 0x28f   : > { %v7030_v22 = vadd.f32 %v5141_v49, %v5140_v0  ;;  %5661 = vrot.lane.b32.xlu0 %v5660_v9, %s6213_s29  ;;  %v1657_v32 = vmax.f32 %v7035_v21, 0.0  ;;  %v1403_v12 = vadd.f32 %v6757_v35, %v6747_v30  ;;  %v1443_v49 = vadd.f32 %v6757_v35, %v6844_v15 }
 0x290   : > { %v1549_v60 = vpop.f32.mrf.mxu0 }
 0x291   : > { %v1550_v50 = vadd.f32 %v6757_v35, %v1549_v60  ;;  %v5572_v0 = vpop.permute.xlu1 %5571  ;;  %v5569_v60 = vunpack.i.h.bf16 %v5567_v63 }
 0x292   : > { %v1551_v20 = vpop.f32.mrf.mxu0 }
 0x293   : > { %v1658_v58 = vmax.f32 %v1550_v50, 0.0  ;;  %v5568_v50 = vunpack.i.l.bf16 %v5567_v63  ;;  %v2058_v30 = vsel %vm1709_vm0, %v1623_v17, %v5569_v60 }
 0x294   : > { %v1554_v47 = vpop.f32.mrf.mxu0 }
 0x295   : > { %v5665_v59 = vpack.i.bf16 %v1658_v58, %v1656_v36  ;;  %v1555_v7 = vadd.f32 %v6757_v35, %v1554_v47  ;;  %v5577_v20 = vpop.permute.xlu1 %5576  ;;  %v5574_v47 = vunpack.i.h.bf16 %v5572_v0 }
 0x296   : > { %v1556_v1 = vpop.f32.mrf.mxu0 }
 0x297   : > { %v1659_v41 = vmax.f32 %v1555_v7, 0.0  ;;  %5666 = vrot.lane.b32.xlu0 %v5665_v59, %s6211_s25  ;;  %v5573_v59 = vunpack.i.l.bf16 %v5572_v0  ;;  %v1621_v7 = vmax.f32 %v1403_v12, 0.0 }
 0x298   : > { %v1557_v54 = vpop.f32.mrf.mxu0  ;;  %v7040_v4 = vpop.f32.mrf.mxu1 }
 0x299   : > { %v5670_v28 = vpack.i.bf16 %v1659_v41, %v1657_v32  ;;  %v1558_v43 = vadd.f32 %v6757_v35, %v1557_v54  ;;  %v5579_v54 = vunpack.i.h.bf16 %v5577_v20  ;;  %v2030_v15 = vsel %vm1709_vm0, %v1621_v7, %v5568_v50 }
 0x29a   : > { %v1559_v10 = vpop.f32.mrf.mxu0  ;;  %v7045_v6 = vpop.f32.mrf.mxu1 }
 0x29b   : > { %v1660_v2 = vmax.f32 %v1558_v43, 0.0  ;;  %5671 = vrot.lane.b32.xlu0 %v5670_v28, %s6212_s26  ;;  %v5578_v28 = vunpack.i.l.bf16 %v5577_v20 }
 0x29c   : > { %v5146_v46 = vpop.f32.mrf.mxu1 }
 0x29d   : > { %v5675_v3 = vpack.i.bf16 %v1660_v2, %v1658_v58  ;;  %v1631_v2 = vmax.f32 %v1443_v49, 0.0 }
 0x29e   : > { %v5147_v25 = vpop.f32.mrf.mxu1 }
 0x29f   : > { %v7048_v36 = vadd.f32 %v5147_v25, %v5146_v46  ;;  %5676 = vrot.lane.b32.xlu0 %v5675_v3, %s6213_s29  ;;  %v5582_v46 = vpop.permute.xlu1 %5581  ;;  %v2031_v3 = vsel %vm1711_vm1, %v2030_v15, %v5573_v59  ;;  %v2059_v25 = vsel %vm1711_vm1, %v2058_v30, %v5574_v47 }
 0x2a0   : > { %v2032_v60 = vsel %vm1713_vm2, %v2031_v3, %v5578_v28  ;;  %v2060_v50 = vsel %vm1713_vm2, %v2059_v25, %v5579_v54  ;;  %v5584_v7 = vunpack.i.h.bf16 %v5582_v46 }
 0x2a3   : > { %v5587_v31 = vpop.permute.xlu1 %5586 }
 0x2a9   : > { %v5592_v9 = vpop.permute.xlu0 %5591 }
 0x2aa   : > { %v5594_v1 = vunpack.i.h.bf16 %v5592_v9  ;;  %v5593_v41 = vunpack.i.l.bf16 %v5592_v9 }
 0x2ac   : > { %v2061_v0 = vsel %vm1709_vm0, %v1633_v45, %v5594_v1  ;;  %v2033_v9 = vsel %vm1709_vm0, %v1631_v2, %v5593_v41  ;;  %v5583_v1 = vunpack.i.l.bf16 %v5582_v46  ;;  %v5622_v41 = vpop.permute.xlu1 %5621  ;;  %v5588_v2 = vunpack.i.l.bf16 %v5587_v31 }
 0x2ad   : > { %v5597_v58 = vpop.permute.xlu0 %5596  ;;  %v5624_v15 = vunpack.i.h.bf16 %v5622_v41  ;;  %v5623_v54 = vunpack.i.l.bf16 %v5622_v41  ;;  %v1523_v41 = vadd.f32 %v6757_v35, %v7000_v24 }
 0x2ae   : > { %v5599_v43 = vunpack.i.h.bf16 %v5597_v58  ;;  %v5598_v10 = vunpack.i.l.bf16 %v5597_v58  ;;  %v2246_v58 = vpack.c.bf16 %v2060_v50, %v2032_v60 }
 0x2b0   : > { %v2034_v40 = vsel %vm1711_vm1, %v2033_v9, %v5598_v10  ;;  %v2062_v17 = vsel %vm1711_vm1, %v2061_v0, %v5599_v43  ;;  %v5589_v10 = vunpack.i.h.bf16 %v5587_v31  ;;  %v2086_v0 = vsel %vm1709_vm0, %v1625_v5, %v5583_v1 }
 0x2b1   : > { %v5602_v63 = vpop.permute.xlu0 %5601  ;;  %v2087_v46 = vsel %vm1711_vm1, %v2086_v0, %v5588_v2  ;;  %v1483_v1 = vadd.f32 %v6757_v35, %v6920_v11  ;;  %v1651_v0 = vmax.f32 %v1523_v41, 0.0 }
 0x2b2   : > { %v5604_v12 = vunpack.i.h.bf16 %v5602_v63  ;;  %v5603_v49 = vunpack.i.l.bf16 %v5602_v63  ;;  %v2114_v63 = vsel %vm1709_vm0, %v1627_v34, %v5584_v7  ;;  %v2088_v5 = vsel %vm1713_vm2, %v2087_v46, %v5623_v54 }
 0x2b3   : > { %v2115_v9 = vsel %vm1711_vm1, %v2114_v63, %v5589_v10 }
 0x2b4   : > { %v2035_v20 = vsel %vm1713_vm2, %v2034_v40, %v5603_v49  ;;  %v2063_v47 = vsel %vm1713_vm2, %v2062_v17, %v5604_v12  ;;  %v2116_v60 = vsel %vm1713_vm2, %v2115_v9, %v5624_v15 }
 0x2b5   : > { %v2247_v59 = vpack.c.bf16 %v2063_v47, %v2035_v20 }
 0x2b7   : > { %2597 = vmatprep.mubr.bf16.mxu1 %v2247_v59 }
 0x2b8   : > { %2598 = vmatmul.mubr.bf16.gmra.mxu1 %v2246_v58 }
 0x2b9   : > { %v5607_v45 = vpop.permute.xlu0 %5606 }
 0x2ba   : > { %v5609_v30 = vunpack.i.h.bf16 %v5607_v45  ;;  %v5608_v28 = vunpack.i.l.bf16 %v5607_v45 }
 0x2bc   : > { %v2117_v49 = vsel %vm1709_vm0, %v1637_v39, %v5609_v30  ;;  %v2089_v40 = vsel %vm1709_vm0, %v1635_v52, %v5608_v28  ;;  %v2248_v39 = vpack.c.bf16 %v2116_v60, %v2088_v5  ;;  %v1641_v28 = vmax.f32 %v1483_v1, 0.0 }
 0x2bd   : > { %v5612_v43 = vpop.permute.xlu0 %5611 }
 0x2be   : > { %v5614_v3 = vunpack.i.h.bf16 %v5612_v43  ;;  %v5613_v25 = vunpack.i.l.bf16 %v5612_v43 }
 0x2c0   : > { %v2090_v34 = vsel %vm1711_vm1, %v2089_v40, %v5613_v25  ;;  %v2118_v56 = vsel %vm1711_vm1, %v2117_v49, %v5614_v3 }
 0x2c1   : > { %v5617_v12 = vpop.permute.xlu0 %5616 }
 0x2c2   : > { %v5619_v48 = vunpack.i.h.bf16 %v5617_v12  ;;  %v5618_v17 = vunpack.i.l.bf16 %v5617_v12 }
 0x2c4   : > { %v2091_v50 = vsel %vm1713_vm2, %v2090_v34, %v5618_v17  ;;  %v2119_v16 = vsel %vm1713_vm2, %v2118_v56, %v5619_v48 }
 0x2c5   : > { %v2249_v20 = vpack.c.bf16 %v2119_v16, %v2091_v50 }
 0x2c7   : > { %2605 = vmatprep.mubr.bf16.mxu1 %v2249_v20 }
 0x2c8   : > { %2606 = vmatmul.mubr.bf16.gmra.mxu1 %v2248_v39 }
 0x2c9   : > { %2646 = vmatprep.mubr.bf16.mxu1 %v6794_v38 }
 0x2d0   : > { %2647 = vmatmul.mubr.bf16.vlgmr.msra.gmra.mxu1 %v6796_v55 }
 0x2d1   : > { %2654 = vmatprep.mubr.bf16.mxu1 %v6848_v13  ;;  %v5627_v7 = vpop.permute.xlu1 %5626 }
 0x2d8   : > { %v5149_v42 = vpop.f32.mrf.mxu1  ;;  %2655 = vmatmul.mubr.bf16.gmra.mxu1 %v6850_v18 }
 0x2d9   : > { %2662 = vmatprep.mubr.bf16.mxu1 %v6962_v37 }
 0x2da   : > { %v5150_v52 = vpop.f32.mrf.mxu1 }
 0x2db   : > { %v7096_v47 = vadd.f32 %v5150_v52, %v5149_v42 }
 0x2dc   : > { %v7100_v31 = vpop.f32.mrf.mxu1 }
 0x2de   : > { %v7102_v45 = vpop.f32.mrf.mxu1 }
 0x2e0   : > { %2663 = vmatmul.mubr.bf16.gmra.mxu1 %v6964_v51  ;;  %v5632_v51 = vpop.permute.xlu1 %5631 }
 0x2e1   : > { %2670 = vmatprep.mubr.bf16.mxu1 %v7004_v33  ;;  %v5634_v2 = vunpack.i.h.bf16 %v5632_v51  ;;  %v5633_v43 = vunpack.i.l.bf16 %v5632_v51 }
 0x2e4   : > { %v5637_v10 = vpop.permute.xlu1 %5636 }
 0x2e5   : > { %v5638_v3 = vunpack.i.l.bf16 %v5637_v10 }
 0x2e8   : > { %v7104_v38 = vpop.f32.mrf.mxu1  ;;  %2671 = vmatmul.mubr.bf16.gmra.mxu1 %v7006_v53  ;;  %v5629_v53 = vunpack.i.h.bf16 %v5627_v7  ;;  %v5642_v24 = vpop.permute.xlu1 %5641 }
 0x2e9   : > { %2678 = vmatprep.mubr.bf16.mxu1 %v2247_v59  ;;  %v5628_v59 = vunpack.i.l.bf16 %v5627_v7 }
 0x2ea   : > { %v7107_v55 = vpop.f32.mrf.mxu1  ;;  %v2172_v11 = vsel %vm1709_vm0, %v1643_v62, %v5629_v53 }
 0x2eb   : > { %v2144_v35 = vsel %vm1709_vm0, %v1641_v28, %v5628_v59  ;;  %v2173_v9 = vsel %vm1711_vm1, %v2172_v11, %v5634_v2 }
 0x2ec   : > { %v5158_v13 = vpop.f32.mrf.mxu1  ;;  %v2145_v46 = vsel %vm1711_vm1, %v2144_v35, %v5633_v43  ;;  %v5647_v23 = vpop.permute.xlu1 %5646 }
 0x2ed   : > { %v2146_v34 = vsel %vm1713_vm2, %v2145_v46, %v5638_v3  ;;  %v5649_v52 = vunpack.i.h.bf16 %v5647_v23 }
 0x2ee   : > { %v5159_v18 = vpop.f32.mrf.mxu1 }
 0x2ef   : > { %v7109_v37 = vadd.f32 %v5159_v18, %v5158_v13  ;;  %v5648_v13 = vunpack.i.l.bf16 %v5647_v23 }
 0x2f0   : > { %2679 = vmatmul.mubr.bf16.gmra.mxu1 %v2246_v58  ;;  %v5639_v58 = vunpack.i.h.bf16 %v5637_v10  ;;  %v5682_v42 = vpop.permute.xlu1 %5681 }
 0x2f1   : > { %2686 = vmatprep.mubr.bf16.mxu1 %v2249_v20  ;;  %v5644_v20 = vunpack.i.h.bf16 %v5642_v24  ;;  %v5683_v1 = vunpack.i.l.bf16 %v5682_v42 }
 0x2f2   : > { %v2174_v56 = vsel %vm1713_vm2, %v2173_v9, %v5639_v58 }
 0x2f3   : > { %v2250_v16 = vpack.c.bf16 %v2174_v56, %v2146_v34  ;;  %v2228_v59 = vsel %vm1709_vm0, %v1647_v44, %v5644_v20  ;;  %v5919_v34 = vld [vmem:[%s7994_s5 + $0x60] sm:$0xff]  }
 0x2f4   : > { %v2229_v43 = vsel %vm1711_vm1, %v2228_v59, %v5649_v52  ;;  %v5920_v56 = vld [vmem:[%s7994_s5 + $0x20] sm:$0xff]  }
 0x2f8   : > { %2687 = vmatmul.mubr.bf16.gmra.mxu1 %v2248_v39  ;;  %v5643_v39 = vunpack.i.l.bf16 %v5642_v24 }
 0x2f9   : > { %v5652_v33 = vpop.permute.xlu0 %5651 }
 0x2fa   : > { %v5654_v15 = vunpack.i.h.bf16 %v5652_v33  ;;  %v5653_v54 = vunpack.i.l.bf16 %v5652_v33  ;;  %v5684_v33 = vunpack.i.h.bf16 %v5682_v42  ;;  %v2200_v10 = vsel %vm1709_vm0, %v1645_v61, %v5643_v39 }
 0x2fb   : > { %v2201_v2 = vsel %vm1711_vm1, %v2200_v10, %v5648_v13 }
 0x2fc   : > { %v2175_v49 = vsel %vm1709_vm0, %v1653_v14, %v5654_v15  ;;  %v2147_v40 = vsel %vm1709_vm0, %v1651_v0, %v5653_v54  ;;  %v2202_v61 = vsel %vm1713_vm2, %v2201_v2, %v5683_v1  ;;  %v2230_v58 = vsel %vm1713_vm2, %v2229_v43, %v5684_v33  ;;  %v7204_v33 = vld [vmem:[%s7993_s4] ss:$0 sm:$0xff] }
 0x2fd   : > { %v5657_v30 = vpop.permute.xlu0 %5656 }
 0x2fe   : > { %v5659_v25 = vunpack.i.h.bf16 %v5657_v30  ;;  %v5658_v63 = vunpack.i.l.bf16 %v5657_v30 }
 0x300   : > { %v2148_v19 = vsel %vm1711_vm1, %v2147_v40, %v5658_v63  ;;  %v2176_v62 = vsel %vm1711_vm1, %v2175_v49, %v5659_v25  ;;  %v5913_v49 = vld [vmem:[%s7994_s5 + $0x78] sm:$0xff]  }
 0x301   : > { %v5662_v12 = vpop.permute.xlu0 %5661  ;;  %v5914_v40 = vld [vmem:[%s7994_s5 + $0x38] sm:$0xff]   ;;  %5249 = vmatprep.subr.bf16.mxu1 %v5913_v49 }
 0x302   : > { %v5664_v48 = vunpack.i.h.bf16 %v5662_v12  ;;  %v5663_v17 = vunpack.i.l.bf16 %v5662_v12  ;;  %5250 = vmatpush3.bf16.msra.mxu1 %v5914_v40  ;;  %v5927_v40 = vld [vmem:[%s7994_s5 + $0x40] sm:$0xff]  }
 0x304   : > { %v2149_v5 = vsel %vm1713_vm2, %v2148_v19, %v5663_v17  ;;  %v2177_v60 = vsel %vm1713_vm2, %v2176_v62, %v5664_v48  ;;  %v5915_v48 = vld [vmem:[%s7994_s5 + $0x70] sm:$0xff]   ;;  %v5917_v19 = vld [vmem:[%s7994_s5 + $0x68] sm:$0xff]  }
 0x305   : > { %v2251_v50 = vpack.c.bf16 %v2177_v60, %v2149_v5  ;;  %v5916_v17 = vld [vmem:[%s7994_s5 + $0x30] sm:$0xff]   ;;  %5251 = vmatprep.subr.bf16.mxu1 %v5915_v48  ;;  %v5918_v62 = vld [vmem:[%s7994_s5 + $0x28] sm:$0xff]   ;;  %v5921_v5 = vld [vmem:[%s7994_s5 + $0x58] sm:$0xff]  }
 0x306   : > { %5252 = vmatpush3.bf16.msra.mxu1 %v5916_v17  ;;  %v5922_v60 = vld [vmem:[%s7994_s5 + $0x18] sm:$0xff]   ;;  %v5154_v17 = vadd.f32 %v7102_v45, %v7100_v31 }
 0x307   : > { %2694 = vmatprep.mubr.bf16.mxu1 %v2251_v50  ;;  %5253 = vmatprep.subr.bf16.mxu1 %v5917_v19 }
 0x308   : > { %2695 = vmatmul.mubr.bf16.gmra.mxu1 %v2250_v16 }
 0x309   : > { %v5667_v14 = vpop.permute.xlu0 %5666 }
 0x30a   : > { %v5669_v7 = vunpack.i.h.bf16 %v5667_v14  ;;  %v5668_v51 = vunpack.i.l.bf16 %v5667_v14  ;;  %5254 = vmatpush3.bf16.msra.mxu1 %v5918_v62 }
 0x30b   : > { %5255 = vmatprep.subr.bf16.mxu1 %v5919_v34  ;;  %v2568_v34 = vadd.f32 %v7096_v47, %v7204_v33 }
 0x30c   : > { %v2231_v28 = vsel %vm1709_vm0, %v1657_v32, %v5669_v7  ;;  %v2203_v15 = vsel %vm1709_vm0, %v1655_v29, %v5668_v51  ;;  %v2252_v32 = vpack.c.bf16 %v2230_v58, %v2202_v61  ;;  %v5926_v58 = vld [vmem:[%s7994_s5 + $0x8] sm:$0xff]  }
 0x30d   : > { %v5672_v18 = vpop.permute.xlu0 %5671 }
 0x30e   : > { %v5674_v41 = vunpack.i.h.bf16 %v5672_v18  ;;  %v5673_v53 = vunpack.i.l.bf16 %v5672_v18  ;;  %5256 = vmatpush3.bf16.msra.mxu1 %v5920_v56  ;;  %v5929_v56 = vld [vmem:[%s7994_s5 + $0xf8] sm:$0xff]  }
 0x30f   : > { %5257 = vmatprep.subr.bf16.mxu1 %v5921_v5 }
 0x310   : > { %v2204_v44 = vsel %vm1711_vm1, %v2203_v15, %v5673_v53  ;;  %v2232_v8 = vsel %vm1711_vm1, %v2231_v28, %v5674_v41  ;;  %v2552_v53 = vadd.f32 %v7027_v57, %v7204_v33  ;;  %v5924_v57 = vld [vmem:[%s7994_s5 + $0x10] sm:$0xff]  }
 0x311   : > { %v5677_v30 = vpop.permute.xlu0 %5676 }
 0x312   : > { %v5679_v26 = vunpack.i.h.bf16 %v5677_v30  ;;  %v5678_v54 = vunpack.i.l.bf16 %v5677_v30  ;;  %5258 = vmatpush3.bf16.msra.mxu1 %v5922_v60  ;;  %v5145_v30 = vadd.f32 %v7045_v6, %v7040_v4  ;;  %v2571_v60 = vadd.f32 %v5154_v17, %v7204_v33 }
 0x314   : > { %v2205_v3 = vsel %vm1713_vm2, %v2204_v44, %v5678_v54  ;;  %v2233_v21 = vsel %vm1713_vm2, %v2232_v8, %v5679_v26  ;;  %v2555_v26 = vadd.f32 %v7030_v22, %v7204_v33  ;;  %v5923_v54 = vld [vmem:[%s7994_s5 + $0x50] sm:$0xff]   ;;  %v5925_v44 = vld [vmem:[%s7994_s5 + $0x48] sm:$0xff]   ;;  %v2560_v4 = vadd.f32 %v5145_v30, %v7204_v33 }
 0x315   : > { %v2253_v25 = vpack.c.bf16 %v2233_v21, %v2205_v3  ;;  %5259 = vmatprep.subr.bf16.mxu1 %v5923_v54 }
 0x316   : > { %5260 = vmatpush3.bf16.msra.mxu1 %v5924_v57 }
 0x317   : > { %2702 = vmatprep.mubr.bf16.mxu1 %v2253_v25  ;;  %5261 = vmatprep.subr.bf16.mxu1 %v5925_v44  ;;  %v2563_v25 = vadd.f32 %v7048_v36, %v7204_v33  ;;  %v5928_v36 = vld [vmem:[%s7994_s5] sm:$0xff]  }
 0x318   : > { %2703 = vmatmul.mubr.bf16.gmra.mxu1 %v2252_v32 }
 0x31a   : > { %5262 = vmatpush3.bf16.msra.mxu1 %v5926_v58 }
 0x31b   : > { %5263 = vmatprep.subr.bf16.mxu1 %v5927_v40 }
 0x31e   : > { %5264 = vmatpush3.bf16.msra.mxu1 %v5928_v36 }
 0x31f   : > { %5277 = vmatprep.subr.bf16.mxu1 %v5929_v56 }
 0x328   : > { %v5161_v27 = vpop.f32.mrf.mxu1 }
 0x32a   : > { %v5162_v29 = vpop.f32.mrf.mxu1 }
 0x32b   : > { %v7151_v63 = vadd.f32 %v5162_v29, %v5161_v27 }
 0x32c   : > { %v7153_v0 = vpop.f32.mrf.mxu1 }
 0x32e   : > { %v7155_v11 = vpop.f32.mrf.mxu1 }
 0x338   : > { %v7157_v35 = vpop.f32.mrf.mxu1 }
 0x33a   : > { %v7159_v24 = vpop.f32.mrf.mxu1 }
 0x33c   : > { %v5170_v46 = vpop.f32.mrf.mxu1 }
 0x33e   : > { %v5171_v9 = vpop.f32.mrf.mxu1 }
 0x33f   : > { %v7161_v12 = vadd.f32 %v5171_v9, %v5170_v46 }
 0x378   : > { %v5173_v50 = vpop.f32.mrf.mxu1 }
 0x37a   : > { %v5174_v23 = vpop.f32.mrf.mxu1 }
 0x37b   : > { %v7193_v16 = vadd.f32 %v5174_v23, %v5173_v50  ;;  %v5157_v50 = vadd.f32 %v7107_v55, %v7104_v38 }
 0x37c   : > { %v5176_v14 = vpop.f32.mrf.mxu1 }
 0x37d   : > { %v2576_v47 = vadd.f32 %v5157_v50, %v7204_v33 }
 0x37e   : > { %v5177_v20 = vpop.f32.mrf.mxu1 }
 0x37f   : > { %v7195_v39 = vadd.f32 %v5177_v20, %v5176_v14 }
 0x388   : > { %v5179_v42 = vpop.f32.mrf.mxu1 }
 0x38a   : > { %v5180_v52 = vpop.f32.mrf.mxu1 }
 0x38b   : > { %v7197_v13 = vadd.f32 %v5180_v52, %v5179_v42 }
 0x38c   : > { %v5182_v18 = vpop.f32.mrf.mxu1 }
 0x38e   : > { %v5183_v7 = vpop.f32.mrf.mxu1 }
 0x38f   : > { %v7199_v51 = vadd.f32 %v5183_v7, %v5182_v18 }
 0x390   : > { %v5201_v1 = vpop.f32.mrf.mxu1 }
 0x392   : > { %v5202_v41 = vpop.f32.mrf.mxu1 }
 0x393   : > { %v5203_v59 = vadd.f32 %v5202_v41, %v5201_v1 }
 0x394   : > { %v5204_v10 = vpop.f32.mrf.mxu1 }
 0x395   : > { %v7208_v2 = vadd.f32 %v5203_v59, %v2552_v53 }
 0x396   : > { %v5205_v43 = vpop.f32.mrf.mxu1 }
 0x397   : > { %v5206_v28 = vadd.f32 %v5205_v43, %v5204_v10  ;;  %v5166_v10 = vadd.f32 %v7155_v11, %v7153_v0 }
 0x398   : > { %v5207_v15 = vpop.f32.mrf.mxu1 }
 0x399   : > { %v7224_v6 = vadd.f32 %v5206_v28, %v2555_v26  ;;  %v2584_v28 = vadd.f32 %v7151_v63, %v7204_v33  ;;  %v2587_v54 = vadd.f32 %v5166_v10, %v7204_v33 }
 0x39a   : > { %v5208_v8 = vpop.f32.mrf.mxu1 }
 0x39b   : > { %v5209_v61 = vadd.f32 %v5208_v8, %v5207_v15  ;;  %v2712_v32 = vmax.f32 %v7224_v6, 0.0  ;;  %v5169_v15 = vadd.f32 %v7159_v24, %v7157_v35  ;;  %v5931_v6 = vld [vmem:[%s7994_s5 + $0xf0] sm:$0xff]  }
 0x39c   : > { %v5210_v22 = vpop.f32.mrf.mxu1 }
 0x39d   : > { %v7229_v3 = vadd.f32 %v5209_v61, %v2560_v4  ;;  %v2579_v61 = vadd.f32 %v7109_v37, %v7204_v33  ;;  %v2592_v11 = vadd.f32 %v5169_v15, %v7204_v33 }
 0x39e   : > { %v5211_v21 = vpop.f32.mrf.mxu1 }
 0x39f   : > { %v2713_v27 = vmax.f32 %v7229_v3, 0.0  ;;  %v5212_v29 = vadd.f32 %v5211_v21, %v5210_v22  ;;  %v5932_v3 = vld [vmem:[%s7994_s5 + $0xb0] sm:$0xff]  }
 0x3a0   : > { %v5213_v46 = vpop.f32.mrf.mxu1 }
 0x3a1   : > { %v7235_v9 = vadd.f32 %v5212_v29, %v2563_v25  ;;  %v5690_v49 = vpack.i.bf16 %v2713_v27, %v2712_v32 }
 0x3a2   : > { %v5214_v48 = vpop.f32.mrf.mxu1 }
 0x3a3   : > { %v5215_v19 = vadd.f32 %v5214_v48, %v5213_v46  ;;  %5691 = vrot.lane.b32.xlu1 %v5690_v49, %s6212_s26  ;;  %v2595_v46 = vadd.f32 %v7161_v12, %v7204_v33 }
 0x3a4   : > { %v5216_v62 = vpop.f32.mrf.mxu1 }
 0x3a5   : > { %v7258_v31 = vadd.f32 %v5215_v19, %v2568_v34  ;;  %v2600_v34 = vadd.f32 %v7193_v16, %v7204_v33 }
 0x3a6   : > { %v5217_v5 = vpop.f32.mrf.mxu1 }
 0x3a7   : > { %v5218_v45 = vadd.f32 %v5217_v5, %v5216_v62  ;;  %v2715_v42 = vmax.f32 %v7258_v31, 0.0  ;;  %v5938_v31 = vld [vmem:[%s7994_s5 + $0x98] sm:$0xff]  }
 0x3a8   : > { %v5219_v23 = vpop.f32.mrf.mxu1 }
 0x3a9   : > { %v7260_v14 = vadd.f32 %v5218_v45, %v2571_v60 }
 0x3aa   : > { %v5220_v20 = vpop.f32.mrf.mxu1 }
 0x3ab   : > { %v2716_v52 = vmax.f32 %v7260_v14, 0.0  ;;  %v5221_v18 = vadd.f32 %v5220_v20, %v5219_v23  ;;  %v2603_v20 = vadd.f32 %v7195_v39, %v7204_v33  ;;  %v5939_v14 = vld [vmem:[%s7994_s5 + $0xd0] sm:$0xff]  }
 0x3ac   : > { %v5222_v7 = vpop.f32.mrf.mxu1 }
 0x3ad   : > { %v2673_v1 = vadd.f32 %v5221_v18, %v2576_v47  ;;  %v5685_v38 = vpack.i.bf16 %v2716_v52, %v2715_v42  ;;  %v2608_v18 = vadd.f32 %v7197_v13, %v7204_v33 }
 0x3ae   : > { %v5223_v55 = vpop.f32.mrf.mxu1 }
 0x3af   : > { %v7269_v41 = vmax.f32 %v2673_v1, 0.0  ;;  %5686 = vrot.lane.b32.xlu0 %v5685_v38, %s6212_s26  ;;  %v5224_v57 = vadd.f32 %v5223_v55, %v5222_v7 }
 0x3b0   : > { %v5225_v53 = vpop.f32.mrf.mxu1 }
 0x3b1   : > { %2736 = vrot.lane.b32.xlu1 %v7269_v41, %s6212_s26  ;;  %v7288_v63 = vadd.f32 %v5224_v57, %v2579_v61  ;;  %v2711_v57 = vmax.f32 %v7208_v2, 0.0  ;;  %v5930_v2 = vld [vmem:[%s7994_s5 + $0xb8] sm:$0xff]  }
 0x3b2   : > { %v5226_v59 = vpop.f32.mrf.mxu1 }
 0x3b3   : > { %v5227_v43 = vadd.f32 %v5226_v59, %v5225_v53  ;;  %v2718_v49 = vmax.f32 %v7288_v63, 0.0  ;;  %v2611_v53 = vadd.f32 %v7199_v51, %v7204_v33  ;;  %v2714_v51 = vmax.f32 %v7235_v9, 0.0 }
 0x3b4   : > { %v5228_v30 = vpop.f32.mrf.mxu1 }
 0x3b5   : > { %v7281_v44 = vadd.f32 %v5227_v43, %v2584_v28 }
 0x3b6   : > { %v5229_v26 = vpop.f32.mrf.mxu1 }
 0x3b7   : > { %v5230_v8 = vadd.f32 %v5229_v26, %v5228_v30  ;;  %v2719_v35 = vmax.f32 %v7281_v44, 0.0  ;;  %v5943_v44 = vld [vmem:[%s7994_s5 + $0xc0] sm:$0xff]  }
 0x3b8   : > { %v5231_v4 = vpop.f32.mrf.mxu1 }
 0x3b9   : > { %v7285_v0 = vadd.f32 %v5230_v8, %v2587_v54 }
 0x3ba   : > { %v5232_v22 = vpop.f32.mrf.mxu1 }
 0x3bb   : > { %v2720_v24 = vmax.f32 %v7285_v0, 0.0  ;;  %v5233_v58 = vadd.f32 %v5232_v22, %v5231_v4  ;;  %v5942_v0 = vld [vmem:[%s7994_s5 + $0x88] sm:$0xff]  }
 0x3bc   : > { %v5234_v21 = vpop.f32.mrf.mxu1 }
 0x3bd   : > { %v2689_v25 = vadd.f32 %v5233_v58, %v2592_v11  ;;  %v5695_v29 = vpack.i.bf16 %v2719_v35, %v2720_v24 }
 0x3be   : > { %v5235_v37 = vpop.f32.mrf.mxu1 }
 0x3bf   : > { %v7299_v40 = vmax.f32 %v2689_v25, 0.0  ;;  %v5236_v48 = vadd.f32 %v5235_v37, %v5234_v21  ;;  %5696 = vrot.lane.b32.xlu0 %v5695_v29, %s6212_s26  ;;  %v5935_v25 = vld [vmem:[%s7994_s5 + $0xe0] sm:$0xff]  }
 0x3c1   : > { %v7302_v36 = vadd.f32 %v5236_v48, %v2595_v46  ;;  %v5700_v17 = vpack.i.bf16 %v2718_v49, %v7299_v40  ;;  %v5936_v46 = vld [vmem:[%s7994_s5 + $0xa0] sm:$0xff]  }
 0x3c3   : > { %5701 = vrot.lane.b32.xlu0 %v5700_v17, %s6212_s26  ;;  %v2722_v19 = vmax.f32 %v7302_v36, 0.0  ;;  %v5954_v36 = vld [vmem:[%s7998_s9 + $0x214] ss:$12 sps:$4 sm:$0xff]  }
 0x3c7   : > { %2779 = vrot.lane.b32.xlu0 %v2722_v19, %s6212_s26 }
 0x3c8   : > { %v5237_v12 = vpop.f32.mrf.mxu1 }
 0x3ca   : > { %v5238_v62 = vpop.f32.mrf.mxu1 }
 0x3cb   : > { %v5239_v56 = vadd.f32 %v5238_v62, %v5237_v12  ;;  %v5937_v12 = vld [vmem:[%s7994_s5 + $0xd8] sm:$0xff]  }
 0x3cc   : > { %v5240_v60 = vpop.f32.mrf.mxu1 }
 0x3cd   : > { %v7314_v5 = vadd.f32 %v5239_v56, %v2600_v34 }
 0x3ce   : > { %v5241_v50 = vpop.f32.mrf.mxu1 }
 0x3cf   : > { %v5242_v45 = vadd.f32 %v5241_v50, %v5240_v60 }
 0x3d1   : > { %v7320_v7 = vadd.f32 %v5242_v45, %v2603_v20  ;;  %v5940_v20 = vld [vmem:[%s7994_s5 + $0x90] sm:$0xff]  }
 0x3d3   : > { %v2724_v59 = vmax.f32 %v7320_v7, 0.0  ;;  %v5951_v7 = vld [vmem:[%s7998_s9 + $0x22c] ss:$12 sps:$4 sm:$0xff]  }
 0x3d4   : > { %4457 = vmatprep.subr.bf16.mxu0 %v5951_v7 }
 0x3d8   : > { %v5243_v23 = vpop.f32.mrf.mxu1 }
 0x3da   : > { %v5244_v47 = vpop.f32.mrf.mxu1 }
 0x3db   : > { %v5245_v1 = vadd.f32 %v5244_v47, %v5243_v23  ;;  %v5941_v47 = vld [vmem:[%s7994_s5 + $0xc8] sm:$0xff]  }
 0x3dc   : > { %v5246_v38 = vpop.f32.mrf.mxu1 }
 0x3dd   : > { %v2705_v55 = vadd.f32 %v5245_v1, %v2608_v18  ;;  %v5945_v18 = vld [vmem:[%s7994_s5 + $0x118] sm:$0xff]  }
 0x3de   : > { %v5247_v16 = vpop.f32.mrf.mxu1 }
 0x3df   : > { %v2725_v10 = vmax.f32 %v2705_v55, 0.0  ;;  %v5248_v43 = vadd.f32 %v5247_v16, %v5246_v38  ;;  %v5946_v55 = vld [vmem:[%s7994_s5 + $0x110] sm:$0xff]   ;;  %v5947_v16 = vld [vmem:[%s7994_s5 + $0x108] sm:$0xff]  }
 0x3e1   : > { %v2708_v30 = vadd.f32 %v5248_v43, %v2611_v53  ;;  %v5705_v39 = vpack.i.bf16 %v2725_v10, %v2724_v59  ;;  %v2723_v43 = vmax.f32 %v7314_v5, 0.0  ;;  %v5949_v5 = vld [vmem:[%s7998_s9 + $0x228] ss:$12 sps:$4 sm:$0xff]  }
 0x3e2   : > { %4458 = vmatpush1.bf16.msra.mxu0 %v5949_v5 }
 0x3e3   : > { %v2726_v28 = vmax.f32 %v2708_v30, 0.0  ;;  %5706 = vrot.lane.b32.xlu1 %v5705_v39, %s6212_s26  ;;  %4459 = vmatprep.subr.bf16.mxu0 %v5954_v36 }
 0x3e5   : > { %v7328_v13 = vpack.c.bf16 %v2726_v28, %v2725_v10 }
 0x415   : > { %v5692_v15 = vpop.permute.xlu1 %5691 }
 0x416   : > { %v5694_v26 = vunpack.i.h.bf16 %v5692_v15  ;;  %v5693_v54 = vunpack.i.l.bf16 %v5692_v15 }
 0x418   : > { %v2763_v61 = vsel %vm1711_vm1, %v2712_v32, %v5694_v26  ;;  %v2743_v11 = vsel %vm1711_vm1, %v2711_v57, %v5693_v54  ;;  %v5933_v32 = vld [vmem:[%s7994_s5 + $0xe8] sm:$0xff]  }
 0x419   : > { %v2789_v9 = vpack.c.bf16 %v2763_v61, %v2743_v11  ;;  %v5966_v61 = vld [vmem:[%s7998_s9 + $0x1e4] ss:$12 sps:$4 sm:$0xff]  }
 0x41a   : > { %v5969_v11 = vld [vmem:[%s7996_s7 + $0xa4] ss:$16 sps:$4 sm:$0xff]  }
 0x421   : > { %v5687_v8 = vpop.permute.xlu0 %5686 }
 0x422   : > { %v5689_v33 = vunpack.i.h.bf16 %v5687_v8  ;;  %v5688_v4 = vunpack.i.l.bf16 %v5687_v8  ;;  %v2793_v8 = vpack.c.bf16 %v2722_v19, %v7299_v40  ;;  %v5957_v19 = vld [vmem:[%s7998_s9 + $0x1fc] ss:$12 sps:$4 sm:$0xff]  }
 0x423   : > { %v2737_v29 = vpop.permute.xlu1 %2736 }
 0x424   : > { %v2744_v22 = vsel %vm1711_vm1, %v2713_v27, %v5688_v4  ;;  %v2764_v58 = vsel %vm1711_vm1, %v2714_v51, %v5689_v33  ;;  %v5934_v27 = vld [vmem:[%s7994_s5 + $0xa8] sm:$0xff]   ;;  %v2775_v62 = vsel %vm1711_vm1, %v2715_v42, %v5689_v33  ;;  %v2745_v34 = vsel %vm1711_vm1, %v2716_v52, %v2737_v29  ;;  %v5963_v51 = vld [vmem:[%s7996_s7 + $0xc4] ss:$16 sps:$4 sm:$0xff]   ;;  %v5961_v4 = vld [vmem:[%s7996_s7 + $0xc0] ss:$16 sps:$4 sm:$0xff]  }
 0x425   : > { %v2790_v21 = vpack.c.bf16 %v2764_v58, %v2744_v22  ;;  %v2794_v23 = vpack.c.bf16 %v2745_v34, %v2775_v62  ;;  %v5955_v33 = vld [vmem:[%s7998_s9 + $0x1f8] ss:$12 sps:$4 sm:$0xff]   ;;  %v5964_v22 = vld [vmem:[%s7998_s9 + $0x1e0] ss:$12 sps:$4 sm:$0xff]  }
 0x426   : > { %v5967_v58 = vld [vmem:[%s7996_s7 + $0xa0] ss:$16 sps:$4 sm:$0xff]   ;;  %v5978_v29 = vld [vmem:[%s7996_s7 + $0x44] ss:$16 sps:$4 sm:$0xff]  }
 0x427   : > { %3132 = vmatprep.mubr.bf16.mxu1 %v2790_v21  ;;  %v5987_v21 = vld [vmem:[%s7998_s9 + $0x1cc] ss:$12 sps:$4 sm:$0xff]   ;;  %v5990_v62 = vld [vmem:[%s7996_s7 + $0x1e4] ss:$16 sps:$4 sm:$0xff]  }
 0x428   : > { %3133 = vmatmul.mubr.bf16.vlgmr.msra.gmra.mxu1 %v2789_v9  ;;  %v5985_v9 = vld [vmem:[%s7998_s9 + $0x1c8] ss:$12 sps:$4 sm:$0xff]  }
 0x429   : > { %5278 = vmatpush3.bf16.msra.mxu1 %v5930_v2  ;;  %v5972_v2 = vld [vmem:[%s7996_s7 + $0x84] ss:$16 sps:$4 sm:$0xff]  }
 0x42a   : > { %5279 = vmatprep.subr.bf16.mxu1 %v5931_v6  ;;  %v5970_v6 = vld [vmem:[%s7996_s7 + $0x80] ss:$16 sps:$4 sm:$0xff]  }
 0x42d   : > { %5280 = vmatpush3.bf16.msra.mxu1 %v5932_v3  ;;  %v6008_v3 = vld [vmem:[%s7998_s9 + $0x1b4] ss:$12 sps:$4 sm:$0xff]  }
 0x42e   : > { %5281 = vmatprep.subr.bf16.mxu1 %v5933_v32  ;;  %v5975_v32 = vld [vmem:[%s7996_s7 + $0x64] ss:$16 sps:$4 sm:$0xff]  }
 0x431   : > { %5282 = vmatpush3.bf16.msra.mxu1 %v5934_v27  ;;  %v5697_v37 = vpop.permute.xlu0 %5696  ;;  %v6006_v27 = vld [vmem:[%s7998_s9 + $0x1b0] ss:$12 sps:$4 sm:$0xff]  }
 0x432   : > { %v5699_v48 = vunpack.i.h.bf16 %v5697_v37  ;;  %v5698_v17 = vunpack.i.l.bf16 %v5697_v37  ;;  %5283 = vmatprep.subr.bf16.mxu1 %v5935_v25  ;;  %v5973_v25 = vld [vmem:[%s7996_s7 + $0x60] ss:$16 sps:$4 sm:$0xff]  }
 0x433   : > { %v5976_v37 = vld [vmem:[%s7996_s7 + $0x40] ss:$16 sps:$4 sm:$0xff]  }
 0x434   : > { %v2776_v56 = vsel %vm1711_vm1, %v7269_v41, %v5699_v48  ;;  %v2786_v60 = vsel %vm1711_vm1, %v2718_v49, %v5698_v17  ;;  %v2746_v63 = vsel %vm1711_vm1, %v2719_v35, %v5698_v17  ;;  %v5979_v48 = vld [vmem:[%s7996_s7 + $0x20] ss:$16 sps:$4 sm:$0xff]   ;;  %v5984_v17 = vld [vmem:[%s7996_s7 + $0x4] ss:$16 sps:$4 sm:$0xff]  }
 0x435   : > { %5284 = vmatpush3.bf16.msra.mxu1 %v5936_v46  ;;  %v5702_v50 = vpop.permute.xlu0 %5701  ;;  %v2795_v45 = vpack.c.bf16 %v2786_v60, %v2776_v56  ;;  %v5981_v46 = vld [vmem:[%s7996_s7 + $0x24] ss:$16 sps:$4 sm:$0xff]   ;;  %v5991_v60 = vld [vmem:[%s7996_s7 + $0x1c0] ss:$16 sps:$4 sm:$0xff]  }
 0x436   : > { %v5703_v42 = vunpack.i.l.bf16 %v5702_v50  ;;  %5285 = vmatprep.subr.bf16.mxu1 %v5937_v12  ;;  %v5704_v35 = vunpack.i.h.bf16 %v5702_v50  ;;  %v5982_v12 = vld [vmem:[%s7996_s7] ss:$16 sps:$4 sm:$0xff]   ;;  %v5993_v56 = vld [vmem:[%s7996_s7 + $0x1c4] ss:$16 sps:$4 sm:$0xff]  }
 0x437   : > { %3140 = vmatprep.mubr.bf16.mxu1 %v2795_v45  ;;  %v5996_v50 = vld [vmem:[%s7996_s7 + $0x1a4] ss:$16 sps:$4 sm:$0xff]   ;;  %v5994_v45 = vld [vmem:[%s7996_s7 + $0x1a0] ss:$16 sps:$4 sm:$0xff]  }
 0x438   : > { %3141 = vmatmul.mubr.bf16.gmra.mxu1 %v2794_v23  ;;  %v2766_v52 = vsel %vm1711_vm1, %v2720_v24, %v5703_v42  ;;  %v5944_v24 = vld [vmem:[%s7994_s5 + $0x80] sm:$0xff]   ;;  %v2765_v1 = vsel %vm1711_vm1, %v7269_v41, %v5704_v35 }
 0x439   : > { %5286 = vmatpush3.bf16.msra.mxu1 %v5938_v31  ;;  %v2792_v49 = vpack.c.bf16 %v2766_v52, %v2746_v63  ;;  %v2791_v38 = vpack.c.bf16 %v2765_v1, %v2745_v34  ;;  %v5948_v41 = vld [vmem:[%s7994_s5 + $0x100] sm:$0xff]   ;;  %v2780_v53 = vpop.permute.xlu0 %2779 }
 0x43a   : > { %5287 = vmatprep.subr.bf16.mxu1 %v5939_v14  ;;  %v2787_v28 = vsel %vm1711_vm1, %v7299_v40, %v2780_v53  ;;  %v5952_v40 = vld [vmem:[%s7998_s9 + $0x210] ss:$12 sps:$4 sm:$0xff]   ;;  %v5999_v31 = vld [vmem:[%s7996_s7 + $0x184] ss:$16 sps:$4 sm:$0xff]  }
 0x43b   : > { %3181 = vmatprep.mubr.bf16.mxu1 %v2792_v49  ;;  %v2796_v57 = vpack.c.bf16 %v2787_v28, %v2766_v52  ;;  %4460 = vmatpush1.bf16.msra.mxu0 %v5952_v40  ;;  %v5988_v34 = vld [vmem:[%s7996_s7 + $0x1e0] ss:$16 sps:$4 sm:$0xff]   ;;  %v6002_v42 = vld [vmem:[%s7996_s7 + $0x164] ss:$16 sps:$4 sm:$0xff]  }
 0x43c   : > { %4461 = vmatprep.subr.bf16.mxu0 %v5957_v19  ;;  %v5997_v23 = vld [vmem:[%s7996_s7 + $0x180] ss:$16 sps:$4 sm:$0xff]   ;;  %v6005_v52 = vld [vmem:[%s7996_s7 + $0x144] ss:$16 sps:$4 sm:$0xff]  }
 0x43d   : > { %5288 = vmatpush3.bf16.msra.mxu1 %v5940_v20  ;;  %v6000_v14 = vld [vmem:[%s7996_s7 + $0x160] ss:$16 sps:$4 sm:$0xff]   ;;  %v6011_v49 = vld [vmem:[%s7996_s7 + $0x124] ss:$16 sps:$4 sm:$0xff]  }
 0x43e   : > { %5289 = vmatprep.subr.bf16.mxu1 %v5941_v47  ;;  %v6003_v63 = vld [vmem:[%s7996_s7 + $0x140] ss:$16 sps:$4 sm:$0xff]  }
 0x43f   : > { %4462 = vmatpush1.bf16.msra.mxu0 %v5955_v33  ;;  %v6009_v47 = vld [vmem:[%s7996_s7 + $0x120] ss:$16 sps:$4 sm:$0xff]  }
 0x440   : > { %4463 = vmatprep.subr.bf16.mxu0 %v5966_v61 }
 0x441   : > { %5290 = vmatpush3.bf16.msra.mxu1 %v5942_v0  ;;  %v4919_v0 = vld [vmem:[%s7995_s6] ss:$0 sm:$0xff] }
 0x442   : > { %5291 = vmatprep.subr.bf16.mxu1 %v5943_v44 }
 0x443   : > { %4464 = vmatpush1.bf16.msra.mxu0 %v5964_v22 }
 0x444   : > { %4465 = vmatprep.subr.bf16.mxu0 %v5987_v21 }
 0x445   : > { %5292 = vmatpush3.bf16.msra.mxu1 %v5944_v24 }
 0x446   : > { %5355 = vmatprep.subr.bf16.mxu1 %v5945_v18 }
 0x447   : > { %4466 = vmatpush1.bf16.msra.mxu0 %v5985_v9 }
 0x448   : > { %3182 = vmatmul.mubr.bf16.vlgmr.msra.gmra.mxu1 %v2791_v38  ;;  %4467 = vmatprep.subr.bf16.mxu0 %v6008_v3 }
 0x449   : > { %5356 = vmatpush3.bf16.msra.mxu1 %v5945_v18 }
 0x44a   : > { %5357 = vmatprep.subr.bf16.mxu1 %v5946_v55 }
 0x44b   : > { %4468 = vmatpush1.bf16.msra.mxu0 %v6006_v27 }
 0x44d   : > { %5358 = vmatpush3.bf16.msra.mxu1 %v5946_v55 }
 0x44e   : > { %5359 = vmatprep.subr.bf16.mxu1 %v5947_v16 }
 0x451   : > { %5360 = vmatpush3.bf16.msra.mxu1 %v5947_v16 }
 0x452   : > { %5361 = vmatprep.subr.bf16.mxu1 %v5948_v41 }
 0x455   : > { %v5707_v10 = vpop.permute.xlu1 %5706  ;;  %5362 = vmatpush3.bf16.msra.mxu1 %v5948_v41 }
 0x456   : > { %v5709_v30 = vunpack.i.h.bf16 %v5707_v10  ;;  %v5708_v39 = vunpack.i.l.bf16 %v5707_v10 }
 0x458   : > { %v2777_v15 = vsel %vm1711_vm1, %v2723_v43, %v5708_v39  ;;  %v2788_v26 = vsel %vm1711_vm1, %v2724_v59, %v5709_v30  ;;  %v5958_v59 = vld [vmem:[%s7996_s7 + $0xe0] ss:$16 sps:$4 sm:$0xff]  }
 0x459   : > { %v2797_v54 = vpack.c.bf16 %v2788_v26, %v2777_v15 }
 0x45b   : > { %3189 = vmatprep.mubr.bf16.mxu1 %v2797_v54 }
 0x45c   : > { %3190 = vmatmul.mubr.bf16.gmra.mxu1 %v2796_v57 }
 0x45d   : > { %5363 = vmatprep.mubr.msk.bf16.mxu1 %vm1711_vm1, %v2793_v8 }
 0x464   : > { %5364 = vmatmul.mubr.msk.bf16.vlgmr.msra.gmra.mxu1 %vm1711_vm1, %v7328_v13  ;;  %v5960_v13 = vld [vmem:[%s7996_s7 + $0xe4] ss:$16 sps:$4 sm:$0xff]  }
 0x465   : > { %3669 = vmatprep.subr.bf16.mxu1 %v5960_v13 }
 0x466   : > { %3670 = vmatpush1.bf16.msra.mxu1 %v5958_v59 }
 0x467   : > { %3671 = vmatprep.subr.bf16.mxu1 %v5963_v51  ;;  %v6014_v51 = vld [vmem:[%s7996_s7 + $0x104] ss:$16 sps:$4 sm:$0xff]  }
 0x46a   : > { %3672 = vmatpush1.bf16.msra.mxu1 %v5961_v4 }
 0x46b   : > { %3673 = vmatprep.subr.bf16.mxu1 %v5969_v11  ;;  %v6012_v11 = vld [vmem:[%s7996_s7 + $0x100] ss:$16 sps:$4 sm:$0xff]  }
 0x46e   : > { %3674 = vmatpush1.bf16.msra.mxu1 %v5967_v58 }
 0x46f   : > { %3675 = vmatprep.subr.bf16.mxu1 %v5972_v2 }
 0x472   : > { %3676 = vmatpush1.bf16.msra.mxu1 %v5970_v6  ;;  %v6017_v6 = vld [vmem:[%s7996_s7 + $0xec] ss:$16 sps:$4 sm:$0xff]  }
 0x473   : > { %3677 = vmatprep.subr.bf16.mxu1 %v5975_v32 }
 0x476   : > { %3678 = vmatpush1.bf16.msra.mxu1 %v5973_v25 }
 0x477   : > { %3679 = vmatprep.subr.bf16.mxu1 %v5978_v29 }
 0x47a   : > { %3680 = vmatpush1.bf16.msra.mxu1 %v5976_v37 }
 0x47b   : > { %3681 = vmatprep.subr.bf16.mxu1 %v5981_v46 }
 0x47e   : > { %3682 = vmatpush1.bf16.msra.mxu1 %v5979_v48  ;;  %v6027_v48 = vld [vmem:[%s7998_s9 + $0x198] ss:$12 sps:$4 sm:$0xff]  }
 0x47f   : > { %3683 = vmatprep.subr.bf16.mxu1 %v5984_v17  ;;  %v6029_v17 = vld [vmem:[%s7998_s9 + $0x19c] ss:$12 sps:$4 sm:$0xff]  }
 0x480   : > { %4469 = vmatprep.subr.bf16.mxu0 %v6029_v17  ;;  %v6093_v17 = vld [vmem:[%s7998_s9 + $0x48] ss:$12 sps:$4 sm:$0xff]  }
 0x481   : > { %4470 = vmatpush1.bf16.msra.mxu0 %v6027_v48  ;;  %v6095_v48 = vld [vmem:[%s7998_s9 + $0x4c] ss:$12 sps:$4 sm:$0xff]  }
 0x482   : > { %3684 = vmatpush1.bf16.msra.mxu1 %v5982_v12  ;;  %v6051_v12 = vld [vmem:[%s7998_s9 + $0x180] ss:$12 sps:$4 sm:$0xff]  }
 0x483   : > { %3685 = vmatprep.subr.bf16.mxu1 %v5990_v62  ;;  %v6053_v62 = vld [vmem:[%s7998_s9 + $0x184] ss:$12 sps:$4 sm:$0xff]  }
 0x484   : > { %4471 = vmatprep.subr.bf16.mxu0 %v6053_v62  ;;  %v6096_v62 = vld [vmem:[%s7998_s9 + $0x30] ss:$12 sps:$4 sm:$0xff]  }
 0x485   : > { %4472 = vmatpush1.bf16.msra.mxu0 %v6051_v12  ;;  %v6098_v12 = vld [vmem:[%s7998_s9 + $0x34] ss:$12 sps:$4 sm:$0xff]  }
 0x486   : > { %3686 = vmatpush2.bf16.msra.mxu1 %v5988_v34  ;;  %v6069_v34 = vld [vmem:[%s7998_s9 + $0x2e8] ss:$12 sps:$4 sm:$0xff]  }
 0x487   : > { %3687 = vmatprep.subr.bf16.mxu1 %v5993_v56  ;;  %v6071_v56 = vld [vmem:[%s7998_s9 + $0x2ec] ss:$12 sps:$4 sm:$0xff]  }
 0x488   : > { %4473 = vmatprep.subr.bf16.mxu0 %v6071_v56  ;;  %v6142_v56 = vld [vmem:[%s7998_s9 + $0x258] ss:$12 sps:$4 sm:$0xff]  }
 0x489   : > { %4474 = vmatpush2.bf16.msra.mxu0 %v6069_v34  ;;  %v6101_v34 = vld [vmem:[%s7998_s9 + $0x1c] ss:$12 sps:$4 sm:$0xff]  }
 0x48a   : > { %3688 = vmatpush2.bf16.msra.mxu1 %v5991_v60  ;;  %v6074_v60 = vld [vmem:[%s7998_s9 + $0x2d4] ss:$12 sps:$4 sm:$0xff]  }
 0x48b   : > { %3689 = vmatprep.subr.bf16.mxu1 %v5996_v50  ;;  %v6072_v50 = vld [vmem:[%s7998_s9 + $0x2d0] ss:$12 sps:$4 sm:$0xff]   ;;  %4475 = vmatprep.subr.bf16.mxu0 %v6074_v60 }
 0x48c   : > { %v6144_v60 = vld [vmem:[%s7998_s9 + $0x25c] ss:$12 sps:$4 sm:$0xff]  }
 0x48d   : > { %4476 = vmatpush2.bf16.msra.mxu0 %v6072_v50  ;;  %v6099_v50 = vld [vmem:[%s7998_s9 + $0x18] ss:$12 sps:$4 sm:$0xff]  }
 0x48e   : > { %3690 = vmatpush2.bf16.msra.mxu1 %v5994_v45  ;;  %v6077_v45 = vld [vmem:[%s7998_s9 + $0x2bc] ss:$12 sps:$4 sm:$0xff]  }
 0x48f   : > { %3691 = vmatprep.subr.bf16.mxu1 %v5999_v31  ;;  %v6075_v31 = vld [vmem:[%s7998_s9 + $0x2b8] ss:$12 sps:$4 sm:$0xff]   ;;  %4477 = vmatprep.subr.bf16.mxu0 %v6077_v45 }
 0x490   : > { %v6107_v45 = vld [vmem:[%s7998_s9 + $0x4] ss:$12 sps:$4 sm:$0xff]  }
 0x491   : > { %4478 = vmatpush2.bf16.msra.mxu0 %v6075_v31  ;;  %v6105_v31 = vld [vmem:[%s7998_s9] ss:$12 sps:$4 sm:$0xff]  }
 0x492   : > { %3692 = vmatpush2.bf16.msra.mxu1 %v5997_v23  ;;  %v6083_v23 = vld [vmem:[%s7998_s9 + $0x2a4] ss:$12 sps:$4 sm:$0xff]  }
 0x493   : > { %3693 = vmatprep.subr.bf16.mxu1 %v6002_v42  ;;  %v6081_v42 = vld [vmem:[%s7998_s9 + $0x2a0] ss:$12 sps:$4 sm:$0xff]   ;;  %4479 = vmatprep.subr.bf16.mxu0 %v6083_v23 }
 0x494   : > { %v6110_v23 = vld [vmem:[%s7998_s9 + $0x16c] ss:$12 sps:$4 sm:$0xff]  }
 0x495   : > { %4480 = vmatpush2.bf16.msra.mxu0 %v6081_v42  ;;  %v6108_v42 = vld [vmem:[%s7998_s9 + $0x168] ss:$12 sps:$4 sm:$0xff]  }
 0x496   : > { %3694 = vmatpush2.bf16.msra.mxu1 %v6000_v14  ;;  %v6102_v14 = vld [vmem:[%s7998_s9 + $0x288] ss:$12 sps:$4 sm:$0xff]  }
 0x497   : > { %3695 = vmatprep.subr.bf16.mxu1 %v6005_v52  ;;  %v6104_v52 = vld [vmem:[%s7998_s9 + $0x28c] ss:$12 sps:$4 sm:$0xff]  }
 0x498   : > { %4481 = vmatprep.subr.bf16.mxu0 %v6104_v52  ;;  %v6111_v52 = vld [vmem:[%s7998_s9 + $0x150] ss:$12 sps:$4 sm:$0xff]  }
 0x499   : > { %4482 = vmatpush2.bf16.msra.mxu0 %v6102_v14  ;;  %v6113_v14 = vld [vmem:[%s7998_s9 + $0x154] ss:$12 sps:$4 sm:$0xff]  }
 0x49a   : > { %3696 = vmatpush2.bf16.msra.mxu1 %v6003_v63  ;;  %v6126_v63 = vld [vmem:[%s7998_s9 + $0x270] ss:$12 sps:$4 sm:$0xff]  }
 0x49b   : > { %3697 = vmatprep.subr.bf16.mxu1 %v6011_v49  ;;  %v6128_v49 = vld [vmem:[%s7998_s9 + $0x274] ss:$12 sps:$4 sm:$0xff]  }
 0x49c   : > { %4483 = vmatprep.subr.bf16.mxu0 %v6128_v49  ;;  %v6114_v49 = vld [vmem:[%s7998_s9 + $0x138] ss:$12 sps:$4 sm:$0xff]  }
 0x49d   : > { %4484 = vmatpush2.bf16.msra.mxu0 %v6126_v63  ;;  %v6116_v63 = vld [vmem:[%s7998_s9 + $0x13c] ss:$12 sps:$4 sm:$0xff]  }
 0x49e   : > { %3698 = vmatpush2.bf16.msra.mxu1 %v6009_v47  ;;  %4485 = vmatprep.subr.bf16.mxu0 %v6144_v60  ;;  %v6166_v60 = vld [vmem:[%s7998_s9 + $0x1d0] ss:$12 sps:$4 sm:$0xff]  }
 0x49f   : > { %3699 = vmatprep.subr.bf16.mxu1 %v6014_v51  ;;  %v6056_v51 = vld [vmem:[%s7996_s7 + $0x18c] ss:$16 sps:$4 sm:$0xff]  }
 0x4a1   : > { %4486 = vmatpush2.bf16.msra.mxu0 %v6142_v56  ;;  %v6165_v56 = vld [vmem:[%s7998_s9 + $0x290] ss:$12 sps:$4 sm:$0xff]  }
 0x4a2   : > { %3700 = vmatpush2.bf16.msra.mxu1 %v6012_v11  ;;  %v6062_v11 = vld [vmem:[%s7996_s7 + $0x14c] ss:$16 sps:$4 sm:$0xff]  }
 0x4a3   : > { %3710 = vmatprep.subr.bf16.mxu1 %v6017_v6  ;;  %v6080_v6 = vld [vmem:[%s7998_s9 + $0xac] ss:$12 sps:$4 sm:$0xff]  }
 0x4e8   : > { %v5265_v20 = vpop.f32.mrf.mxu1 }
 0x4ea   : > { %v5266_v44 = vpop.f32.mrf.mxu1 }
 0x4eb   : > { %v5267_v35 = vadd.f32 %v5266_v44, %v5265_v20 }
 0x4ec   : > { %v5268_v18 = vpop.f32.mrf.mxu1 }
 0x4ed   : > { %v3135_v24 = vadd.f32 %v5267_v35, %v4919_v0 }
 0x4ee   : > { %v5269_v1 = vpop.f32.mrf.mxu1 }
 0x4ef   : > { %v5270_v19 = vadd.f32 %v5269_v1, %v5268_v18 }
 0x4f1   : > { %v3138_v58 = vadd.f32 %v5270_v19, %v4919_v0  ;;  %v6045_v19 = vld [vmem:[%s7996_s7 + $0x1c8] ss:$16 sps:$4 sm:$0xff]  }
 0x4f8   : > { %v5271_v38 = vpop.f32.mrf.mxu1 }
 0x4fa   : > { %v5272_v55 = vpop.f32.mrf.mxu1 }
 0x4fb   : > { %v5273_v16 = vadd.f32 %v5272_v55, %v5271_v38  ;;  %v6015_v55 = vld [vmem:[%s7996_s7 + $0xe8] ss:$16 sps:$4 sm:$0xff]  }
 0x4fc   : > { %v5274_v53 = vpop.f32.mrf.mxu1 }
 0x4fd   : > { %v3143_v41 = vadd.f32 %v5273_v16, %v4919_v0  ;;  %v6020_v16 = vld [vmem:[%s7996_s7 + $0xcc] ss:$16 sps:$4 sm:$0xff]  }
 0x4fe   : > { %v5275_v10 = vpop.f32.mrf.mxu1 }
 0x4ff   : > { %v5276_v7 = vadd.f32 %v5275_v10, %v5274_v53  ;;  %v6023_v53 = vld [vmem:[%s7996_s7 + $0xac] ss:$16 sps:$4 sm:$0xff]   ;;  %v6021_v10 = vld [vmem:[%s7996_s7 + $0xa8] ss:$16 sps:$4 sm:$0xff]  }
 0x501   : > { %v3146_v33 = vadd.f32 %v5276_v7, %v4919_v0  ;;  %v6044_v7 = vld [vmem:[%s7996_s7 + $0x1ec] ss:$16 sps:$4 sm:$0xff]  }
 0x508   : > { %v5293_v43 = vpop.f32.mrf.mxu1 }
 0x50a   : > { %v5294_v30 = vpop.f32.mrf.mxu1 }
 0x50b   : > { %v5295_v39 = vadd.f32 %v5294_v30, %v5293_v43  ;;  %v6026_v43 = vld [vmem:[%s7996_s7 + $0x8c] ss:$16 sps:$4 sm:$0xff]   ;;  %v6024_v30 = vld [vmem:[%s7996_s7 + $0x88] ss:$16 sps:$4 sm:$0xff]  }
 0x50c   : > { %v5296_v15 = vpop.f32.mrf.mxu1 }
 0x50d   : > { %v3184_v28 = vadd.f32 %v5295_v39, %v3135_v24  ;;  %v6032_v39 = vld [vmem:[%s7996_s7 + $0x6c] ss:$16 sps:$4 sm:$0xff]  }
 0x50e   : > { %v5297_v26 = vpop.f32.mrf.mxu1 }
 0x50f   : > { %v5298_v4 = vadd.f32 %v5297_v26, %v5296_v15  ;;  %v6035_v15 = vld [vmem:[%s7996_s7 + $0x4c] ss:$16 sps:$4 sm:$0xff]   ;;  %v6033_v26 = vld [vmem:[%s7996_s7 + $0x48] ss:$16 sps:$4 sm:$0xff]  }
 0x511   : > { %v3187_v32 = vadd.f32 %v5298_v4, %v3138_v58  ;;  %v6059_v4 = vld [vmem:[%s7996_s7 + $0x16c] ss:$16 sps:$4 sm:$0xff]  }
 0x512   : > { %v6065_v58 = vld [vmem:[%s7996_s7 + $0x12c] ss:$16 sps:$4 sm:$0xff]  }
 0x51c   : > { %v5299_v54 = vpop.f32.mrf.mxu1 }
 0x51e   : > { %v5300_v57 = vpop.f32.mrf.mxu1 }
 0x51f   : > { %v5301_v8 = vadd.f32 %v5300_v57, %v5299_v54  ;;  %v6038_v54 = vld [vmem:[%s7996_s7 + $0x2c] ss:$16 sps:$4 sm:$0xff]   ;;  %v6036_v57 = vld [vmem:[%s7996_s7 + $0x28] ss:$16 sps:$4 sm:$0xff]  }
 0x520   : > { %v5302_v5 = vpop.f32.mrf.mxu1 }
 0x521   : > { %v3192_v40 = vadd.f32 %v5301_v8, %v3143_v41  ;;  %v6018_v41 = vld [vmem:[%s7996_s7 + $0xc8] ss:$16 sps:$4 sm:$0xff]   ;;  %v6041_v8 = vld [vmem:[%s7996_s7 + $0xc] ss:$16 sps:$4 sm:$0xff]  }
 0x522   : > { %v5303_v36 = vpop.f32.mrf.mxu1 }
 0x523   : > { %v5304_v59 = vadd.f32 %v5303_v36, %v5302_v5  ;;  %v6039_v5 = vld [vmem:[%s7996_s7 + $0x8] ss:$16 sps:$4 sm:$0xff]   ;;  %v6047_v36 = vld [vmem:[%s7996_s7 + $0x1cc] ss:$16 sps:$4 sm:$0xff]  }
 0x524   : > { %v5365_v13 = vpop.f32.mrf.mxu1 }
 0x525   : > { %v3241_v61 = vadd.f32 %v5365_v13, %v3192_v40  ;;  %v3195_v2 = vadd.f32 %v5304_v59, %v3146_v33  ;;  %v6042_v40 = vld [vmem:[%s7996_s7 + $0x1e8] ss:$16 sps:$4 sm:$0xff]   ;;  %v6050_v59 = vld [vmem:[%s7996_s7 + $0x1ac] ss:$16 sps:$4 sm:$0xff]  }
 0x526   : > { %v3232_v22 = vpop.f32.mrf.mxu1  ;;  %v6048_v13 = vld [vmem:[%s7996_s7 + $0x1a8] ss:$16 sps:$4 sm:$0xff]  }
 0x527   : > { %v3233_v21 = vadd.f32 %v3232_v22, %v3184_v28  ;;  %v3249_v47 = vmax.f32 %v3241_v61, 0.0  ;;  %v6030_v28 = vld [vmem:[%s7996_s7 + $0x68] ss:$16 sps:$4 sm:$0xff]  }
 0x528   : > { %v5366_v9 = vpop.f32.mrf.mxu1  ;;  %v6054_v33 = vld [vmem:[%s7996_s7 + $0x188] ss:$16 sps:$4 sm:$0xff]  }
 0x529   : > { %v3244_v3 = vadd.f32 %v5366_v9, %v3195_v2  ;;  %v3247_v0 = vmax.f32 %v3233_v21, 0.0  ;;  %v6057_v61 = vld [vmem:[%s7996_s7 + $0x168] ss:$16 sps:$4 sm:$0xff]   ;;  %v6068_v2 = vld [vmem:[%s7996_s7 + $0x10c] ss:$16 sps:$4 sm:$0xff]  }
 0x52a   : > { %v3235_v27 = vpop.f32.mrf.mxu1  ;;  %v6060_v22 = vld [vmem:[%s7996_s7 + $0x148] ss:$16 sps:$4 sm:$0xff]  }
 0x52b   : > { %v3236_v25 = vadd.f32 %v3235_v27, %v3187_v32  ;;  %v3250_v29 = vmax.f32 %v3244_v3, 0.0  ;;  %v6063_v21 = vld [vmem:[%s7996_s7 + $0x128] ss:$16 sps:$4 sm:$0xff]   ;;  %v6086_v32 = vld [vmem:[%s7998_s9 + $0x94] ss:$12 sps:$4 sm:$0xff]  }
 0x52c   : > { %v6066_v9 = vld [vmem:[%s7996_s7 + $0x108] ss:$16 sps:$4 sm:$0xff]   ;;  %v6084_v27 = vld [vmem:[%s7998_s9 + $0x90] ss:$12 sps:$4 sm:$0xff]  }
 0x52d   : > { %v3248_v37 = vmax.f32 %v3236_v25, 0.0  ;;  %v6078_v3 = vld [vmem:[%s7998_s9 + $0xa8] ss:$12 sps:$4 sm:$0xff]  }
 0x52e   : > { %v6089_v25 = vld [vmem:[%s7998_s9 + $0x7c] ss:$12 sps:$4 sm:$0xff]  }
 0x52f   : > { %v5710_v46 = vpack.i.bf16 %v3248_v37, %v3250_v29  ;;  %v6087_v29 = vld [vmem:[%s7998_s9 + $0x78] ss:$12 sps:$4 sm:$0xff]  }
 0x530   : > { %v6092_v37 = vld [vmem:[%s7998_s9 + $0x64] ss:$12 sps:$4 sm:$0xff]  }
 0x531   : > { %5711 = vrot.lane.b32.xlu1 %v5710_v46, %s6212_s26  ;;  %v6090_v46 = vld [vmem:[%s7998_s9 + $0x60] ss:$12 sps:$4 sm:$0xff]  }
 0x5a3   : > { %v5712_v20 = vpop.permute.xlu1 %5711 }
 0x5a4   : > { %v5714_v44 = vunpack.i.h.bf16 %v5712_v20  ;;  %v5713_v35 = vunpack.i.l.bf16 %v5712_v20  ;;  %v6119_v20 = vld [vmem:[%s7998_s9 + $0x124] ss:$12 sps:$4 sm:$0xff]  }
 0x5a6   : > { %v3259_v24 = vsel %vm1711_vm1, %v3247_v0, %v5714_v44  ;;  %v3260_v18 = vsel %vm1711_vm1, %v3249_v47, %v5713_v35  ;;  %v6117_v47 = vld [vmem:[%s7998_s9 + $0x120] ss:$12 sps:$4 sm:$0xff]   ;;  %v6120_v44 = vld [vmem:[%s7998_s9 + $0x108] ss:$12 sps:$4 sm:$0xff]  }
 0x5a7   : > { %v7618_v1 = vpack.c.bf16 %v3259_v24, %v3259_v24  ;;  %v3262_v38 = vpack.c.bf16 %v3260_v18, %v3260_v18  ;;  %v6122_v0 = vld [vmem:[%s7998_s9 + $0x10c] ss:$12 sps:$4 sm:$0xff]   ;;  %v6125_v35 = vld [vmem:[%s7998_s9 + $0xf4] ss:$12 sps:$4 sm:$0xff]   ;;  %v6160_v18 = vld [vmem:[%s7998_s9 + $0x244] ss:$12 sps:$4 sm:$0xff]  }
 0x5a8   : > { %v6158_v24 = vld [vmem:[%s7998_s9 + $0x240] ss:$12 sps:$4 sm:$0xff]   ;;  %4487 = vmatprep.subr.bf16.mxu0 %v6160_v18 }
 0x5a9   : > { %3701 = vmatprep.mubr.bf16.mxu1 %v3262_v38  ;;  %4488 = vmatpush2.bf16.msra.mxu0 %v6158_v24 }
 0x5aa   : > { %3702 = vmatmul.mubr.bf16.vlgmr.msra.gmra.mxu1 %v7618_v1 }
 0x5ab   : > { %3711 = vmatpush1.bf16.msra.mxu1 %v6015_v55  ;;  %3742 = vmatprep.mubr.bf16.mxu1 %v3262_v38  ;;  %v6131_v38 = vld [vmem:[%s7998_s9 + $0xdc] ss:$12 sps:$4 sm:$0xff]   ;;  %v6129_v55 = vld [vmem:[%s7998_s9 + $0xd8] ss:$12 sps:$4 sm:$0xff]  }
 0x5ac   : > { %3712 = vmatprep.subr.bf16.mxu1 %v6020_v16  ;;  %v6134_v16 = vld [vmem:[%s7998_s9 + $0xc4] ss:$12 sps:$4 sm:$0xff]  }
 0x5af   : > { %3713 = vmatpush1.bf16.msra.mxu1 %v6018_v41  ;;  %v6132_v41 = vld [vmem:[%s7998_s9 + $0xc0] ss:$12 sps:$4 sm:$0xff]  }
 0x5b0   : > { %3714 = vmatprep.subr.bf16.mxu1 %v6023_v53  ;;  %v6135_v53 = vld [vmem:[%s7998_s9 + $0x170] ss:$12 sps:$4 sm:$0xff]  }
 0x5b3   : > { %3715 = vmatpush1.bf16.msra.mxu1 %v6021_v10  ;;  %v3329_v10 = vlaneseq }
 0x5b4   : > { %3716 = vmatprep.subr.bf16.mxu1 %v6026_v43 }
 0x5b5   : > { %v7826_v43 = vshrl.u32 %v3329_v10, 7 }
 0x5b7   : > { %3717 = vmatpush1.bf16.msra.mxu1 %v6024_v30  ;;  %v3331_v30 = vsub.s32 0, %v7826_v43 }
 0x5b8   : > { %3718 = vmatprep.subr.bf16.mxu1 %v6032_v39  ;;  %v7832_v39 = vld [vmem:[%s7997_s8] sm:$0xf] }
 0x5bb   : > { %3719 = vmatpush1.bf16.msra.mxu1 %v6030_v28  ;;  %v3335_v28 = vsub.s32 1, %v7826_v43 }
 0x5bc   : > { %3720 = vmatprep.subr.bf16.mxu1 %v6035_v15  ;;  %v3332_v15 = vrot.slane %v7832_v39, %v3331_v30 }
 0x5bf   : > { %3721 = vmatpush1.bf16.msra.mxu1 %v6033_v26  ;;  %v3336_v26 = vrot.slane %v7832_v39, %v3335_v28 }
 0x5c0   : > { %3722 = vmatprep.subr.bf16.mxu1 %v6038_v54 }
 0x5c3   : > { %3723 = vmatpush1.bf16.msra.mxu1 %v6036_v57 }
 0x5c4   : > { %3724 = vmatprep.subr.bf16.mxu1 %v6041_v8 }
 0x5c7   : > { %3725 = vmatpush1.bf16.msra.mxu1 %v6039_v5 }
 0x5c8   : > { %3726 = vmatprep.subr.bf16.mxu1 %v6044_v7 }
 0x5cb   : > { %3727 = vmatpush2.bf16.msra.mxu1 %v6042_v40 }
 0x5cc   : > { %3728 = vmatprep.subr.bf16.mxu1 %v6047_v36 }
 0x5cf   : > { %3729 = vmatpush2.bf16.msra.mxu1 %v6045_v19 }
 0x5d0   : > { %3730 = vmatprep.subr.bf16.mxu1 %v6050_v59 }
 0x5d3   : > { %3731 = vmatpush2.bf16.msra.mxu1 %v6048_v13  ;;  %v6136_v13 = vld [vmem:[%s7998_s9 + $0xb0] ss:$12 sps:$4 sm:$0xff]  }
 0x5d4   : > { %3732 = vmatprep.subr.bf16.mxu1 %v6056_v51 }
 0x5d7   : > { %3733 = vmatpush2.bf16.msra.mxu1 %v6054_v33  ;;  %v6137_v33 = vld [vmem:[%s7998_s9 + $0x158] ss:$12 sps:$4 sm:$0xff]  }
 0x5d8   : > { %3734 = vmatprep.subr.bf16.mxu1 %v6059_v4  ;;  %v6138_v4 = vld [vmem:[%s7998_s9 + $0x98] ss:$12 sps:$4 sm:$0xff]  }
 0x5db   : > { %3735 = vmatpush2.bf16.msra.mxu1 %v6057_v61  ;;  %v6139_v61 = vld [vmem:[%s7998_s9 + $0x140] ss:$12 sps:$4 sm:$0xff]  }
 0x5dc   : > { %3736 = vmatprep.subr.bf16.mxu1 %v6062_v11  ;;  %v6140_v11 = vld [vmem:[%s7998_s9 + $0x80] ss:$12 sps:$4 sm:$0xff]  }
 0x5df   : > { %3737 = vmatpush2.bf16.msra.mxu1 %v6060_v22  ;;  %v6141_v22 = vld [vmem:[%s7998_s9 + $0x128] ss:$12 sps:$4 sm:$0xff]  }
 0x5e0   : > { %3738 = vmatprep.subr.bf16.mxu1 %v6065_v58  ;;  %v6145_v58 = vld [vmem:[%s7998_s9 + $0x68] ss:$12 sps:$4 sm:$0xff]  }
 0x5e3   : > { %3739 = vmatpush2.bf16.msra.mxu1 %v6063_v21  ;;  %v6146_v21 = vld [vmem:[%s7998_s9 + $0x110] ss:$12 sps:$4 sm:$0xff]  }
 0x5e4   : > { %3740 = vmatprep.subr.bf16.mxu1 %v6068_v2  ;;  %v6147_v2 = vld [vmem:[%s7998_s9 + $0x50] ss:$12 sps:$4 sm:$0xff]  }
 0x5e7   : > { %3741 = vmatpush2.bf16.msra.mxu1 %v6066_v9  ;;  %v6148_v9 = vld [vmem:[%s7998_s9 + $0xf8] ss:$12 sps:$4 sm:$0xff]  }
 0x5e8   : > { %4416 = vmatprep.subr.bf16.mxu1 %v6080_v6  ;;  %v6149_v6 = vld [vmem:[%s7998_s9 + $0x38] ss:$12 sps:$4 sm:$0xff]  }
 0x5ea   : > { %3743 = vmatmul.mubr.bf16.vlgmr.msra.gmra.mxu1 %v7618_v1  ;;  %v6123_v1 = vld [vmem:[%s7998_s9 + $0xf0] ss:$12 sps:$4 sm:$0xff]  }
 0x5eb   : > { %4417 = vmatpush1.bf16.msra.mxu1 %v6078_v3  ;;  %v6150_v3 = vld [vmem:[%s7998_s9 + $0xe0] ss:$12 sps:$4 sm:$0xff]  }
 0x5ec   : > { %4418 = vmatprep.subr.bf16.mxu1 %v6086_v32  ;;  %v6151_v32 = vld [vmem:[%s7998_s9 + $0x20] ss:$12 sps:$4 sm:$0xff]  }
 0x5ef   : > { %4419 = vmatpush1.bf16.msra.mxu1 %v6084_v27  ;;  %v6152_v27 = vld [vmem:[%s7998_s9 + $0xc8] ss:$12 sps:$4 sm:$0xff]  }
 0x5f0   : > { %4420 = vmatprep.subr.bf16.mxu1 %v6089_v25  ;;  %v6153_v25 = vld [vmem:[%s7998_s9 + $0x8] ss:$12 sps:$4 sm:$0xff]  }
 0x5f3   : > { %4421 = vmatpush1.bf16.msra.mxu1 %v6087_v29  ;;  %v6154_v29 = vld [vmem:[%s7998_s9 + $0x2f0] ss:$12 sps:$4 sm:$0xff]  }
 0x5f4   : > { %4422 = vmatprep.subr.bf16.mxu1 %v6092_v37  ;;  %v6155_v37 = vld [vmem:[%s7998_s9 + $0x230] ss:$12 sps:$4 sm:$0xff]  }
 0x5f7   : > { %4423 = vmatpush1.bf16.msra.mxu1 %v6090_v46  ;;  %v6156_v46 = vld [vmem:[%s7998_s9 + $0x2d8] ss:$12 sps:$4 sm:$0xff]  }
 0x5f8   : > { %4424 = vmatprep.subr.bf16.mxu1 %v6095_v48  ;;  %v6157_v48 = vld [vmem:[%s7998_s9 + $0x218] ss:$12 sps:$4 sm:$0xff]  }
 0x5fb   : > { %4425 = vmatpush1.bf16.msra.mxu1 %v6093_v17  ;;  %v6161_v17 = vld [vmem:[%s7998_s9 + $0x2c0] ss:$12 sps:$4 sm:$0xff]  }
 0x5fc   : > { %4426 = vmatprep.subr.bf16.mxu1 %v6098_v12  ;;  %v6162_v12 = vld [vmem:[%s7998_s9 + $0x200] ss:$12 sps:$4 sm:$0xff]  }
 0x5ff   : > { %4427 = vmatpush1.bf16.msra.mxu1 %v6096_v62  ;;  %v6163_v62 = vld [vmem:[%s7998_s9 + $0x2a8] ss:$12 sps:$4 sm:$0xff]  }
 0x600   : > { %4428 = vmatprep.subr.bf16.mxu1 %v6101_v34  ;;  %v6164_v34 = vld [vmem:[%s7998_s9 + $0x1e8] ss:$12 sps:$4 sm:$0xff]  }
 0x603   : > { %4429 = vmatpush1.bf16.msra.mxu1 %v6099_v50  ;;  %v6167_v50 = vld [vmem:[%s7998_s9 + $0x278] ss:$12 sps:$4 sm:$0xff]  }
 0x604   : > { %4430 = vmatprep.subr.bf16.mxu1 %v6107_v45  ;;  %v3339_v45 = vsub.s32 2, %v7826_v43 }
 0x607   : > { %4431 = vmatpush1.bf16.msra.mxu1 %v6105_v31  ;;  %v6168_v31 = vld [vmem:[%s7998_s9 + $0x1b8] ss:$12 sps:$4 sm:$0xff]  }
 0x608   : > { %4432 = vmatprep.subr.bf16.mxu1 %v6110_v23  ;;  %v3343_v23 = vsub.s32 3, %v7826_v43 }
 0x60b   : > { %4433 = vmatpush2.bf16.msra.mxu1 %v6108_v42  ;;  %v6169_v42 = vld [vmem:[%s7998_s9 + $0x260] ss:$12 sps:$4 sm:$0xff]  }
 0x60c   : > { %4434 = vmatprep.subr.bf16.mxu1 %v6113_v14  ;;  %v3340_v14 = vrot.slane %v7832_v39, %v3339_v45 }
 0x60f   : > { %4435 = vmatpush2.bf16.msra.mxu1 %v6111_v52  ;;  %v3344_v52 = vrot.slane %v7832_v39, %v3343_v23 }
 0x610   : > { %4436 = vmatprep.subr.bf16.mxu1 %v6116_v63  ;;  %v6170_v63 = vld [vmem:[%s7998_s9 + $0x1a0] ss:$12 sps:$4 sm:$0xff]  }
 0x613   : > { %4437 = vmatpush2.bf16.msra.mxu1 %v6114_v49 }
 0x614   : > { %4438 = vmatprep.subr.bf16.mxu1 %v6119_v20  ;;  %v6171_v20 = vld [vmem:[%s7998_s9 + $0x248] ss:$12 sps:$4 sm:$0xff]  }
 0x617   : > { %4439 = vmatpush2.bf16.msra.mxu1 %v6117_v47 }
 0x618   : > { %4440 = vmatprep.subr.bf16.mxu1 %v6122_v0 }
 0x61b   : > { %4441 = vmatpush2.bf16.msra.mxu1 %v6120_v44 }
 0x61c   : > { %4442 = vmatprep.subr.bf16.mxu1 %v6125_v35  ;;  %v6172_v35 = vld [vmem:[%s7998_s9 + $0x188] ss:$12 sps:$4 sm:$0xff]  }
 0x61f   : > { %4443 = vmatpush2.bf16.msra.mxu1 %v6123_v1 }
 0x620   : > { %4444 = vmatprep.subr.bf16.mxu1 %v6131_v38 }
 0x623   : > { %4445 = vmatpush2.bf16.msra.mxu1 %v6129_v55 }
 0x624   : > { %4446 = vmatprep.subr.bf16.mxu1 %v6134_v16 }
 0x627   : > { %4447 = vmatpush2.bf16.msra.mxu1 %v6132_v41 }
 0x628   : > { %5311 = vmatprep.subr.bf16.mxu1 %v6135_v53 }
 0x66a   : > { %v3703_v54 = vpop.f32.mrf.mxu1 }
 0x66b   : > { %v3704_v57 = vadd.f32 %v3703_v54, %v3332_v15 }
 0x66c   : > { %v3705_v8 = vpop.f32.mrf.mxu1 }
 0x66d   : > { %v3706_v5 = vadd.f32 %v3705_v8, %v3336_v26  ;;  %v3751_v7 = vmax.f32 %v3704_v57, 0.0  ;;  %v3887_v8 = vld [vmem:[%s7999_s10] sm:$0x7] }
 0x66e   : > { %v3707_v40 = vpop.f32.mrf.mxu1 }
 0x66f   : > { %v3752_v36 = vmax.f32 %v3706_v5, 0.0  ;;  %v3755_v51 = vpack.c.bf16 %v3751_v7, %v3751_v7  ;;  %v3892_v5 = vrot.slane %v3887_v8, %v3331_v30  ;;  %v3896_v7 = vrot.slane %v3887_v8, %v3335_v28 }
 0x670   : > { %v3708_v19 = vpop.f32.mrf.mxu1 }
 0x671   : > { %v3756_v59 = vpack.c.bf16 %v3752_v36, %v3752_v36  ;;  %v3900_v36 = vrot.slane %v3887_v8, %v3339_v45 }
 0x673   : > { %4448 = vmatprep.mubr.bf16.mxu1 %v3756_v59 }
 0x674   : > { %4449 = vmatmul.mubr.bf16.vlgmr.msra.gmra.mxu1 %v3755_v51 }
 0x675   : > { %5312 = vmatpush3.bf16.msra.mxu1 %v6136_v13  ;;  %4530 = vmatprep.mubr.bf16.mxu1 %v3756_v59 }
 0x676   : > { %5313 = vmatprep.subr.bf16.mxu1 %v6137_v33 }
 0x679   : > { %5314 = vmatpush3.bf16.msra.mxu1 %v6138_v4 }
 0x67a   : > { %5315 = vmatprep.subr.bf16.mxu1 %v6139_v61 }
 0x67d   : > { %5316 = vmatpush3.bf16.msra.mxu1 %v6140_v11 }
 0x67e   : > { %5317 = vmatprep.subr.bf16.mxu1 %v6141_v22 }
 0x681   : > { %5318 = vmatpush3.bf16.msra.mxu1 %v6145_v58 }
 0x682   : > { %5319 = vmatprep.subr.bf16.mxu1 %v6146_v21 }
 0x685   : > { %5320 = vmatpush3.bf16.msra.mxu1 %v6147_v2 }
 0x686   : > { %5321 = vmatprep.subr.bf16.mxu1 %v6148_v9 }
 0x689   : > { %5322 = vmatpush3.bf16.msra.mxu1 %v6149_v6 }
 0x68a   : > { %5323 = vmatprep.subr.bf16.mxu1 %v6150_v3 }
 0x68d   : > { %5324 = vmatpush3.bf16.msra.mxu1 %v6151_v32 }
 0x68e   : > { %5325 = vmatprep.subr.bf16.mxu1 %v6152_v27 }
 0x691   : > { %5326 = vmatpush3.bf16.msra.mxu1 %v6153_v25 }
 0x692   : > { %5333 = vmatprep.subr.bf16.mxu1 %v6154_v29 }
 0x694   : > { %4531 = vmatmul.mubr.bf16.vlgmr.msra.gmra.mxu1 %v3755_v51 }
 0x695   : > { %5334 = vmatpush3.bf16.msra.mxu1 %v6155_v37 }
 0x696   : > { %5335 = vmatprep.subr.bf16.mxu1 %v6156_v46 }
 0x699   : > { %5336 = vmatpush3.bf16.msra.mxu1 %v6157_v48 }
 0x69a   : > { %5337 = vmatprep.subr.bf16.mxu1 %v6161_v17 }
 0x69d   : > { %5338 = vmatpush3.bf16.msra.mxu1 %v6162_v12 }
 0x69e   : > { %5339 = vmatprep.subr.bf16.mxu1 %v6163_v62 }
 0x6a1   : > { %5340 = vmatpush3.bf16.msra.mxu1 %v6164_v34 }
 0x6a2   : > { %5341 = vmatprep.subr.bf16.mxu1 %v6165_v56 }
 0x6a5   : > { %5342 = vmatpush3.bf16.msra.mxu1 %v6166_v60 }
 0x6a6   : > { %5343 = vmatprep.subr.bf16.mxu1 %v6167_v50 }
 0x6a9   : > { %5344 = vmatpush3.bf16.msra.mxu1 %v6168_v31 }
 0x6aa   : > { %v3744_v49 = vpop.f32.mrf.mxu1  ;;  %5345 = vmatprep.subr.bf16.mxu1 %v6169_v42 }
 0x6ab   : > { %v3745_v47 = vadd.f32 %v3744_v49, %v3340_v14 }
 0x6ac   : > { %v3746_v0 = vpop.f32.mrf.mxu1 }
 0x6ad   : > { %v3747_v44 = vadd.f32 %v3746_v0, %v3344_v52  ;;  %5346 = vmatpush3.bf16.msra.mxu1 %v6170_v63  ;;  %v3753_v24 = vmax.f32 %v3745_v47, 0.0 }
 0x6ae   : > { %v3748_v18 = vpop.f32.mrf.mxu1  ;;  %5347 = vmatprep.subr.bf16.mxu1 %v6171_v20 }
 0x6af   : > { %v3754_v1 = vmax.f32 %v3747_v44, 0.0  ;;  %v3757_v16 = vpack.c.bf16 %v3753_v24, %v3753_v24 }
 0x6b0   : > { %v3749_v38 = vpop.f32.mrf.mxu1 }
 0x6b1   : > { %v3758_v55 = vpack.c.bf16 %v3754_v1, %v3754_v1  ;;  %5348 = vmatpush3.bf16.msra.mxu1 %v6172_v35 }
 0x6b3   : > { %4489 = vmatprep.mubr.bf16.mxu0 %v3758_v55  ;;  %4570 = vmatprep.mubr.bf16.mxu1 %v3758_v55 }
 0x6b4   : > { %4490 = vmatmul.mubr.bf16.vlgmr.msra.gmra.mxu0 %v3757_v16  ;;  %4571 = vmatmul.mubr.bf16.vlgmr.msra.gmra.mxu1 %v3757_v16 }
 0x734   : > { %v4450_v41 = vpop.f32.mrf.mxu1 }
 0x735   : > { %v4451_v40 = vadd.f32 %v4450_v41, %v3892_v5 }
 0x736   : > { %v4452_v53 = vpop.f32.mrf.mxu1 }
 0x737   : > { %v4453_v51 = vadd.f32 %v4452_v53, %v3896_v7 }
 0x738   : > { %v4454_v10 = vpop.f32.mrf.mxu1 }
 0x73a   : > { %v4455_v39 = vpop.f32.mrf.mxu1 }
 0x754   : > { %v5327_v15 = vpop.f32.mrf.mxu1 }
 0x756   : > { %v5328_v26 = vpop.f32.mrf.mxu1 }
 0x757   : > { %v5329_v19 = vadd.f32 %v5328_v26, %v5327_v15 }
 0x758   : > { %v5330_v54 = vpop.f32.mrf.mxu1 }
 0x759   : > { %v4533_v11 = vadd.f32 %v5329_v19, %v3900_v36 }
 0x75a   : > { %v5331_v57 = vpop.f32.mrf.mxu1 }
 0x774   : > { %v4491_v59 = vpop.f32.mrf.mxu0  ;;  %v5349_v13 = vpop.f32.mrf.mxu1 }
 0x775   : > { %v7945_v33 = vadd.f32 %v4491_v59, %v4451_v40 }
 0x776   : > { %v4493_v4 = vpop.f32.mrf.mxu0  ;;  %v5350_v61 = vpop.f32.mrf.mxu1 }
 0x777   : > { %v4494_v22 = vadd.f32 %v4493_v4, %v4453_v51  ;;  %v5351_v30 = vadd.f32 %v5350_v61, %v5349_v13  ;;  %v4591_v43 = vsel %vm4590_vm3, %v7945_v33, -inf  ;;  %v4607_v9 = vsel %vm4606_vm5, %v7945_v33, -inf }
 0x778   : > { %v4495_v28 = vpop.f32.mrf.mxu0  ;;  %v5352_v58 = vpop.f32.mrf.mxu1  ;;  %4592 = vmax.xlane.f32.xlu0 %v4591_v43  ;;  %v4579_v48 = vsel %vm4578_vm10, %v7945_v33, -inf }
 0x779   : > { %v4573_v21 = vadd.f32 %v5351_v30, %v4533_v11  ;;  %v4635_v2 = vsel %vm4634_vm4, %v4494_v22, -inf  ;;  %v4609_v6 = vsel %vm4608_vm6, %v4494_v22, -inf  ;;  %v4667_v25 = vsel %vm4666_vm7, %v4494_v22, -inf }
 0x77a   : > { %v4496_v3 = vpop.f32.mrf.mxu0  ;;  %v5353_v32 = vpop.f32.mrf.mxu1  ;;  %4636 = vmax.xlane.f32.xlu1 %v4635_v2  ;;  %v4610_v27 = vmax.f32 %v4607_v9, %v4609_v6  ;;  %v4651_v46 = vsel %vm4650_vm9, %v4494_v22, -inf }
 0x77b   : > { %v4669_v29 = vsel %vm4668_vm8, %v4573_v21, -inf }
 0x77c   : > { %4611 = vmax.xlane.f32.xlu0 %v4610_v27  ;;  %v4670_v37 = vmax.f32 %v4667_v25, %v4669_v29 }
 0x77e   : > { %4671 = vmax.xlane.f32.xlu1 %v4670_v37 }
 0x780   : > { %4652 = vmax.xlane.f32.xlu0 %v4651_v46 }
 0x784   : > { %4580 = vmax.xlane.f32.xlu0 %v4579_v48 }
 0x801   : > { %v4593_v17 = vpop.xlane.xlu0 %4592 }
 0x802   : > { %v4594_v12 = vsub.f32 %v7945_v33, %v4593_v17 }
 0x803   : > { %v4637_v62 = vpop.xlane.xlu1 %4636 }
 0x804   : > { %v4595_v34 = vmul.f32 1.442695, %v4594_v12  ;;  %v4638_v56 = vsub.f32 %v4494_v22, %v4637_v62 }
 0x805   : > { %v4612_v60 = vpop.xlane.xlu0 %4611 }
 0x806   : > { %6173 = vpow2.f32 %v4595_v34  ;;  %v4639_v50 = vmul.f32 1.442695, %v4638_v56  ;;  %v4613_v45 = vsub.f32 %v7945_v33, %v4612_v60  ;;  %v4614_v23 = vsub.f32 %v4494_v22, %v4612_v60 }
 0x807   : > { %v4672_v31 = vpop.xlane.xlu1 %4671 }
 0x808   : > { %v4615_v42 = vmul.f32 1.442695, %v4613_v45  ;;  %6175 = vpow2.f32 %v4639_v50  ;;  %v4673_v52 = vsub.f32 %v4494_v22, %v4672_v31  ;;  %v4617_v20 = vmul.f32 1.442695, %v4614_v23 }
 0x809   : > { %v4653_v14 = vpop.xlane.xlu0 %4652  ;;  %v4674_v47 = vsub.f32 %v4573_v21, %v4672_v31 }
 0x80a   : > { %v4654_v63 = vsub.f32 %v4494_v22, %v4653_v14  ;;  %6177 = vpow2.f32 %v4615_v42  ;;  %v4675_v0 = vmul.f32 1.442695, %v4673_v52 }
 0x80b   : > { %v4677_v44 = vmul.f32 1.442695, %v4674_v47 }
 0x80c   : > { %v4655_v49 = vmul.f32 1.442695, %v4654_v63 }
 0x80d   : > { %v4581_v41 = vpop.xlane.xlu0 %4580 }
 0x80e   : > { %6179 = vpow2.f32 %v4655_v49  ;;  %v4582_v53 = vsub.f32 %v7945_v33, %v4581_v41 }
 0x80f   : > { %6181 = vpow2.f32 %v4617_v20 }
 0x810   : > { %6183 = vpow2.f32 %v4675_v0  ;;  %v4583_v10 = vmul.f32 1.442695, %v4582_v53 }
 0x811   : > { %6185 = vpow2.f32 %v4677_v44 }
 0x812   : > { %6187 = vpow2.f32 %v4583_v10 }
 0x813   : > { %v7955_v35 = vpop.eup %6173 }
 0x814   : > { %4598 = vrot.lane.b32.xlu1 %v7955_v35, %s6214_s23 }
 0x815   : > { %v7958_v24 = vpop.eup %6175 }
 0x817   : > { %v6178_v18 = vpop.eup %6177 }
 0x818   : > { %4642 = vrot.lane.b32.xlu1 %v7958_v24, %s6215_s24 }
 0x81b   : > { %v7961_v1 = vpop.eup %6179 }
 0x81c   : > { %4621 = vrot.lane.b32.xlu1 %v6178_v18, %s6216_s27  ;;  %4658 = vrot.lane.b32.xlu0 %v7961_v1, %s6217_s28  ;;  %v6182_v38 = vpop.eup %6181 }
 0x81d   : > { %v7964_v55 = vpop.eup %6183 }
 0x81e   : > { %v6186_v16 = vpop.eup %6185 }
 0x81f   : > { %v6188_v39 = vpop.eup %6187 }
 0x820   : > { %4681 = vrot.lane.b32.xlu1 %v7964_v55, %s6218_s30  ;;  %4623 = vrot.lane.b32.xlu0 %v6182_v38, %s6216_s27  ;;  %v4585_v15 = vsel %vm4578_vm10, %v6188_v39, 0.0 }
 0x824   : > { %4683 = vrot.lane.b32.xlu0 %v6186_v16, %s6218_s30 }
 0x844   : > { %4586 = vadd.xlane.f32.xlu1 %v4585_v15 }
 0x886   : > { %v4599_v26 = vpop.permute.xlu1 %4598 }
 0x887   : > { %v4601_v54 = vsel %vm4578_vm10, %v4599_v26, 0.0 }
 0x888   : > { %4602 = vadd.xlane.f32.xlu0 %v4601_v54 }
 0x88a   : > { %v4643_v57 = vpop.permute.xlu1 %4642 }
 0x88b   : > { %v4645_v8 = vsel %vm4578_vm10, %v4643_v57, 0.0 }
 0x88c   : > { %4646 = vadd.xlane.f32.xlu1 %v4645_v8 }
 0x88e   : > { %v4659_v5 = vpop.permute.xlu0 %4658  ;;  %v4622_v7 = vpop.permute.xlu1 %4621 }
 0x88f   : > { %v4661_v33 = vsel %vm4578_vm10, %v4659_v5, 0.0 }
 0x892   : > { %v4624_v40 = vpop.permute.xlu0 %4623  ;;  %v4682_v59 = vpop.permute.xlu1 %4681 }
 0x893   : > { %v4626_v36 = vsel %vm4625_vm11, %v4622_v7, %v4624_v40 }
 0x894   : > { %v4628_v19 = vsel %vm4578_vm10, %v4626_v36, 0.0 }
 0x895   : > { %4629 = vadd.xlane.f32.xlu0 %v4628_v19 }
 0x896   : > { %v4684_v13 = vpop.permute.xlu0 %4683 }
 0x897   : > { %v4686_v51 = vsel %vm4685_vm12, %v4682_v59, %v4684_v13 }
 0x898   : > { %v4688_v4 = vsel %vm4578_vm10, %v4686_v51, 0.0 }
 0x899   : > { %4662 = vadd.xlane.f32.xlu0 %v4661_v33  ;;  %4689 = vadd.xlane.f32.xlu1 %v4688_v4 }
 0x8cd   : > { %v4587_v11 = vpop.xlane.xlu1 %4586 }
 0x911   : > { %v4603_v61 = vpop.xlane.xlu0 %4602 }
 0x912   : > { %6189 = vrcp.f32 %v4603_v61 }
 0x913   : > { %6191 = vrcp.f32 %v4587_v11 }
 0x915   : > { %v4647_v22 = vpop.xlane.xlu1 %4646 }
 0x91e   : > { %v4630_v30 = vpop.xlane.xlu0 %4629 }
 0x91f   : > { %6193 = vrcp.f32 %v4630_v30  ;;  %v6190_v58 = vpop.eup %6189 }
 0x920   : > { %6195 = vrcp.f32 %v4647_v22  ;;  %v6192_v21 = vpop.eup %6191  ;;  %v4605_v2 = vmul.f32 %v6190_v58, %v7955_v35 }
 0x921   : > { %v4589_v6 = vmul.f32 %v6192_v21, %v6188_v39 }
 0x922   : > { %v4690_v43 = vpop.xlane.xlu1 %4689  ;;  %v4663_v28 = vpop.xlane.xlu0 %4662 }
 0x923   : > { %6197 = vrcp.f32 %v4690_v43  ;;  %v4694_v27 = vsel %vm4578_vm10, %v4589_v6, %v4605_v2 }
 0x924   : > { %6199 = vrcp.f32 %v4663_v28 }
 0x92c   : > { %v6194_v9 = vpop.eup %6193 }
 0x92d   : > { %v4632_v3 = vmul.f32 %v6194_v9, %v6178_v18  ;;  %v6196_v32 = vpop.eup %6195  ;;  %v4633_v25 = vmul.f32 %v6194_v9, %v6182_v38 }
 0x92e   : > { %v4649_v48 = vmul.f32 %v6196_v32, %v7958_v24 }
 0x92f   : > { %v4696_v29 = vsel %vm4695_vm13, %v4694_v27, %v4632_v3 }
 0x930   : > { %v6198_v37 = vpop.eup %6197  ;;  %4703 = vst [vmem:[%s391_s14] sm:$0xff] %v4696_v29  ;;  %v4697_v34 = vsel %vm4608_vm6, %v4633_v25, %v4649_v48 }
 0x931   : > { %v6200_v46 = vpop.eup %6199  ;;  %v4692_v17 = vmul.f32 %v6198_v37, %v7964_v55  ;;  %v4693_v12 = vmul.f32 %v6198_v37, %v6186_v16 }
 0x932   : > { %v4665_v62 = vmul.f32 %v6200_v46, %v7961_v1 }
 0x933   : > { %v4702_v56 = vsel %vm4668_vm8, %v4693_v12, 0.0 }
 0x934   : > { %4705 = vst [vmem:[%s391_s14 + $0x10] sm:$0xff] %v4702_v56  ;;  %v4699_v60 = vsel %vm4698_vm14, %v4697_v34, %v4665_v62 }
 0x935   : > { %v4701_v50 = vsel %vm4700_vm15, %v4699_v60, %v4692_v17 }
 0x936   : > { %4704 = vst [vmem:[%s391_s14 + $0x8] sm:$0xff] %v4701_v50 }
 0x937 PF: > { %s21_s17 = sadd.s32 1, %s6208_s17  }
 0x938   : > { %p18_p5 = scmp.ge.s32.totalorder %s21_s17, 6  }
 0x93a   :  { %20 = sbr.rel (!%p18_p5) target bundleno = 1 (0x1), region = 94 }

</bundles_post_ra>
